<compile_context>
chip_gen: v5e
topology: v5e:2x2
jax: 0.10.0
libtpu: 0.0.40
codegen_flags: <defaults>
</compile_context>

<pallas_src>
import functools

import jax
import jax.numpy as jnp
from jax.experimental import pallas as pl
from jax.experimental.pallas import tpu as pltpu

PADDING = 0          # padding_idx for both embedding tables
BN_EPS = 1e-5        # nn.BatchNorm1d default eps


def _gelu_exact(x):
    # nn.GELU() default: exact erf formulation (EUP handles erf/exp).
    return 0.5 * x * (1.0 + jax.lax.erf(x * 0.7071067811865476))


def _batchnorm_train(h):
    # BatchNorm1d, training mode, gamma=1, beta=0: normalize over the batch
    # axis with biased variance.  Single-pass stats (one XLU reduction sweep);
    # E[x^2]-mean^2 can dip slightly negative in f32 -> clamp before rsqrt.
    mean = jnp.mean(h, axis=0, keepdims=True)
    mean_sq = jnp.mean(h * h, axis=0, keepdims=True)
    var = jnp.maximum(mean_sq - mean * mean, 0.0)
    return (h - mean) * jax.lax.rsqrt(var + BN_EPS)


def _prologue_kernel(x_ref, y_ref,
                     ws_ref, bs_ref,
                     wt_ref, bt_ref,
                     w1a_ref, w1b_ref, b1_ref,
                     h1_ref):
    """Batch-wide prologue: 3 matmul stages + BN + GELU, computed once."""
    # source branch
    hs = jnp.dot(x_ref[...], ws_ref[...],
                 preferred_element_type=jnp.float32) + bs_ref[...]
    hs = _gelu_exact(_batchnorm_train(hs))

    # target branch
    ht = jnp.dot(y_ref[...], wt_ref[...],
                 preferred_element_type=jnp.float32) + bt_ref[...]
    ht = _gelu_exact(_batchnorm_train(ht))

    # concat([hs, ht], 1) @ w1  ==  hs @ w1[:S] + ht @ w1[S:]  (no concat copy)
    h1 = (jnp.dot(hs.astype(w1a_ref.dtype), w1a_ref[...],
                  preferred_element_type=jnp.float32)
          + jnp.dot(ht.astype(w1b_ref.dtype), w1b_ref[...],
                    preferred_element_type=jnp.float32)
          + b1_ref[...])
    h1 = _gelu_exact(_batchnorm_train(h1))

    h1_ref[...] = h1.astype(h1_ref.dtype)


def _lin2_kernel(h1_ref, w2_ref, b2_ref, o_ref):
    """One vocab tile of lin2: (B, lin1) @ (lin1, TN) + b.  Pure MXU + DMA."""
    o_ref[...] = (jnp.dot(h1_ref[...], w2_ref[...],
                          preferred_element_type=jnp.float32)
                  + b2_ref[...]).astype(o_ref.dtype)


def ffn_forward(s_tok, t_tok, params, *, vocab_tile=512):
    """Embedding gather/flatten in plain JAX, everything else in Pallas."""
    (ger_emb, en_emb, ws, bs, wt, bt, w1, b1, w2, b2) = params
    B = s_tok.shape[0]
    lin_src = ws.shape[1]
    lin_tgt = wt.shape[1]
    lin1_dim = w2.shape[0]
    V = w2.shape[1]

    cdt = jnp.bfloat16   # matmul operand dtype (f32 accumulation on the MXU)

    # nn.Embedding lookup (padding rows are zeroed in the table itself).
    x = jnp.take(ger_emb, s_tok, axis=0).reshape(B, -1).astype(cdt)
    y = jnp.take(en_emb, t_tok, axis=0).reshape(B, -1).astype(cdt)

    # Row-split of w1 replaces the in-kernel concat.
    w1a = w1[:lin_src].astype(cdt)
    w1b = w1[lin_src:].astype(cdt)

    vmem = pl.BlockSpec(memory_space=pltpu.MemorySpace.VMEM)

    # ---- Kernel 1: batch-wide prologue (BN stats need the whole batch). ----
    prologue_flops = 2 * B * (x.shape[1] * lin_src + y.shape[1] * lin_tgt
                              + (lin_src + lin_tgt) * lin1_dim)
    prologue_bytes = 2 * (x.size + y.size + ws.size + wt.size + w1.size
                          + B * lin1_dim) + 4 * (bs.size + bt.size + b1.size)

    h1 = pl.pallas_call(
        _prologue_kernel,
        out_shape=jax.ShapeDtypeStruct((B, lin1_dim), cdt),
        in_specs=[vmem] * 9,
        out_specs=vmem,
        compiler_params=pltpu.CompilerParams(
            vmem_limit_bytes=32 * 1024 * 1024),
        cost_estimate=pl.CostEstimate(flops=prologue_flops,
                                      transcendentals=3 * B * lin1_dim,
                                      bytes_accessed=prologue_bytes),
    )(x, y, ws.astype(cdt), bs, wt.astype(cdt), bt, w1a, w1b, b1)

    # ---- Kernel 2: lin2 tiled over the vocab (lane) axis. ----
    # Pad the vocab axis to a multiple of the (128-aligned) tile so the output
    # stores are lane-dense (unmasked vst) and every w2 block is (8,128)-legal.
    tn = max(128, (int(vocab_tile) // 128) * 128)
    tn = min(tn, ((V + 127) // 128) * 128)   # don't over-tile tiny vocabs
    n_tiles = pl.cdiv(V, tn)
    v_pad = n_tiles * tn

    w2c = w2.astype(cdt)
    b2c = b2.astype(jnp.float32)
    if v_pad != V:
        w2c = jnp.pad(w2c, ((0, 0), (0, v_pad - V)))
        b2c = jnp.pad(b2c, ((0, 0), (0, v_pad - V)))

    flops = 2 * B * lin1_dim * v_pad
    bytes_accessed = (w2c.size * 2 + h1.size * 2 + b2c.size * 4
                      + B * v_pad * 4)

    logits = pl.pallas_call(
        _lin2_kernel,
        out_shape=jax.ShapeDtypeStruct((B, v_pad), jnp.float32),
        grid=(n_tiles,),
        in_specs=[
            # h1 is tile-invariant: same block every grid step (stays resident).
            pl.BlockSpec((B, lin1_dim), lambda j: (0, 0)),
            # w2 / b2 streamed per vocab tile (double-buffered by the pipeline).
            pl.BlockSpec((lin1_dim, tn), lambda j: (0, j)),
            pl.BlockSpec((1, tn), lambda j: (0, j)),
        ],
        out_specs=pl.BlockSpec((B, tn), lambda j: (0, j)),
        compiler_params=pltpu.CompilerParams(
            # Independent vocab tiles -> split across v7x's two TensorCores.
            dimension_semantics=("parallel",),
            # Explicit budget: fine on v5e (16 MiB default), v6e/v7x (32 MiB
            # default, 64 MiB physical on v7x).  Tile sizes are chosen so a
            # double-buffered w2 tile stays far below this on every generation.
            vmem_limit_bytes=32 * 1024 * 1024),
        cost_estimate=pl.CostEstimate(flops=flops, transcendentals=0,
                                      bytes_accessed=bytes_accessed),
    )(h1, w2c, b2c)

    # Drop the padded logit columns (they are exact zeros + 0 bias anyway).
    return logits[:, :V]


def init_params(key, source_vocab_size, target_vocab_size,
                embedding_dim, linSource_dim, linTarget_dim, lin1_dim,
                window_size):
    """strategy='uniform', zero_bias=True (PyTorch reference init)."""
    ks = jax.random.split(key, 6)
    uni = lambda k, shape: jax.random.uniform(k, shape, jnp.float32, -1.0, 1.0)

    ger_emb = uni(ks[0], (source_vocab_size, embedding_dim))
    ger_emb = ger_emb.at[PADDING].set(0.0)                 # padding_idx row
    en_emb = uni(ks[1], (target_vocab_size, embedding_dim))
    en_emb = en_emb.at[PADDING].set(0.0)

    src_in = (2 * window_size + 1) * embedding_dim
    tgt_in = window_size * embedding_dim

    ws = uni(ks[2], (src_in, linSource_dim))
    bs = jnp.zeros((1, linSource_dim), jnp.float32)
    wt = uni(ks[3], (tgt_in, linTarget_dim))
    bt = jnp.zeros((1, linTarget_dim), jnp.float32)
    w1 = uni(ks[4], (linSource_dim + linTarget_dim, lin1_dim))
    b1 = jnp.zeros((1, lin1_dim), jnp.float32)
    w2 = uni(ks[5], (lin1_dim, target_vocab_size))
    b2 = jnp.zeros((1, target_vocab_size), jnp.float32)

    return (ger_emb, en_emb, ws, bs, wt, bt, w1, b1, w2, b2)


if __name__ == "__main__":
    # Small but lane/sublane-friendly shapes: hidden dims are 128-multiples,
    # batch=128 fills the MXU sublane dimension, vocab=300 exercises the
    # vocab-tile grid (3 tiles of 128) and the pad/slice path.
    SOURCE_VOCAB = 50
    TARGET_VOCAB = 300
    EMBED_DIM = 32
    LIN_SRC = 128
    LIN_TGT = 128
    LIN1 = 128
    WINDOW = 2
    BATCH = 128            # BatchNorm (train) stats are full-batch: keep whole.
    VOCAB_TILE = 128       # small-vocab demo tile; use 512-2048 at real vocab.

    key = jax.random.PRNGKey(0)
    k_params, k_s, k_t = jax.random.split(key, 3)

    params = init_params(k_params, SOURCE_VOCAB, TARGET_VOCAB,
                         EMBED_DIM, LIN_SRC, LIN_TGT, LIN1, WINDOW)

    # s: (B, 2*window+1) source-context ids; t: (B, window) target-history ids.
    s_tok = jax.random.randint(k_s, (BATCH, 2 * WINDOW + 1), 0, SOURCE_VOCAB,
                               jnp.int32)
    t_tok = jax.random.randint(k_t, (BATCH, WINDOW), 0, TARGET_VOCAB, jnp.int32)

    fwd = jax.jit(functools.partial(ffn_forward, vocab_tile=VOCAB_TILE))
    out = fwd(s_tok, t_tok, params)
    out = jax.block_until_ready(out)

    assert out.shape == (BATCH, TARGET_VOCAB), out.shape
    assert bool(jnp.all(jnp.isfinite(out)))
    print("KERNEL_OK")
</pallas_src>

<mosaic_0001>
module attributes {stable_mosaic.version = 11 : i64} {
  func.func @_prologue_kernel(%arg0: memref<128x160xbf16, #tpu.memory_space<vmem>>, %arg1: memref<128x64xbf16, #tpu.memory_space<vmem>>, %arg2: memref<160x128xbf16, #tpu.memory_space<vmem>>, %arg3: memref<1x128xf32, #tpu.memory_space<vmem>>, %arg4: memref<64x128xbf16, #tpu.memory_space<vmem>>, %arg5: memref<1x128xf32, #tpu.memory_space<vmem>>, %arg6: memref<128x128xbf16, #tpu.memory_space<vmem>>, %arg7: memref<128x128xbf16, #tpu.memory_space<vmem>>, %arg8: memref<1x128xf32, #tpu.memory_space<vmem>>, %arg9: memref<128x128xbf16, #tpu.memory_space<vmem>>) attributes {dimension_semantics = [], scalar_prefetch = 0 : i64, scratch_operands = 0 : i64, tpu.core_type = #tpu.core_type<tc>} {
    %c0 = arith.constant 0 : index
    %c0_0 = arith.constant 0 : index
    %0 = vector.load %arg0[%c0, %c0_0] : memref<128x160xbf16, #tpu.memory_space<vmem>>, vector<128x160xbf16>
    %c0_1 = arith.constant 0 : index
    %c0_2 = arith.constant 0 : index
    %1 = vector.load %arg2[%c0_1, %c0_2] : memref<160x128xbf16, #tpu.memory_space<vmem>>, vector<160x128xbf16>
    %cst = arith.constant dense<0.000000e+00> : vector<128x128xf32>
    %2 = tpu.matmul %0, %1, %cst {dimension_numbers = #tpu.dot_dimension_numbers<[1], [0], [0], [1], [0, 0, 1, 1], [], []>} : vector<128x160xbf16>, vector<160x128xbf16>, vector<128x128xf32> -> vector<128x128xf32>
    %c0_3 = arith.constant 0 : index
    %c0_4 = arith.constant 0 : index
    %3 = vector.load %arg3[%c0_3, %c0_4] : memref<1x128xf32, #tpu.memory_space<vmem>>, vector<1x128xf32>
    %4 = vector.broadcast %3 : vector<1x128xf32> to vector<128x128xf32>
    %5 = arith.addf %2, %4 : vector<128x128xf32>
    %cst_5 = arith.constant dense<0.000000e+00> : vector<128xf32>
    %6 = vector.multi_reduction <add>, %5, %cst_5 [0] : vector<128x128xf32> to vector<128xf32>
    %7 = vector.shape_cast %6 : vector<128xf32> to vector<1x128xf32>
    %cst_6 = arith.constant 1.280000e+02 : f32
    %8 = vector.broadcast %cst_6 : f32 to vector<1x128xf32>
    %9 = arith.divf %7, %8 : vector<1x128xf32>
    %10 = arith.mulf %5, %5 : vector<128x128xf32>
    %cst_7 = arith.constant dense<0.000000e+00> : vector<128xf32>
    %11 = vector.multi_reduction <add>, %10, %cst_7 [0] : vector<128x128xf32> to vector<128xf32>
    %12 = vector.shape_cast %11 : vector<128xf32> to vector<1x128xf32>
    %cst_8 = arith.constant 1.280000e+02 : f32
    %13 = vector.broadcast %cst_8 : f32 to vector<1x128xf32>
    %14 = arith.divf %12, %13 : vector<1x128xf32>
    %15 = arith.mulf %9, %9 : vector<1x128xf32>
    %16 = arith.subf %14, %15 : vector<1x128xf32>
    %cst_9 = arith.constant 0.000000e+00 : f32
    %17 = vector.broadcast %cst_9 : f32 to vector<1x128xf32>
    %18 = arith.maximumf %16, %17 : vector<1x128xf32>
    %19 = vector.broadcast %9 : vector<1x128xf32> to vector<128x128xf32>
    %20 = arith.subf %5, %19 : vector<128x128xf32>
    %cst_10 = arith.constant 9.99999974E-6 : f32
    %21 = vector.broadcast %cst_10 : f32 to vector<1x128xf32>
    %22 = arith.addf %18, %21 : vector<1x128xf32>
    %23 = math.rsqrt %22 : vector<1x128xf32>
    %24 = vector.broadcast %23 : vector<1x128xf32> to vector<128x128xf32>
    %25 = arith.mulf %20, %24 : vector<128x128xf32>
    %cst_11 = arith.constant 5.000000e-01 : f32
    %26 = vector.broadcast %cst_11 : f32 to vector<128x128xf32>
    %27 = arith.mulf %26, %25 : vector<128x128xf32>
    %cst_12 = arith.constant 0.707106769 : f32
    %28 = vector.broadcast %cst_12 : f32 to vector<128x128xf32>
    %29 = arith.mulf %25, %28 : vector<128x128xf32>
    %30 = math.erf %29 : vector<128x128xf32>
    %cst_13 = arith.constant 1.000000e+00 : f32
    %31 = vector.broadcast %cst_13 : f32 to vector<128x128xf32>
    %32 = arith.addf %31, %30 : vector<128x128xf32>
    %33 = arith.mulf %27, %32 : vector<128x128xf32>
    %c0_14 = arith.constant 0 : index
    %c0_15 = arith.constant 0 : index
    %34 = vector.load %arg1[%c0_14, %c0_15] : memref<128x64xbf16, #tpu.memory_space<vmem>>, vector<128x64xbf16>
    %c0_16 = arith.constant 0 : index
    %c0_17 = arith.constant 0 : index
    %35 = vector.load %arg4[%c0_16, %c0_17] : memref<64x128xbf16, #tpu.memory_space<vmem>>, vector<64x128xbf16>
    %cst_18 = arith.constant dense<0.000000e+00> : vector<128x128xf32>
    %36 = tpu.matmul %34, %35, %cst_18 {dimension_numbers = #tpu.dot_dimension_numbers<[1], [0], [0], [1], [0, 0, 1, 1], [], []>} : vector<128x64xbf16>, vector<64x128xbf16>, vector<128x128xf32> -> vector<128x128xf32>
    %c0_19 = arith.constant 0 : index
    %c0_20 = arith.constant 0 : index
    %37 = vector.load %arg5[%c0_19, %c0_20] : memref<1x128xf32, #tpu.memory_space<vmem>>, vector<1x128xf32>
    %38 = vector.broadcast %37 : vector<1x128xf32> to vector<128x128xf32>
    %39 = arith.addf %36, %38 : vector<128x128xf32>
    %cst_21 = arith.constant dense<0.000000e+00> : vector<128xf32>
    %40 = vector.multi_reduction <add>, %39, %cst_21 [0] : vector<128x128xf32> to vector<128xf32>
    %41 = vector.shape_cast %40 : vector<128xf32> to vector<1x128xf32>
    %cst_22 = arith.constant 1.280000e+02 : f32
    %42 = vector.broadcast %cst_22 : f32 to vector<1x128xf32>
    %43 = arith.divf %41, %42 : vector<1x128xf32>
    %44 = arith.mulf %39, %39 : vector<128x128xf32>
    %cst_23 = arith.constant dense<0.000000e+00> : vector<128xf32>
    %45 = vector.multi_reduction <add>, %44, %cst_23 [0] : vector<128x128xf32> to vector<128xf32>
    %46 = vector.shape_cast %45 : vector<128xf32> to vector<1x128xf32>
    %cst_24 = arith.constant 1.280000e+02 : f32
    %47 = vector.broadcast %cst_24 : f32 to vector<1x128xf32>
    %48 = arith.divf %46, %47 : vector<1x128xf32>
    %49 = arith.mulf %43, %43 : vector<1x128xf32>
    %50 = arith.subf %48, %49 : vector<1x128xf32>
    %cst_25 = arith.constant 0.000000e+00 : f32
    %51 = vector.broadcast %cst_25 : f32 to vector<1x128xf32>
    %52 = arith.maximumf %50, %51 : vector<1x128xf32>
    %53 = vector.broadcast %43 : vector<1x128xf32> to vector<128x128xf32>
    %54 = arith.subf %39, %53 : vector<128x128xf32>
    %cst_26 = arith.constant 9.99999974E-6 : f32
    %55 = vector.broadcast %cst_26 : f32 to vector<1x128xf32>
    %56 = arith.addf %52, %55 : vector<1x128xf32>
    %57 = math.rsqrt %56 : vector<1x128xf32>
    %58 = vector.broadcast %57 : vector<1x128xf32> to vector<128x128xf32>
    %59 = arith.mulf %54, %58 : vector<128x128xf32>
    %cst_27 = arith.constant 5.000000e-01 : f32
    %60 = vector.broadcast %cst_27 : f32 to vector<128x128xf32>
    %61 = arith.mulf %60, %59 : vector<128x128xf32>
    %cst_28 = arith.constant 0.707106769 : f32
    %62 = vector.broadcast %cst_28 : f32 to vector<128x128xf32>
    %63 = arith.mulf %59, %62 : vector<128x128xf32>
    %64 = math.erf %63 : vector<128x128xf32>
    %cst_29 = arith.constant 1.000000e+00 : f32
    %65 = vector.broadcast %cst_29 : f32 to vector<128x128xf32>
    %66 = arith.addf %65, %64 : vector<128x128xf32>
    %67 = arith.mulf %61, %66 : vector<128x128xf32>
    %68 = arith.truncf %33 : vector<128x128xf32> to vector<128x128xbf16>
    %c0_30 = arith.constant 0 : index
    %c0_31 = arith.constant 0 : index
    %69 = vector.load %arg6[%c0_30, %c0_31] : memref<128x128xbf16, #tpu.memory_space<vmem>>, vector<128x128xbf16>
    %cst_32 = arith.constant dense<0.000000e+00> : vector<128x128xf32>
    %70 = tpu.matmul %68, %69, %cst_32 {dimension_numbers = #tpu.dot_dimension_numbers<[1], [0], [0], [1], [0, 0, 1, 1], [], []>} : vector<128x128xbf16>, vector<128x128xbf16>, vector<128x128xf32> -> vector<128x128xf32>
    %71 = arith.truncf %67 : vector<128x128xf32> to vector<128x128xbf16>
    %c0_33 = arith.constant 0 : index
    %c0_34 = arith.constant 0 : index
    %72 = vector.load %arg7[%c0_33, %c0_34] : memref<128x128xbf16, #tpu.memory_space<vmem>>, vector<128x128xbf16>
    %cst_35 = arith.constant dense<0.000000e+00> : vector<128x128xf32>
    %73 = tpu.matmul %71, %72, %cst_35 {dimension_numbers = #tpu.dot_dimension_numbers<[1], [0], [0], [1], [0, 0, 1, 1], [], []>} : vector<128x128xbf16>, vector<128x128xbf16>, vector<128x128xf32> -> vector<128x128xf32>
    %74 = arith.addf %70, %73 : vector<128x128xf32>
    %c0_36 = arith.constant 0 : index
    %c0_37 = arith.constant 0 : index
    %75 = vector.load %arg8[%c0_36, %c0_37] : memref<1x128xf32, #tpu.memory_space<vmem>>, vector<1x128xf32>
    %76 = vector.broadcast %75 : vector<1x128xf32> to vector<128x128xf32>
    %77 = arith.addf %74, %76 : vector<128x128xf32>
    %cst_38 = arith.constant dense<0.000000e+00> : vector<128xf32>
    %78 = vector.multi_reduction <add>, %77, %cst_38 [0] : vector<128x128xf32> to vector<128xf32>
    %79 = vector.shape_cast %78 : vector<128xf32> to vector<1x128xf32>
    %cst_39 = arith.constant 1.280000e+02 : f32
    %80 = vector.broadcast %cst_39 : f32 to vector<1x128xf32>
    %81 = arith.divf %79, %80 : vector<1x128xf32>
    %82 = arith.mulf %77, %77 : vector<128x128xf32>
    %cst_40 = arith.constant dense<0.000000e+00> : vector<128xf32>
    %83 = vector.multi_reduction <add>, %82, %cst_40 [0] : vector<128x128xf32> to vector<128xf32>
    %84 = vector.shape_cast %83 : vector<128xf32> to vector<1x128xf32>
    %cst_41 = arith.constant 1.280000e+02 : f32
    %85 = vector.broadcast %cst_41 : f32 to vector<1x128xf32>
    %86 = arith.divf %84, %85 : vector<1x128xf32>
    %87 = arith.mulf %81, %81 : vector<1x128xf32>
    %88 = arith.subf %86, %87 : vector<1x128xf32>
    %cst_42 = arith.constant 0.000000e+00 : f32
    %89 = vector.broadcast %cst_42 : f32 to vector<1x128xf32>
    %90 = arith.maximumf %88, %89 : vector<1x128xf32>
    %91 = vector.broadcast %81 : vector<1x128xf32> to vector<128x128xf32>
    %92 = arith.subf %77, %91 : vector<128x128xf32>
    %cst_43 = arith.constant 9.99999974E-6 : f32
    %93 = vector.broadcast %cst_43 : f32 to vector<1x128xf32>
    %94 = arith.addf %90, %93 : vector<1x128xf32>
    %95 = math.rsqrt %94 : vector<1x128xf32>
    %96 = vector.broadcast %95 : vector<1x128xf32> to vector<128x128xf32>
    %97 = arith.mulf %92, %96 : vector<128x128xf32>
    %cst_44 = arith.constant 5.000000e-01 : f32
    %98 = vector.broadcast %cst_44 : f32 to vector<128x128xf32>
    %99 = arith.mulf %98, %97 : vector<128x128xf32>
    %cst_45 = arith.constant 0.707106769 : f32
    %100 = vector.broadcast %cst_45 : f32 to vector<128x128xf32>
    %101 = arith.mulf %97, %100 : vector<128x128xf32>
    %102 = math.erf %101 : vector<128x128xf32>
    %cst_46 = arith.constant 1.000000e+00 : f32
    %103 = vector.broadcast %cst_46 : f32 to vector<128x128xf32>
    %104 = arith.addf %103, %102 : vector<128x128xf32>
    %105 = arith.mulf %99, %104 : vector<128x128xf32>
    %106 = arith.truncf %105 : vector<128x128xf32> to vector<128x128xbf16>
    %c0_47 = arith.constant 0 : index
    %c0_48 = arith.constant 0 : index
    %107 = vector.load %arg9[%c0_47, %c0_48] : memref<128x128xbf16, #tpu.memory_space<vmem>>, vector<128x128xbf16>
    tpu.vector_store %arg9[%c0_47, %c0_48], %106 {strides = array<i32>} : memref<128x128xbf16, #tpu.memory_space<vmem>>, vector<128x128xbf16>,
    return
  }
}

module attributes {stable_mosaic.version = 11 : i64} {
  func.func @_lin2_kernel(%arg0: i32, %arg1: memref<128x128xbf16, #tpu.memory_space<vmem>>, %arg2: memref<128x128xbf16, #tpu.memory_space<vmem>>, %arg3: memref<1x128xf32, #tpu.memory_space<vmem>>, %arg4: memref<128x128xf32, #tpu.memory_space<vmem>>) attributes {dimension_semantics = [#tpu.dimension_semantics<parallel>], iteration_bounds = array<i64: 3>, scalar_prefetch = 0 : i64, scratch_operands = 0 : i64, tpu.core_type = #tpu.core_type<tc>, window_params = [{pipeline_mode = #tpu.pipeline_mode<synchronous>, transform_indices = @transform_0, window_bounds = array<i64: 128, 128>}, {transform_indices = @transform_1, window_bounds = array<i64: 128, 128>}, {transform_indices = @transform_2, window_bounds = array<i64: 1, 128>}, {transform_indices = @transform_3, window_bounds = array<i64: 128, 128>}]} {
    %c0 = arith.constant 0 : index
    %c0_0 = arith.constant 0 : index
    %0 = vector.load %arg1[%c0, %c0_0] : memref<128x128xbf16, #tpu.memory_space<vmem>>, vector<128x128xbf16>
    %c0_1 = arith.constant 0 : index
    %c0_2 = arith.constant 0 : index
    %1 = vector.load %arg2[%c0_1, %c0_2] : memref<128x128xbf16, #tpu.memory_space<vmem>>, vector<128x128xbf16>
    %cst = arith.constant dense<0.000000e+00> : vector<128x128xf32>
    %2 = tpu.matmul %0, %1, %cst {dimension_numbers = #tpu.dot_dimension_numbers<[1], [0], [0], [1], [0, 0, 1, 1], [], []>} : vector<128x128xbf16>, vector<128x128xbf16>, vector<128x128xf32> -> vector<128x128xf32>
    %c0_3 = arith.constant 0 : index
    %c0_4 = arith.constant 0 : index
    %3 = vector.load %arg3[%c0_3, %c0_4] : memref<1x128xf32, #tpu.memory_space<vmem>>, vector<1x128xf32>
    %4 = vector.broadcast %3 : vector<1x128xf32> to vector<128x128xf32>
    %5 = arith.addf %2, %4 : vector<128x128xf32>
    %c0_5 = arith.constant 0 : index
    %c0_6 = arith.constant 0 : index
    %6 = vector.load %arg4[%c0_5, %c0_6] : memref<128x128xf32, #tpu.memory_space<vmem>>, vector<128x128xf32>
    tpu.vector_store %arg4[%c0_5, %c0_6], %5 {strides = array<i32>} : memref<128x128xf32, #tpu.memory_space<vmem>>, vector<128x128xf32>,
    return
  }
  func.func @transform_0(%arg0: i32) -> (i32, i32) {
    %c0_i32 = arith.constant 0 : i32
    %c0_i32_0 = arith.constant 0 : i32
    %c0_i32_1 = arith.constant 0 : i32
    return %c0_i32, %c0_i32_0 : i32, i32
  }
  func.func @transform_1(%arg0: i32) -> (i32, i32) {
    %c0_i32 = arith.constant 0 : i32
    %c0_i32_0 = arith.constant 0 : i32
    return %c0_i32, %arg0 : i32, i32
  }
  func.func @transform_2(%arg0: i32) -> (i32, i32) {
    %c0_i32 = arith.constant 0 : i32
    %c0_i32_0 = arith.constant 0 : i32
    return %c0_i32, %arg0 : i32, i32
  }
  func.func @transform_3(%arg0: i32) -> (i32, i32) {
    %c0_i32 = arith.constant 0 : i32
    %c0_i32_0 = arith.constant 0 : i32
    return %c0_i32, %arg0 : i32, i32
  }
}

</mosaic_0001>

<bundles_post_ra>
// kernel: ffn_forward.3
= control target key start
LH: loop header
LB: loop body
LE: loop exit
PB: predicated region body
PF: predicated region fallthrough
CT: control target
= control target key end

     0   :  { %s832_s12 = smov 0   ;;  %s834_s13 = smov 0   ;;  %s995_s0 = inlined_call_operand.vmem [shape: bf16[128,128], index: 0, kind: input, shape index: {}]   ;;  %s996_s1 = inlined_call_operand.vmem [shape: bf16[128,384], index: 1, kind: input, shape index: {}]   ;;  %s997_s2 = inlined_call_operand.vmem [shape: f32[1,384], index: 2, kind: input, shape index: {}]   ;;  %s998_s3 = inlined_call_operand.vmem [shape: f32[128,384], index: 3, kind: output, shape index: {}]  }
   0x1   :  { %s836_s14 = smov 0  }
   0x2 LB: > { %s848_s15 = sadd.s32 4294967295, %s810_s14   ;;  %s851_s16 = sadd.s32 1, %s810_s14   ;;  %s810_s14 = sphi %s836_s14, %s1002_s14   ;;  %s806_s13 = sphi %s834_s13, %s1001_s13   ;;  %s802_s12 = sphi %s832_s12, %s1000_s12  }
   0x3   : > { %s38_s17 = ssub.s32 %s810_s14, %s851_s16  ;;  %s41_s18 = sadd.s32 1, %s806_s13 }
   0x4   : > { %p39_p0 = scmp.eq.s32.totalorder %s38_s17, 0  ;;  %p48_p1 = scmp.ne.s32.totalorder %s806_s13, %s802_s12 }
   0x5   : > { %p49_p2 = scmp.eq.s32.totalorder %s810_s14, 0  ;;  %p104_p3 = scmp.eq.s32.totalorder %s848_s15, 2 }
   0x6   : > { %s861_s19 = scalar_select %p39_p0, %s806_s13, %s41_s18  }
   0x7   : > { %p50_p4 = por %p49_p2, %p48_p1  ;;  %p863_p5 = por %p104_p3, %p48_p1 }
   0x8   : > { %p649_p6 = scmp.ge.s32.totalorder %s810_s14, 3 }
   0xa   : > { %129 = sbr.rel (%p649_p6) target bundleno = 35 (0x23), region = 20 }
   0xf   : > { %132 = sbr.rel (!%p50_p4) target bundleno = 35 (0x23), region = 24  ;;  %s134_s21 = sand.u32 (%p50_p4), 1, %s806_s13  }
  0x10   : > { %s651_s22 = sshll.u32 (%p50_p4), %s810_s14, 2  ;;  %s650_s23 = sshll.u32 (%p50_p4), %s134_s21, 6 }
  0x11   : > { %s873_s26 = scalar_lea.vmem (%p50_p4), %s996_s1, %s651_s22  ;;  %s136_s27 = scalar_lea.vmem (%p50_p4), [#allocation2], %s650_s23 }
  0x12   : > { %v155_v0 = vld [vmem:[%s873_s26] sm:$0xf] (%p50_p4)  ;;  %v157_v1 = vld [vmem:[%s873_s26 + $0xc] sm:$0xf] (%p50_p4)  ;;  %v159_v2 = vld [vmem:[%s873_s26 + $0x18] sm:$0xf] (%p50_p4) }
  0x13   : > { %156 = vst [vmem:[%s136_s27] sm:$0xf] (%p50_p4), %v155_v0  ;;  %v161_v3 = vld [vmem:[%s873_s26 + $0x24] sm:$0xf] (%p50_p4)  ;;  %v163_v4 = vld [vmem:[%s873_s26 + $0x30] sm:$0xf] (%p50_p4) }
  0x14   : > { %158 = vst [vmem:[%s136_s27 + $0x4] sm:$0xf] %v157_v1  ;;  %v165_v5 = vld [vmem:[%s873_s26 + $0x3c] sm:$0xf]  ;;  %v167_v6 = vld [vmem:[%s873_s26 + $0x48] sm:$0xf] }
  0x15   : > { %160 = vst [vmem:[%s136_s27 + $0x8] sm:$0xf] %v159_v2  ;;  %v169_v7 = vld [vmem:[%s873_s26 + $0x54] sm:$0xf]  ;;  %v171_v8 = vld [vmem:[%s873_s26 + $0x60] sm:$0xf] }
  0x16   : > { %162 = vst [vmem:[%s136_s27 + $0xc] sm:$0xf] %v161_v3  ;;  %v173_v9 = vld [vmem:[%s873_s26 + $0x6c] sm:$0xf]  ;;  %v175_v10 = vld [vmem:[%s873_s26 + $0x78] sm:$0xf] }
  0x17   : > { %164 = vst [vmem:[%s136_s27 + $0x10] sm:$0xf] %v163_v4  ;;  %v177_v11 = vld [vmem:[%s873_s26 + $0x84] sm:$0xf]  ;;  %v179_v12 = vld [vmem:[%s873_s26 + $0x90] sm:$0xf] }
  0x18   : > { %166 = vst [vmem:[%s136_s27 + $0x14] sm:$0xf] %v165_v5  ;;  %v181_v13 = vld [vmem:[%s873_s26 + $0x9c] sm:$0xf]  ;;  %v183_v14 = vld [vmem:[%s873_s26 + $0xa8] sm:$0xf] }
  0x19   : > { %168 = vst [vmem:[%s136_s27 + $0x18] sm:$0xf] %v167_v6  ;;  %v185_v15 = vld [vmem:[%s873_s26 + $0xb4] sm:$0xf] }
  0x1a   : > { %170 = vst [vmem:[%s136_s27 + $0x1c] sm:$0xf] %v169_v7 }
  0x1b   : > { %172 = vst [vmem:[%s136_s27 + $0x20] sm:$0xf] %v171_v8 }
  0x1c   : > { %174 = vst [vmem:[%s136_s27 + $0x24] sm:$0xf] %v173_v9 }
  0x1d   : > { %176 = vst [vmem:[%s136_s27 + $0x28] sm:$0xf] %v175_v10 }
  0x1e   : > { %178 = vst [vmem:[%s136_s27 + $0x2c] sm:$0xf] %v177_v11 }
  0x1f   : > { %180 = vst [vmem:[%s136_s27 + $0x30] sm:$0xf] %v179_v12 }
  0x20   : > { %182 = vst [vmem:[%s136_s27 + $0x34] sm:$0xf] %v181_v13 }
  0x21   : > { %184 = vst [vmem:[%s136_s27 + $0x38] sm:$0xf] %v183_v14 }
  0x22   : > { %186 = vst [vmem:[%s136_s27 + $0x3c] sm:$0xf] %v185_v15 }
  0x23 PF: > { %p652_p7 = scmp.ge.s32.totalorder %s810_s14, 1  ;;  %p247_p8 = scmp.lt.s32.totalorder %s810_s14, 4 }
  0x25   : > { %p248_p9 = pnand %p652_p7, %p247_p8 }
  0x26   : > { %s254_s28 = sand.u32 (!%p248_p9), 1, %s802_s12   ;;  %p279_p10 = scmp.lt.s32.totalorder (!%p248_p9), %s848_s15, 2 }
  0x27   : > { %251 = sbr.rel (%p248_p9) target bundleno = 245 (0xf5), region = 69  ;;  %s653_s29 = sshll.u32 (!%p248_p9), %s254_s28, 6 }
  0x28   : > { %s897_s30 = scalar_lea.vmem (!%p248_p9), [#allocation2], %s653_s29  ;;  %s654_s5 = sshll.u32 (!%p248_p9), %s254_s28, 7 }
  0x29   : > { %s945_s9 = scalar_lea.vmem (!%p248_p9), [#allocation3], %s654_s5 }
  0x2c   : > { %v738_v16 = vld [vmem:[%s897_s30 + $0x38] sm:$0xff]  ;;  %s901_s4 = scalar_select %p279_p10, %s848_s15, 2  ;;  %v737_v17 = vld [vmem:[%s897_s30 + $0x30] sm:$0xff]  ;;  %v736_v18 = vld [vmem:[%s897_s30 + $0x28] sm:$0xff] }
  0x2d   : > { %414 = vmatpush.bf16.msra.mxu0 %v738_v16  ;;  %739 = vmatpush.bf16.msra.mxu1 %v738_v16  ;;  %v735_v19 = vld [vmem:[%s897_s30 + $0x20] sm:$0xff]  ;;  %v734_v20 = vld [vmem:[%s897_s30 + $0x18] sm:$0xff]  ;;  %v733_v21 = vld [vmem:[%s897_s30 + $0x10] sm:$0xff]  ;;  %s720_s12 = sshll.u32 (%p863_p5), %s848_s15, 3 }
  0x2e   : > { %740 = vmatpush.bf16.msra.mxu2 %v738_v16  ;;  %741 = vmatpush.bf16.msra.mxu3 %v738_v16  ;;  %s281_s7 = scalar_lea.vmem %s997_s2, %s901_s4  ;;  %v732_v22 = vld [vmem:[%s897_s30 + $0x8] sm:$0xff]  ;;  %v731_v23 = vld [vmem:[%s897_s30] sm:$0xff]  ;;  %v725_v25 = vld [vmem:[%s995_s0 + $0x10] sm:$0xff] }
  0x2f   : > { %v723_v24 = vld [vmem:[%s995_s0] sm:$0xff]  ;;  %v729_v27 = vld [vmem:[%s995_s0 + $0x30] sm:$0xff]  ;;  %v724_v28 = vld [vmem:[%s995_s0 + $0x8] sm:$0xff] }
  0x30   : > { %v727_v26 = vld [vmem:[%s995_s0 + $0x20] sm:$0xff]  ;;  %v726_v29 = vld [vmem:[%s995_s0 + $0x18] sm:$0xff]  ;;  %v728_v30 = vld [vmem:[%s995_s0 + $0x28] sm:$0xff] }
  0x31   : > { %415 = vmatpush.bf16.msra.mxu0 %v737_v17  ;;  %742 = vmatpush.bf16.msra.mxu1 %v737_v17  ;;  %v730_v31 = vld [vmem:[%s995_s0 + $0x38] sm:$0xff]  ;;  %v787_v32 = vld [vmem:[%s281_s7] ss:$0 sm:$0xff]  ;;  %s487_s7 = scalar_lea.vmem (%p863_p5), %s998_s3, %s720_s12 }
  0x32   : > { %743 = vmatpush.bf16.msra.mxu2 %v737_v17  ;;  %744 = vmatpush.bf16.msra.mxu3 %v737_v17 }
  0x35   : > { %416 = vmatpush.bf16.msra.mxu0 %v736_v18  ;;  %745 = vmatpush.bf16.msra.mxu1 %v736_v18 }
  0x36   : > { %746 = vmatpush.bf16.msra.mxu2 %v736_v18  ;;  %747 = vmatpush.bf16.msra.mxu3 %v736_v18 }
  0x39   : > { %417 = vmatpush.bf16.msra.mxu0 %v735_v19  ;;  %748 = vmatpush.bf16.msra.mxu1 %v735_v19 }
  0x3a   : > { %749 = vmatpush.bf16.msra.mxu2 %v735_v19  ;;  %750 = vmatpush.bf16.msra.mxu3 %v735_v19 }
  0x3d   : > { %418 = vmatpush.bf16.msra.mxu0 %v734_v20  ;;  %751 = vmatpush.bf16.msra.mxu1 %v734_v20 }
  0x3e   : > { %752 = vmatpush.bf16.msra.mxu2 %v734_v20  ;;  %753 = vmatpush.bf16.msra.mxu3 %v734_v20 }
  0x41   : > { %419 = vmatpush.bf16.msra.mxu0 %v733_v21  ;;  %754 = vmatpush.bf16.msra.mxu1 %v733_v21 }
  0x42   : > { %755 = vmatpush.bf16.msra.mxu2 %v733_v21  ;;  %756 = vmatpush.bf16.msra.mxu3 %v733_v21 }
  0x45   : > { %420 = vmatpush.bf16.msra.mxu0 %v732_v22  ;;  %757 = vmatpush.bf16.msra.mxu1 %v732_v22 }
  0x46   : > { %758 = vmatpush.bf16.msra.mxu2 %v732_v22  ;;  %759 = vmatpush.bf16.msra.mxu3 %v732_v22 }
  0x49   : > { %421 = vmatpush.bf16.msra.mxu0 %v731_v23  ;;  %760 = vmatpush.bf16.msra.mxu1 %v731_v23 }
  0x4a   : > { %761 = vmatpush.bf16.msra.mxu2 %v731_v23  ;;  %762 = vmatpush.bf16.msra.mxu3 %v731_v23 }
  0x4c   : > { %422 = vmatmul.bf16.vlgmr.msra.gmra.mxu0 %v723_v24  ;;  %432 = vmatmul.bf16.vlgmr.msra.gmra.mxu1 %v725_v25 }
  0x4d   : > { %442 = vmatmul.bf16.vlgmr.msra.gmra.mxu2 %v727_v26  ;;  %452 = vmatmul.bf16.vlgmr.msra.gmra.mxu3 %v729_v27 }
  0x5c   : > { %427 = vmatmul.bf16.gmra.mxu0 %v724_v28  ;;  %437 = vmatmul.bf16.gmra.mxu1 %v726_v29 }
  0x5d   : > { %447 = vmatmul.bf16.gmra.mxu2 %v728_v30  ;;  %457 = vmatmul.bf16.gmra.mxu3 %v730_v31 }
  0xc9   : > { %v423_v33 = vpop.f32.mrf.mxu0  ;;  %v433_v34 = vpop.f32.mrf.mxu1 }
  0xca   : > { %v424_v35 = vadd.f32 %v787_v32, %v423_v33  ;;  %v434_v36 = vadd.f32 %v787_v32, %v433_v34 }
  0xcc   : > { %463 = vst [vmem:[%s945_s9] sm:$0xff] %v424_v35 }
  0xcd   : > { %467 = vst [vmem:[%s945_s9 + $0x20] sm:$0xff] %v434_v36 }
  0xd0   : > { %v443_v37 = vpop.f32.mrf.mxu2  ;;  %v453_v38 = vpop.f32.mrf.mxu3 }
  0xd1   : > { %v444_v39 = vadd.f32 %v787_v32, %v443_v37  ;;  %v454_v40 = vadd.f32 %v787_v32, %v453_v38  ;;  %v425_v41 = vpop.f32.mrf.mxu0  ;;  %v435_v42 = vpop.f32.mrf.mxu1 }
  0xd2   : > { %v426_v43 = vadd.f32 %v787_v32, %v425_v41  ;;  %v436_v44 = vadd.f32 %v787_v32, %v435_v42 }
  0xd3   : > { %471 = vst [vmem:[%s945_s9 + $0x40] sm:$0xff] %v444_v39  ;;  %v546_v1 = vld [vmem:[%s945_s9] sm:$0xff] (%p863_p5) }
  0xd4   : > { %475 = vst [vmem:[%s945_s9 + $0x60] sm:$0xff] %v454_v40  ;;  %v554_v5 = vld [vmem:[%s945_s9 + $0x20] sm:$0xff] (%p863_p5) }
  0xd5   : > { %464 = vst [vmem:[%s945_s9 + $0x8] sm:$0xff] %v426_v43 }
  0xd6   : > { %468 = vst [vmem:[%s945_s9 + $0x28] sm:$0xff] %v436_v44 }
  0xd7   : > { %547 = vst [vmem:[%s487_s7] sm:$0xff] (%p863_p5), %v546_v1 }
  0xd8   : > { %v445_v45 = vpop.f32.mrf.mxu2  ;;  %v455_v46 = vpop.f32.mrf.mxu3  ;;  %555 = vst [vmem:[%s487_s7 + $0x60] sm:$0xff] (%p863_p5), %v554_v5 }
  0xd9   : > { %v446_v47 = vadd.f32 %v787_v32, %v445_v45  ;;  %v456_v48 = vadd.f32 %v787_v32, %v455_v46  ;;  %v428_v49 = vpop.f32.mrf.mxu0  ;;  %v438_v50 = vpop.f32.mrf.mxu1 }
  0xda   : > { %v429_v51 = vadd.f32 %v787_v32, %v428_v49  ;;  %v439_v52 = vadd.f32 %v787_v32, %v438_v50  ;;  %v562_v9 = vld [vmem:[%s945_s9 + $0x40] sm:$0xff] (%p863_p5) }
  0xdb   : > { %472 = vst [vmem:[%s945_s9 + $0x48] sm:$0xff] %v446_v47  ;;  %v570_v13 = vld [vmem:[%s945_s9 + $0x60] sm:$0xff] (%p863_p5) }
  0xdc   : > { %476 = vst [vmem:[%s945_s9 + $0x68] sm:$0xff] %v456_v48  ;;  %v548_v2 = vld [vmem:[%s945_s9 + $0x8] sm:$0xff] (%p863_p5) }
  0xdd   : > { %465 = vst [vmem:[%s945_s9 + $0x10] sm:$0xff] %v429_v51  ;;  %v556_v6 = vld [vmem:[%s945_s9 + $0x28] sm:$0xff] (%p863_p5) }
  0xde   : > { %469 = vst [vmem:[%s945_s9 + $0x30] sm:$0xff] %v439_v52 }
  0xdf   : > { %549 = vst [vmem:[%s487_s7 + $0x18] sm:$0xff] (%p863_p5), %v548_v2 }
  0xe0   : > { %v448_v53 = vpop.f32.mrf.mxu2  ;;  %v458_v54 = vpop.f32.mrf.mxu3  ;;  %557 = vst [vmem:[%s487_s7 + $0x78] sm:$0xff] (%p863_p5), %v556_v6 }
  0xe1   : > { %v449_v55 = vadd.f32 %v787_v32, %v448_v53  ;;  %v459_v56 = vadd.f32 %v787_v32, %v458_v54  ;;  %v430_v57 = vpop.f32.mrf.mxu0  ;;  %v440_v58 = vpop.f32.mrf.mxu1  ;;  %563 = vst [vmem:[%s487_s7 + $0xc0] sm:$0xff] (%p863_p5), %v562_v9 }
  0xe2   : > { %v431_v59 = vadd.f32 %v787_v32, %v430_v57  ;;  %v441_v60 = vadd.f32 %v787_v32, %v440_v58  ;;  %v564_v10 = vld [vmem:[%s945_s9 + $0x48] sm:$0xff] (%p863_p5)  ;;  %571 = vst [vmem:[%s487_s7 + $0x120] sm:$0xff] (%p863_p5), %v570_v13 }
  0xe3   : > { %473 = vst [vmem:[%s945_s9 + $0x50] sm:$0xff] %v449_v55  ;;  %v572_v14 = vld [vmem:[%s945_s9 + $0x68] sm:$0xff] (%p863_p5) }
  0xe4   : > { %477 = vst [vmem:[%s945_s9 + $0x70] sm:$0xff] %v459_v56  ;;  %v550_v3 = vld [vmem:[%s945_s9 + $0x10] sm:$0xff] (%p863_p5) }
  0xe5   : > { %466 = vst [vmem:[%s945_s9 + $0x18] sm:$0xff] %v431_v59  ;;  %v558_v7 = vld [vmem:[%s945_s9 + $0x30] sm:$0xff] (%p863_p5) }
  0xe6   : > { %470 = vst [vmem:[%s945_s9 + $0x38] sm:$0xff] %v441_v60 }
  0xe7   : > { %551 = vst [vmem:[%s487_s7 + $0x30] sm:$0xff] (%p863_p5), %v550_v3 }
  0xe8   : > { %v450_v61 = vpop.f32.mrf.mxu2  ;;  %v460_v62 = vpop.f32.mrf.mxu3  ;;  %485 = sbr.rel (!%p863_p5) target bundleno = 245 (0xf5), region = 77  ;;  %559 = vst [vmem:[%s487_s7 + $0x90] sm:$0xff] (%p863_p5), %v558_v7 }
  0xe9   : > { %v451_v63 = vadd.f32 %v787_v32, %v450_v61  ;;  %v461_v0 = vadd.f32 %v787_v32, %v460_v62  ;;  %565 = vst [vmem:[%s487_s7 + $0xd8] sm:$0xff] (%p863_p5), %v564_v10 }
  0xea   : > { %v566_v11 = vld [vmem:[%s945_s9 + $0x50] sm:$0xff] (%p863_p5)  ;;  %573 = vst [vmem:[%s487_s7 + $0x138] sm:$0xff] (%p863_p5), %v572_v14 }
  0xeb   : > { %474 = vst [vmem:[%s945_s9 + $0x58] sm:$0xff] %v451_v63  ;;  %v574_v15 = vld [vmem:[%s945_s9 + $0x70] sm:$0xff] (%p863_p5) }
  0xec   : > { %478 = vst [vmem:[%s945_s9 + $0x78] sm:$0xff] %v461_v0  ;;  %v552_v4 = vld [vmem:[%s945_s9 + $0x18] sm:$0xff] (%p863_p5) }
  0xed   : > { %553 = vst [vmem:[%s487_s7 + $0x48] sm:$0xff] %v552_v4  ;;  %v560_v8 = vld [vmem:[%s945_s9 + $0x38] sm:$0xff] }
  0xee   : > { %561 = vst [vmem:[%s487_s7 + $0xa8] sm:$0xff] %v560_v8 }
  0xef   : > { %567 = vst [vmem:[%s487_s7 + $0xf0] sm:$0xff] %v566_v11 }
  0xf0   : > { %575 = vst [vmem:[%s487_s7 + $0x150] sm:$0xff] %v574_v15 }
  0xf2   : > { %v568_v12 = vld [vmem:[%s945_s9 + $0x58] sm:$0xff] }
  0xf3   : > { %569 = vst [vmem:[%s487_s7 + $0x108] sm:$0xff] %v568_v12  ;;  %v576_v16 = vld [vmem:[%s945_s9 + $0x78] sm:$0xff] }
  0xf4   : > { %577 = vst [vmem:[%s487_s7 + $0x168] sm:$0xff] %v576_v16 }
  0xf5 PF: > { %p10_p11 = scmp.ge.s32.totalorder %s851_s16, 5   ;;  %s1000_s12 = smov %s806_s13 }
  0xf6   : > { %s1001_s13 = smov %s861_s19  ;;  %s1002_s14 = smov %s851_s16 }
  0xf7   :  { %12 = sbr.rel (!%p10_p11) target bundleno = 2 (0x2), region = 149 }

// kernel: ffn_forward.2
= control target key start
LH: loop header
LB: loop body
LE: loop exit
PB: predicated region body
PF: predicated region fallthrough
CT: control target
= control target key end

     0   :  { %vm205_vm0 = vcmask 261120   ;;  %vm1237_vm1 = vcmask 523264   ;;  %s6482_s2 = inlined_call_operand.vmem [shape: bf16[160,128], index: 2, kind: input, shape index: {}]   ;;  %s6483_s0 = inlined_call_operand.vmem [shape: bf16[128,160], index: 0, kind: input, shape index: {}]   ;;  %s6484_s4 = inlined_call_operand.vmem [shape: bf16[64,128], index: 4, kind: input, shape index: {}]   ;;  %s6485_s3 = inlined_call_operand.vmem [shape: f32[1,128], index: 3, kind: input, shape index: {}]   ;;  %s6486_s1 = inlined_call_operand.vmem [shape: bf16[128,64], index: 1, kind: input, shape index: {}]   ;;  %s6487_s5 = inlined_call_operand.vmem [shape: f32[1,128], index: 5, kind: input, shape index: {}]   ;;  %s6488_s7 = inlined_call_operand.vmem [shape: bf16[128,128], index: 7, kind: input, shape index: {}]   ;;  %s6489_s6 = inlined_call_operand.vmem [shape: bf16[128,128], index: 6, kind: input, shape index: {}]   ;;  %s6490_s8 = inlined_call_operand.vmem [shape: f32[1,128], index: 8, kind: input, shape index: {}]   ;;  %s6491_s9 = inlined_call_operand.vmem [shape: bf16[128,128], index: 9, kind: output, shape index: {}]  }
   0x1   :  { %v3532_v0 = vld [vmem:[%s6482_s2 + $0x38] sm:$0xff]  ;;  %v3534_v1 = vld [vmem:[%s6482_s2 + $0x48] sm:$0xff]  ;;  %v3531_v2 = vld [vmem:[%s6482_s2 + $0x30] sm:$0xff] }
   0x2   :  { %230 = vmatpush.bf16.msra.mxu0 %v3532_v0  ;;  %3611 = vmatpush.bf16.msra.mxu2 %v3534_v1  ;;  %v3533_v3 = vld [vmem:[%s6482_s2 + $0x40] sm:$0xff]  ;;  %v3515_v4 = vld [vmem:[%s6483_s0 + $0x34] sm:$0xf]  ;;  %v3257_v5 = vld [vmem:[%s6483_s0 + $0x38] sm:$0xf0] }
   0x3   :  { %v3546_v6 = vld [vmem:[%s6484_s4 + $0x18] sm:$0xff]  ;;  %3610 = vmatpush.bf16.msra.mxu1 %v3534_v1  ;;  %3612 = vmatpush.bf16.msra.mxu3 %v3534_v1  ;;  %v3260_v7 = vor.u32 %v3515_v4, %v3257_v5  ;;  %v3530_v8 = vld [vmem:[%s6482_s2 + $0x28] sm:$0xff]  ;;  %v3545_v9 = vld [vmem:[%s6484_s4 + $0x10] sm:$0xff] }
   0x4   :  { %v3529_v10 = vld [vmem:[%s6482_s2 + $0x20] sm:$0xff]  ;;  %v3544_v11 = vld [vmem:[%s6484_s4 + $0x8] sm:$0xff]  ;;  %v3528_v12 = vld [vmem:[%s6482_s2 + $0x18] sm:$0xff] }
   0x5   :  { %v3511_v13 = vld [vmem:[%s6483_s0 + $0x14] sm:$0xf]  ;;  %v3241_v14 = vld [vmem:[%s6483_s0 + $0x18] sm:$0xf0]  ;;  %v3543_v16 = vld [vmem:[%s6484_s4] sm:$0xff] }
   0x6   :  { %231 = vmatpush.bf16.msra.mxu0 %v3531_v2  ;;  %3614 = vmatpush.bf16.msra.mxu2 %v3533_v3  ;;  %v3244_v15 = vor.u32 %v3511_v13, %v3241_v14  ;;  %v3527_v17 = vld [vmem:[%s6482_s2 + $0x10] sm:$0xff]  ;;  %v3517_v18 = vld [vmem:[%s6483_s0 + $0x44] sm:$0xf]  ;;  %v3265_v19 = vld [vmem:[%s6483_s0 + $0x48] sm:$0xf0] }
   0x7   :  { %3613 = vmatpush.bf16.msra.mxu1 %v3533_v3  ;;  %3615 = vmatpush.bf16.msra.mxu3 %v3533_v3  ;;  %v3268_v20 = vor.u32 %v3517_v18, %v3265_v19  ;;  %v3526_v21 = vld [vmem:[%s6482_s2 + $0x8] sm:$0xff]  ;;  %v3525_v22 = vld [vmem:[%s6482_s2] sm:$0xff]  ;;  %v3519_v29 = vld [vmem:[%s6483_s0 + $0x54] sm:$0xf] }
   0x8   :  { %v3231_v23 = vld [vmem:[%s6483_s0] sm:$0xf]  ;;  %v3510_v24 = vld [vmem:[%s6483_s0 + $0x4] sm:$0xf0]  ;;  %v3513_v26 = vld [vmem:[%s6483_s0 + $0x24] sm:$0xf] }
   0x9   :  { %3336 = vmatmul.msk.bf16.vlgmr.msra.gmra.mxu2 %vm205_vm0, %v3260_v7  ;;  %v3232_v25 = vor.u32 %v3510_v24, %v3231_v23  ;;  %v3249_v27 = vld [vmem:[%s6483_s0 + $0x28] sm:$0xf0]  ;;  %v3273_v30 = vld [vmem:[%s6483_s0 + $0x58] sm:$0xf0]  ;;  %v3239_v32 = vld [vmem:[%s6483_s0 + $0x10] sm:$0xf] }
   0xa   :  { %1266 = vmatpush.bf16.msrb.mxu2 %v3546_v6  ;;  %232 = vmatpush.bf16.msra.mxu0 %v3530_v8  ;;  %v3252_v28 = vor.u32 %v3513_v26, %v3249_v27  ;;  %v3276_v31 = vor.u32 %v3519_v29, %v3273_v30  ;;  %v3512_v33 = vld [vmem:[%s6483_s0 + $0x14] sm:$0xf0]  ;;  %v3535_v35 = vld [vmem:[%s6486_s1] sm:$0xff]  ;;  %v3514_v37 = vld [vmem:[%s6483_s0 + $0x24] sm:$0xf0] }
   0xb   :  { %3334 = vmatmul.msk.bf16.vlgmr.msra.gmra.mxu1 %vm205_vm0, %v3244_v15  ;;  %v3240_v34 = vor.u32 %v3512_v33, %v3239_v32  ;;  %v3247_v36 = vld [vmem:[%s6483_s0 + $0x20] sm:$0xf]  ;;  %v3536_v39 = vld [vmem:[%s6486_s1 + $0x8] sm:$0xff]  ;;  %v3255_v40 = vld [vmem:[%s6483_s0 + $0x30] sm:$0xf] }
   0xc   :  { %v3248_v38 = vor.u32 %v3514_v37, %v3247_v36  ;;  %v3516_v41 = vld [vmem:[%s6483_s0 + $0x34] sm:$0xf0]  ;;  %v3537_v43 = vld [vmem:[%s6486_s1 + $0x10] sm:$0xff]  ;;  %v3521_v44 = vld [vmem:[%s6483_s0 + $0x64] sm:$0xf] }
   0xd   :  { %v3256_v42 = vor.u32 %v3516_v41, %v3255_v40  ;;  %v3281_v45 = vld [vmem:[%s6483_s0 + $0x68] sm:$0xf0]  ;;  %v3263_v46 = vld [vmem:[%s6483_s0 + $0x40] sm:$0xf]  ;;  %v3518_v47 = vld [vmem:[%s6483_s0 + $0x44] sm:$0xf0] }
   0xe   :  { %1267 = vmatpush.bf16.msrb.mxu2 %v3545_v9  ;;  %233 = vmatpush.bf16.msra.mxu0 %v3529_v10  ;;  %v3284_v48 = vor.u32 %v3521_v44, %v3281_v45  ;;  %v3264_v49 = vor.u32 %v3518_v47, %v3263_v46  ;;  %v3538_v50 = vld [vmem:[%s6486_s1 + $0x18] sm:$0xff]  ;;  %v3271_v51 = vld [vmem:[%s6483_s0 + $0x50] sm:$0xf]  ;;  %v3523_v53 = vld [vmem:[%s6483_s0 + $0x74] sm:$0xf] }
   0xf   :  { %v3520_v52 = vld [vmem:[%s6483_s0 + $0x54] sm:$0xf0]  ;;  %v3289_v54 = vld [vmem:[%s6483_s0 + $0x78] sm:$0xf0]  ;;  %v3539_v57 = vld [vmem:[%s6486_s1 + $0x20] sm:$0xff] }
  0x10   :  { %3339 = vmatmul.msk.bf16.vlgmr.msra.gmra.mxu3 %vm205_vm0, %v3284_v48  ;;  %v3292_v55 = vor.u32 %v3523_v53, %v3289_v54  ;;  %v3272_v56 = vor.u32 %v3520_v52, %v3271_v51  ;;  %v3279_v58 = vld [vmem:[%s6483_s0 + $0x60] sm:$0xf]  ;;  %v3522_v59 = vld [vmem:[%s6483_s0 + $0x64] sm:$0xf0]  ;;  %v3287_v62 = vld [vmem:[%s6483_s0 + $0x70] sm:$0xf] }
  0x11   :  { %v3280_v60 = vor.u32 %v3522_v59, %v3279_v58  ;;  %v3540_v61 = vld [vmem:[%s6486_s1 + $0x28] sm:$0xff]  ;;  %v3524_v63 = vld [vmem:[%s6483_s0 + $0x74] sm:$0xf0]  ;;  %v3509_v4 = vld [vmem:[%s6483_s0 + $0x4] sm:$0xf] }
  0x12   :  { %1268 = vmatpush.bf16.msrb.mxu2 %v3544_v11  ;;  %234 = vmatpush.bf16.msra.mxu0 %v3528_v12  ;;  %v3233_v5 = vld [vmem:[%s6483_s0 + $0x8] sm:$0xf0]  ;;  %v3542_v10 = vld [vmem:[%s6486_s1 + $0x38] sm:$0xff]  ;;  %v3997_v52 = vld [vmem:[%s6487_s5] ss:$0 sm:$0xff] }
  0x13   :  { %v3236_v7 = vor.u32 %v3509_v4, %v3233_v5 }
  0x16   :  { %1269 = vmatpush.bf16.msrb.mxu2 %v3543_v16  ;;  %235 = vmatpush.bf16.msra.mxu0 %v3527_v17 }
  0x19   :  { %3337 = vmatmul.msk.bf16.gmra.mxu2 %vm205_vm0, %v3268_v20 }
  0x1a   :  { %236 = vmatpush.bf16.msra.mxu0 %v3526_v21  ;;  %v3968_v21 = vld [vmem:[%s6485_s3] ss:$0 sm:$0xff] }
  0x1b   :  { %3335 = vmatmul.msk.bf16.gmra.mxu1 %vm205_vm0, %v3252_v28 }
  0x1e   :  { %237 = vmatpush.bf16.msra.mxu0 %v3525_v22 }
  0x20   :  { %3340 = vmatmul.msk.bf16.gmra.mxu3 %vm205_vm0, %v3292_v55 }
  0x21   :  { %238 = vmatmul.bf16.vlgmr.msra.gmra.mxu0 %v3232_v25 }
  0x22   :  { %285 = vmatpush.bf16.msrb.mxu0 %v3534_v1  ;;  %v3288_v1 = vor.u32 %v3524_v63, %v3287_v62 }
  0x26   :  { %286 = vmatpush.bf16.msrb.mxu0 %v3533_v3  ;;  %v3541_v3 = vld [vmem:[%s6486_s1 + $0x30] sm:$0xff] }
  0x29   :  { %3338 = vmatmul.msk.bf16.gmra.mxu2 %vm205_vm0, %v3276_v31 }
  0x31   :  { %243 = vmatmul.bf16.gmra.mxu0 %v3240_v34 }
  0x39   :  { %3405 = vmatmul.msk.bf16.vlgmr.msrb.gmra.mxu2 %vm1237_vm1, %v3535_v35 }
  0x41   :  { %248 = vmatmul.bf16.gmra.mxu0 %v3248_v38 }
  0x49   :  { %3406 = vmatmul.msk.bf16.gmra.mxu2 %vm1237_vm1, %v3536_v39 }
  0x51   :  { %253 = vmatmul.bf16.gmra.mxu0 %v3256_v42 }
  0x59   :  { %3407 = vmatmul.msk.bf16.gmra.mxu2 %vm1237_vm1, %v3537_v43 }
  0x61   :  { %258 = vmatmul.bf16.gmra.mxu0 %v3264_v49 }
  0x69   :  { %3408 = vmatmul.msk.bf16.gmra.mxu2 %vm1237_vm1, %v3538_v50 }
  0x71   :  { %263 = vmatmul.bf16.gmra.mxu0 %v3272_v56 }
  0x79   :  { %3409 = vmatmul.msk.bf16.gmra.mxu2 %vm1237_vm1, %v3539_v57 }
  0x81   :  { %268 = vmatmul.bf16.gmra.mxu0 %v3280_v60 }
  0x88   :  { %v293_v49 = vpop.f32.mrf.mxu1 }
  0x89   :  { %3410 = vmatmul.msk.bf16.gmra.mxu2 %vm1237_vm1, %v3540_v61 }
  0x8c   :  { %v303_v0 = vpop.f32.mrf.mxu2 }
  0x90   :  { %v295_v57 = vpop.f32.mrf.mxu1 }
  0x91   :  { %273 = vmatmul.bf16.gmra.mxu0 %v3288_v1 }
  0x94   :  { %v305_v2 = vpop.f32.mrf.mxu2 }
  0x99   :  { %3411 = vmatmul.msk.bf16.gmra.mxu2 %vm1237_vm1, %v3541_v3 }
  0x9c   :  { %v308_v6 = vpop.f32.mrf.mxu2 }
  0x9e   :  { %v3948_v8 = vpop.f32.mrf.mxu0 }
  0xa1   :  { %3333 = vmatmul.msk.bf16.vlgmr.msrb.gmra.mxu0 %vm205_vm0, %v3236_v7 }
  0xa4   :  { %v310_v9 = vpop.f32.mrf.mxu2 }
  0xa6   :  { %v3954_v11 = vpop.f32.mrf.mxu0 }
  0xa9   :  { %3412 = vmatmul.msk.bf16.gmra.mxu2 %vm1237_vm1, %v3542_v10 }
  0xac   :  { %v313_v12 = vpop.f32.mrf.mxu2 }
  0xae   :  { %v3957_v13 = vpop.f32.mrf.mxu0 }
  0xb4   :  { %v315_v14 = vpop.f32.mrf.mxu2 }
  0xb6   :  { %v3959_v15 = vpop.f32.mrf.mxu0 }
  0xbc   :  { %v1271_v16 = vpop.f32.mrf.mxu2 }
  0xbd   :  { %v4000_v53 = vadd.f32 %v3997_v52, %v1271_v16 }
  0xbe   :  { %v3961_v17 = vpop.f32.mrf.mxu0 }
  0xbf   :  { %v1333_v59 = vmul.f32 %v4000_v53, %v4000_v53 }
  0xc4   :  { %v1273_v18 = vpop.f32.mrf.mxu2 }
  0xc5   :  { %v4003_v54 = vadd.f32 %v3997_v52, %v1273_v18  ;;  %v4038_v18 = vpop.f32.mrf.mxu3 }
  0xc6   :  { %v3963_v19 = vpop.f32.mrf.mxu0 }
  0xc7   :  { %v1334_v60 = vmul.f32 %v4003_v54, %v4003_v54 }
  0xc9   :  { %v1349_v1 = vadd.f32 %v1334_v60, %v1333_v59  ;;  %v250_v60 = vadd.f32 %v3968_v21, %v3961_v17 }
  0xcc   :  { %v1276_v20 = vpop.f32.mrf.mxu2 }
  0xcd   :  { %v4006_v56 = vadd.f32 %v3997_v52, %v1276_v20  ;;  %v298_v20 = vpop.f32.mrf.mxu1 }
  0xce   :  { %v254_v22 = vpop.f32.mrf.mxu0 }
  0xcf   :  { %v255_v23 = vadd.f32 %v3968_v21, %v254_v22  ;;  %v1335_v62 = vmul.f32 %v4006_v56, %v4006_v56 }
  0xd1   :  { %v3971_v24 = vadd.f32 %v303_v0, %v255_v23  ;;  %v1311_v0 = vadd.f32 %v4003_v54, %v4000_v53 }
  0xd3   :  { %v1312_v4 = vadd.f32 %v1311_v0, %v4006_v56 }
  0xd4   :  { %v1278_v25 = vpop.f32.mrf.mxu2 }
  0xd5   :  { %v4015_v61 = vadd.f32 %v3997_v52, %v1278_v25  ;;  %v245_v25 = vadd.f32 %v3968_v21, %v3957_v13 }
  0xd6   :  { %v256_v26 = vpop.f32.mrf.mxu0 }
  0xd7   :  { %v257_v27 = vadd.f32 %v3968_v21, %v256_v26  ;;  %v1313_v10 = vadd.f32 %v1312_v4, %v4015_v61 }
  0xd9   :  { %v3974_v28 = vadd.f32 %v305_v2, %v257_v27  ;;  %v1336_v2 = vmul.f32 %v4015_v61, %v4015_v61 }
  0xdc   :  { %v1281_v29 = vpop.f32.mrf.mxu2 }
  0xdd   :  { %v4020_v63 = vadd.f32 %v3997_v52, %v1281_v29 }
  0xde   :  { %v259_v30 = vpop.f32.mrf.mxu0 }
  0xdf   :  { %v260_v31 = vadd.f32 %v3968_v21, %v259_v30  ;;  %v1337_v7 = vmul.f32 %v4020_v63, %v4020_v63  ;;  %v1314_v22 = vadd.f32 %v1313_v10, %v4020_v63 }
  0xe1   :  { %v3977_v32 = vadd.f32 %v308_v6, %v260_v31  ;;  %v1350_v6 = vadd.f32 %v1349_v1, %v1335_v62  ;;  %v240_v31 = vadd.f32 %v3968_v21, %v3948_v8 }
  0xe4   :  { %v1283_v33 = vpop.f32.mrf.mxu2 }
  0xe5   :  { %v4027_v3 = vadd.f32 %v3997_v52, %v1283_v33  ;;  %v247_v33 = vadd.f32 %v3968_v21, %v3959_v15 }
  0xe6   :  { %v261_v34 = vpop.f32.mrf.mxu0 }
  0xe7   :  { %v262_v35 = vadd.f32 %v3968_v21, %v261_v34  ;;  %v1338_v16 = vmul.f32 %v4027_v3, %v4027_v3  ;;  %v1315_v29 = vadd.f32 %v1314_v22, %v4027_v3 }
  0xe9   :  { %v3980_v36 = vadd.f32 %v310_v9, %v262_v35 }
  0xeb   :  { %6509 = vst [vmem:[#allocation2_spill] sm:$0xff] %v3980_v36 }
  0xec   :  { %v1286_v37 = vpop.f32.mrf.mxu2 }
  0xed   :  { %v4033_v9 = vadd.f32 %v3997_v52, %v1286_v37 }
  0xee   :  { %v264_v38 = vpop.f32.mrf.mxu0 }
  0xef   :  { %v265_v39 = vadd.f32 %v3968_v21, %v264_v38  ;;  %v1339_v27 = vmul.f32 %v4033_v9, %v4033_v9  ;;  %v1316_v35 = vadd.f32 %v1315_v29, %v4033_v9 }
  0xf1   :  { %v3983_v40 = vadd.f32 %v313_v12, %v265_v39  ;;  %v242_v39 = vadd.f32 %v3968_v21, %v3954_v11  ;;  %v252_v11 = vadd.f32 %v3968_v21, %v3963_v19  ;;  %v3724_v19 = vmov 128.0  }
  0xf2   :  { %3620 = vrcp.f32 %v3724_v19 }
  0xf3   :  { %6510 = vst [vmem:[#allocation3_spill] sm:$0xff] %v3983_v40 }
  0xf4   :  { %v1288_v41 = vpop.f32.mrf.mxu2 }
  0xf5   :  { %v4042_v23 = vadd.f32 %v3997_v52, %v1288_v41  ;;  %v4064_v41 = vadd.f32 %v293_v49, %v245_v25 }
  0xf6   :  { %v266_v42 = vpop.f32.mrf.mxu0 }
  0xf7   :  { %v267_v43 = vadd.f32 %v3968_v21, %v266_v42  ;;  %v1340_v13 = vmul.f32 %v4042_v23, %v4042_v23  ;;  %v1317_v15 = vadd.f32 %v1316_v35, %v4042_v23 }
  0xf9   :  { %v3986_v44 = vadd.f32 %v315_v14, %v267_v43  ;;  %v1351_v14 = vadd.f32 %v1350_v6, %v1336_v2  ;;  %v4088_v2 = vpop.f32.mrf.mxu3  ;;  %v359_v6 = vmul.f32 %v4064_v41, %v4064_v41 }
  0xfb   :  { %6511 = vst [vmem:[#allocation4_spill] sm:$0xff] %v3986_v44  ;;  %v1352_v26 = vadd.f32 %v1351_v14, %v1337_v7  ;;  %v300_v7 = vpop.f32.mrf.mxu1  ;;  %v4103_v14 = vadd.f32 %v298_v20, %v250_v60 }
  0xfc   :  { %v1291_v45 = vpop.f32.mrf.mxu2 }
  0xfd   :  { %v4050_v30 = vadd.f32 %v3997_v52, %v1291_v45  ;;  %v1353_v34 = vadd.f32 %v1352_v26, %v1338_v16 }
  0xfe   :  { %v3988_v46 = vpop.f32.mrf.mxu0 }
  0xff   :  { %v1354_v42 = vadd.f32 %v1353_v34, %v1339_v27  ;;  %v1341_v43 = vmul.f32 %v4050_v30, %v4050_v30  ;;  %v1318_v0 = vadd.f32 %v1317_v15, %v4050_v30  ;;  %v4123_v15 = vpop.eup %3620 }
 0x100   :  { %vm354_vm2 = vweird.f32 %v4123_v15 }
 0x101   :  { %v1355_v62 = vadd.f32 %v1354_v42, %v1340_v13 }
 0x103   :  { %v1356_v10 = vadd.f32 %v1355_v62, %v1341_v43 }
 0x104   :  { %v1293_v47 = vpop.f32.mrf.mxu2 }
 0x105   :  { %v4060_v37 = vadd.f32 %v3997_v52, %v1293_v47  ;;  %v4074_v47 = vadd.f32 %v295_v57, %v247_v33 }
 0x106   :  { %v3990_v48 = vpop.f32.mrf.mxu0 }
 0x107   :  { %v1342_v1 = vmul.f32 %v4060_v37, %v4060_v37  ;;  %v1319_v16 = vadd.f32 %v1318_v0, %v4060_v37  ;;  %v360_v26 = vmul.f32 %v4074_v47, %v4074_v47 }
 0x109   :  { %v1357_v27 = vadd.f32 %v1356_v10, %v1342_v1  ;;  %v323_v10 = vpop.f32.mrf.mxu3 }
 0x10c   :  { %v1296_v50 = vpop.f32.mrf.mxu2 }
 0x10d   :  { %v4072_v45 = vadd.f32 %v3997_v52, %v1296_v50 }
 0x10e   :  { %v3992_v51 = vpop.f32.mrf.mxu0 }
 0x10f   :  { %6512 = vst [vmem:[#allocation5_spill] sm:$0xff] %v4072_v45  ;;  %v1320_v20 = vadd.f32 %v1319_v16, %v4072_v45 }
 0x114   :  { %v1298_v55 = vpop.f32.mrf.mxu2 }
 0x115   :  { %v4086_v50 = vadd.f32 %v3997_v52, %v1298_v55  ;;  %v1343_v55 = vmul.f32 %v4072_v45, %v4072_v45 }
 0x116   :  { %v4008_v58 = vpop.f32.mrf.mxu0 }
 0x117   :  { %6513 = vst [vmem:[#allocation6_spill] sm:$0xff] %v4086_v50  ;;  %v1344_v29 = vmul.f32 %v4086_v50, %v4086_v50  ;;  %v1358_v13 = vadd.f32 %v1357_v27, %v1343_v55  ;;  %v1321_v43 = vadd.f32 %v1320_v20, %v4086_v50 }
 0x11c   :  { %v1301_v5 = vpop.f32.mrf.mxu2 }
 0x11e   :  { %v288_v12 = vpop.f32.mrf.mxu0 }
 0x11f   :  { %v4066_v8 = vadd.f32 %v288_v12, %v240_v31  ;;  %v4101_v12 = vadd.f32 %v3997_v52, %v1301_v5  ;;  %v4114_v5 = vadd.f32 %v300_v7, %v252_v11  ;;  %v1359_v11 = vadd.f32 %v1358_v13, %v1344_v29 }
 0x120   :  { %v363_v7 = vmul.f32 %v3971_v24, %v3971_v24  ;;  %v270_v13 = vadd.f32 %v3968_v21, %v3988_v46 }
 0x121   :  { %v357_v57 = vmul.f32 %v4066_v8, %v4066_v8  ;;  %6514 = vst [vmem:[#allocation7_spill] sm:$0xff] %v4101_v12  ;;  %v362_v0 = vmul.f32 %v4114_v5, %v4114_v5  ;;  %v1322_v1 = vadd.f32 %v1321_v43, %v4101_v12 }
 0x124   :  { %v1303_v38 = vpop.f32.mrf.mxu2 }
 0x125   :  { %v4112_v31 = vadd.f32 %v3997_v52, %v1303_v38  ;;  %v361_v38 = vmul.f32 %v4103_v14, %v4103_v14 }
 0x126   :  { %v290_v59 = vpop.f32.mrf.mxu0 }
 0x127   :  { %v4080_v49 = vadd.f32 %v290_v59, %v242_v39  ;;  %6515 = vst [vmem:[#allocation8_spill] sm:$0xff] %v4112_v31  ;;  %v1345_v39 = vmul.f32 %v4101_v12, %v4101_v12  ;;  %v1346_v62 = vmul.f32 %v4112_v31, %v4112_v31  ;;  %v1323_v55 = vadd.f32 %v1322_v1, %v4112_v31 }
 0x129   :  { %v328_v17 = vadd.f32 %v4080_v49, %v4066_v8  ;;  %v358_v4 = vmul.f32 %v4080_v49, %v4080_v49  ;;  %v1360_v19 = vadd.f32 %v1359_v11, %v1345_v39 }
 0x12b   :  { %v329_v22 = vadd.f32 %v328_v17, %v4064_v41  ;;  %v373_v25 = vadd.f32 %v358_v4, %v357_v57  ;;  %v350_v4 = vmul.f32 128.0, %v4123_v15 }
 0x12c   :  { %v1306_v33 = vpop.f32.mrf.mxu2 }
 0x12d   :  { %v330_v34 = vadd.f32 %v329_v22, %v4074_v47  ;;  %v374_v35 = vadd.f32 %v373_v25, %v359_v6  ;;  %v4121_v42 = vadd.f32 %v3997_v52, %v1306_v33  ;;  %v364_v25 = vmul.f32 %v3974_v28, %v3974_v28 }
 0x12e   :  { %v351_v39 = vsub.f32 1.0, %v350_v4  ;;  %v275_v4 = vadd.f32 %v3968_v21, %v3992_v51 }
 0x12f   :  { %6516 = vst [vmem:[#allocation9_spill] sm:$0xff] %v4121_v42  ;;  %v331_v59 = vadd.f32 %v330_v34, %v4103_v14  ;;  %v375_v60 = vadd.f32 %v374_v35, %v360_v26  ;;  %v1347_v6 = vmul.f32 %v4121_v42, %v4121_v42  ;;  %v1361_v26 = vadd.f32 %v1360_v19, %v1346_v62 }
 0x130   :  { %v1324_v20 = vadd.f32 %v1323_v55, %v4121_v42  ;;  %v365_v35 = vmul.f32 %v3977_v32, %v3977_v32  ;;  %v272_v62 = vadd.f32 %v3968_v21, %v3990_v48  ;;  %v4165_v19 = vadd.f32 %v4038_v18, %v270_v13 }
 0x131   :  { %v332_v57 = vadd.f32 %v331_v59, %v4114_v5  ;;  %v376_v17 = vadd.f32 %v375_v60, %v361_v38  ;;  %v1362_v38 = vadd.f32 %v1361_v26, %v1347_v6  ;;  %v352_v6 = vmul.f32 %v4123_v15, %v351_v39  ;;  %v325_v26 = vpop.f32.mrf.mxu3 }
 0x132   :  { %6518 = vst [vmem:[#allocation11_spill] sm:$0xff] %v4165_v19  ;;  %v277_v18 = vadd.f32 %v3968_v21, %v4008_v58 }
 0x133   :  { %v333_v16 = vadd.f32 %v332_v57, %v3971_v24  ;;  %v377_v22 = vadd.f32 %v376_v17, %v362_v0  ;;  %v367_v17 = vmul.f32 %v3983_v40, %v3983_v40  ;;  %v353_v13 = vadd.f32 %v4123_v15, %v352_v6 }
 0x134   :  { %v1308_v27 = vpop.f32.mrf.mxu2 }
 0x135   :  { %v334_v29 = vadd.f32 %v333_v16, %v3974_v28  ;;  %v378_v33 = vadd.f32 %v377_v22, %v363_v7  ;;  %v4147_v34 = vadd.f32 %v3997_v52, %v1308_v27  ;;  %v366_v52 = vmul.f32 %v3980_v36, %v3980_v36 }
 0x136   :  { %v368_v22 = vmul.f32 %v3986_v44, %v3986_v44 }
 0x137   :  { %6517 = vst [vmem:[#allocation10_spill] sm:$0xff] %v4147_v34  ;;  %v335_v43 = vadd.f32 %v334_v29, %v3977_v32  ;;  %v379_v59 = vadd.f32 %v378_v33, %v364_v25  ;;  %v1325_v60 = vadd.f32 %v1324_v20, %v4147_v34  ;;  %v1348_v11 = vmul.f32 %v4147_v34, %v4147_v34 }
 0x138   :  { %v4174_v25 = vadd.f32 %v4088_v2, %v272_v62  ;;  %v369_v20 = vmul.f32 %v4165_v19, %v4165_v19  ;;  %v4194_v62 = vsel %vm354_vm2, %v4123_v15, %v353_v13 }
 0x139   :  { %v336_v0 = vadd.f32 %v335_v43, %v3980_v36  ;;  %v380_v1 = vadd.f32 %v379_v59, %v365_v35  ;;  %v1326_v46 = vrot.slane %v1325_v60, 4  ;;  %v1363_v57 = vadd.f32 %v1362_v38, %v1348_v11  ;;  %6522 = vst [vmem:[#allocation15_spill] sm:$0xff] %v4194_v62 }
 0x13a   :  { %6519 = vst [vmem:[#allocation12_spill] sm:$0xff] %v4174_v25  ;;  %v4181_v35 = vadd.f32 %v323_v10, %v275_v4  ;;  %v370_v58 = vmul.f32 %v4174_v25, %v4174_v25  ;;  %v4188_v43 = vadd.f32 %v325_v26, %v277_v18 }
 0x13b   :  { %v337_v7 = vadd.f32 %v336_v0, %v3983_v40  ;;  %v381_v55 = vadd.f32 %v380_v1, %v366_v52  ;;  %v1327_v48 = vadd.f32 %v1326_v46, %v1325_v60  ;;  %v1364_v16 = vrot.slane %v1363_v57, 4 }
 0x13c   :  { %6520 = vst [vmem:[#allocation13_spill] sm:$0xff] %v4181_v35  ;;  %v371_v52 = vmul.f32 %v4181_v35, %v4181_v35 }
 0x13d   :  { %v338_v27 = vadd.f32 %v337_v7, %v3986_v44  ;;  %v382_v51 = vadd.f32 %v381_v55, %v367_v17  ;;  %v1328_v29 = vrot.slane %v1327_v48, 2  ;;  %v1365_v33 = vadd.f32 %v1364_v16, %v1363_v57  ;;  %6521 = vst [vmem:[#allocation14_spill] sm:$0xff] %v4188_v43 }
 0x13e   :  { %v372_v17 = vmul.f32 %v4188_v43, %v4188_v43 }
 0x13f   :  { %v339_v2 = vadd.f32 %v338_v27, %v4165_v19  ;;  %v383_v39 = vadd.f32 %v382_v51, %v368_v22  ;;  %v1329_v38 = vadd.f32 %v1328_v29, %v1327_v48  ;;  %v1366_v21 = vrot.slane %v1365_v33, 2 }
 0x141   :  { %v340_v59 = vadd.f32 %v339_v2, %v4174_v25  ;;  %v384_v60 = vadd.f32 %v383_v39, %v369_v20  ;;  %v1330_v11 = vrot.slane %v1329_v38, 1  ;;  %v1367_v10 = vadd.f32 %v1366_v21, %v1365_v33 }
 0x143   :  { %v341_v0 = vadd.f32 %v340_v59, %v4181_v35  ;;  %v385_v1 = vadd.f32 %v384_v60, %v370_v58  ;;  %v1331_v46 = vadd.f32 %v1330_v11, %v1329_v38  ;;  %v1368_v57 = vrot.slane %v1367_v10, 1 }
 0x145   :  { %v342_v4 = vadd.f32 %v341_v0, %v4188_v43  ;;  %v386_v6 = vadd.f32 %v385_v1, %v371_v52  ;;  %v4201_v7 = vmul.f32 %v1331_v46, %v4194_v62  ;;  %v1369_v55 = vadd.f32 %v1368_v57, %v1367_v10  ;;  %v3562_v0 = vld [vmem:[%s6488_s7 + $0x38] sm:$0xff] }
 0x146   :  { %v3554_v46 = vld [vmem:[%s6489_s6 + $0x38] sm:$0xff]  ;;  %2217 = vmatpush.bf16.msrb.mxu3 %v3562_v0 }
 0x147   :  { %v343_v48 = vrot.slane %v342_v4, 4  ;;  %v387_v16 = vadd.f32 %v386_v6, %v372_v17  ;;  %v1370_v15 = vmul.f32 %v1369_v55, %v4194_v62  ;;  %v1371_v22 = vmul.f32 %v4201_v7, %v4201_v7  ;;  %v3561_v17 = vld [vmem:[%s6488_s7 + $0x30] sm:$0xff]  ;;  %2314 = vmatpush.bf16.msrb.mxu1 %v3554_v46 }
 0x148   :  { %v3553_v6 = vld [vmem:[%s6489_s6 + $0x30] sm:$0xff] }
 0x149   :  { %v344_v18 = vadd.f32 %v343_v48, %v342_v4  ;;  %v388_v26 = vrot.slane %v387_v16, 4  ;;  %v1372_v27 = vsub.f32 %v1370_v15, %v1371_v22  ;;  %v3560_v15 = vld [vmem:[%s6488_s7 + $0x28] sm:$0xff] }
 0x14a   :  { %2218 = vmatpush.bf16.msrb.mxu3 %v3561_v17 }
 0x14b   :  { %v345_v51 = vrot.slane %v344_v18, 2  ;;  %v389_v29 = vadd.f32 %v388_v26, %v387_v16  ;;  %v1373_v33 = vmax.f32 %v1372_v27, 0.0  ;;  %2315 = vmatpush.bf16.msrb.mxu1 %v3553_v6  ;;  %v3559_v27 = vld [vmem:[%s6488_s7 + $0x20] sm:$0xff] }
 0x14d   :  { %v346_v20 = vadd.f32 %v345_v51, %v344_v18  ;;  %v390_v13 = vrot.slane %v389_v29, 2  ;;  %v1390_v2 = vadd.f32 1e-05, %v1373_v33  ;;  %v3552_v18 = vld [vmem:[%s6489_s6 + $0x28] sm:$0xff]  ;;  %v1374_v51 = vsub.f32 %v4000_v53, %v4201_v7 }
 0x14e   :  { %2219 = vmatpush.bf16.msrb.mxu3 %v3560_v15  ;;  %v1376_v33 = vsub.f32 %v4006_v56, %v4201_v7  ;;  %v3558_v56 = vld [vmem:[%s6488_s7 + $0x18] sm:$0xff] }
 0x14f   :  { %v347_v39 = vrot.slane %v346_v20, 1  ;;  %v391_v38 = vadd.f32 %v390_v13, %v389_v29  ;;  %3622 = vrsqrt.f32 %v1390_v2  ;;  %vm1397_vm4 = vweird.f32 %v1390_v2  ;;  %2316 = vmatpush.bf16.msrb.mxu1 %v3552_v18  ;;  %v3551_v13 = vld [vmem:[%s6489_s6 + $0x20] sm:$0xff] }
 0x150   :  { %v1375_v29 = vsub.f32 %v4003_v54, %v4201_v7 }
 0x151   :  { %v348_v21 = vadd.f32 %v347_v39, %v346_v20  ;;  %v392_v58 = vrot.slane %v391_v38, 1 }
 0x152   :  { %2220 = vmatpush.bf16.msrb.mxu3 %v3559_v27 }
 0x153   :  { %v4207_v59 = vmul.f32 %v4194_v62, %v348_v21  ;;  %v393_v60 = vadd.f32 %v392_v58, %v391_v38  ;;  %2317 = vmatpush.bf16.msrb.mxu1 %v3551_v13  ;;  %v3550_v58 = vld [vmem:[%s6489_s6 + $0x18] sm:$0xff] }
 0x155   :  { %v3623_v11 = vpop.eup %3622  ;;  %v394_v10 = vmul.f32 %v393_v60, %v4194_v62  ;;  %v395_v52 = vmul.f32 %v4207_v59, %v4207_v59  ;;  %v399_v27 = vsub.f32 %v4080_v49, %v4207_v59 }
 0x156   :  { %v1392_v1 = vmul.f32 %v3623_v11, %v1390_v2  ;;  %vm1398_vm3 = vweird.f32 %v3623_v11  ;;  %2221 = vmatpush.bf16.msrb.mxu3 %v3558_v56 }
 0x157   :  { %v396_v57 = vsub.f32 %v394_v10, %v395_v52  ;;  %vm1399_vm5 = vmor %vm1397_vm4, %vm1398_vm3  ;;  %2318 = vmatpush.bf16.msrb.mxu1 %v3550_v58 }
 0x158   :  { %v1393_v4 = vmul.f32 %v3623_v11, %v1392_v1  ;;  %v3557_v1 = vld [vmem:[%s6488_s7 + $0x10] sm:$0xff] }
 0x159   :  { %v397_v55 = vmax.f32 %v396_v57, 0.0 }
 0x15a   :  { %v1394_v48 = vmul.f32 0.5, %v1393_v4  ;;  %2222 = vmatpush.bf16.msrb.mxu3 %v3557_v1 }
 0x15b   :  { %v414_v16 = vadd.f32 1e-05, %v397_v55 }
 0x15c   :  { %v1395_v22 = vsub.f32 1.5, %v1394_v48  ;;  %v1377_v48 = vsub.f32 %v4015_v61, %v4201_v7  ;;  %v398_v61 = vsub.f32 %v4066_v8, %v4207_v59 }
 0x15d   :  { %3624 = vrsqrt.f32 %v414_v16  ;;  %vm421_vm7 = vweird.f32 %v414_v16 }
 0x15e   :  { %v1396_v26 = vmul.f32 %v3623_v11, %v1395_v22 }
 0x160   :  { %v4239_v20 = vsel %vm1399_vm5, %v3623_v11, %v1396_v26 }
 0x161   :  { %v4245_v2 = vmul.f32 %v4239_v20, %v1374_v51  ;;  %v4248_v39 = vmul.f32 %v4239_v20, %v1375_v29  ;;  %v4251_v53 = vmul.f32 %v4239_v20, %v1376_v33  ;;  %v3556_v51 = vld [vmem:[%s6488_s7 + $0x8] sm:$0xff]  ;;  %v4299_v49 = vmul.f32 %v4239_v20, %v1377_v48 }
 0x162   :  { %2223 = vmatpush.bf16.msrb.mxu3 %v3556_v51 }
 0x163   :  { %v3625_v54 = vpop.eup %3624  ;;  %v4257_v38 = vmul.f32 0.70710677, %v4245_v2  ;;  %v4263_v60 = vmul.f32 0.70710677, %v4248_v39  ;;  %v4268_v10 = vmul.f32 0.70710677, %v4251_v53 }
 0x164   :  { %v416_v21 = vmul.f32 %v3625_v54, %v414_v16  ;;  %vm422_vm6 = vweird.f32 %v3625_v54 }
 0x165   :  { %v1449_v11 = vmul.f32 %v4257_v38, %v4257_v38  ;;  %v1489_v0 = vmul.f32 %v4263_v60, %v4263_v60  ;;  %v1529_v57 = vmul.f32 %v4268_v10, %v4268_v10  ;;  %vm423_vm8 = vmor %vm421_vm7, %vm422_vm6 }
 0x166   :  { %v417_v52 = vmul.f32 %v3625_v54, %v416_v21 }
 0x167   :  { %v4275_v46 = vmin.f32 %v1449_v11, 16.0  ;;  %v4279_v4 = vmin.f32 %v1489_v0, 16.0  ;;  %v4285_v15 = vmin.f32 %v1529_v57, 16.0 }
 0x168   :  { %v418_v17 = vmul.f32 0.5, %v417_v52 }
 0x169   :  { %v1451_v6 = vmul.f32 2.1237322e-06, %v4275_v46  ;;  %v1462_v55 = vmul.f32 3.8918573e-05, %v4275_v46  ;;  %v1491_v18 = vmul.f32 2.1237322e-06, %v4279_v4 }
 0x16a   :  { %v419_v22 = vsub.f32 1.5, %v418_v17  ;;  %v1502_v26 = vmul.f32 3.8918573e-05, %v4279_v4  ;;  %v1531_v52 = vmul.f32 2.1237322e-06, %v4285_v15  ;;  %v3555_v17 = vld [vmem:[%s6488_s7] sm:$0xff] }
 0x16b   :  { %v1452_v29 = vadd.f32 0.00028619796, %v1451_v6  ;;  %v1463_v33 = vadd.f32 0.001143296, %v1462_v55  ;;  %v1492_v56 = vadd.f32 0.00028619796, %v1491_v18  ;;  %2224 = vmatpush.bf16.msrb.mxu3 %v3555_v17 }
 0x16c   :  { %v420_v13 = vmul.f32 %v3625_v54, %v419_v22  ;;  %v1503_v21 = vadd.f32 0.001143296, %v1502_v26  ;;  %v1542_v16 = vmul.f32 3.8918573e-05, %v4285_v15 }
 0x16d   :  { %v1453_v58 = vmul.f32 %v1452_v29, %v4275_v46  ;;  %v1464_v11 = vmul.f32 %v1463_v33, %v4275_v46  ;;  %v1493_v1 = vmul.f32 %v1492_v56, %v4279_v4  ;;  %v1532_v33 = vadd.f32 0.00028619796, %v1531_v52 }
 0x16e   :  { %v4302_v0 = vsel %vm423_vm8, %v3625_v54, %v420_v13  ;;  %v1504_v8 = vmul.f32 %v1503_v21, %v4279_v4  ;;  %v4331_v21 = vmul.f32 0.70710677, %v4299_v49 }
 0x16f   :  { %v4308_v57 = vmul.f32 %v4302_v0, %v399_v27  ;;  %v1454_v6 = vadd.f32 0.0036580483, %v1453_v58  ;;  %v1465_v55 = vadd.f32 0.014752088, %v1464_v11  ;;  %v4314_v48 = vmul.f32 %v4302_v0, %v398_v61 }
 0x170   :  { %v1494_v22 = vadd.f32 0.0036580483, %v1493_v1  ;;  %v1505_v18 = vadd.f32 0.014752088, %v1504_v8  ;;  %v1543_v8 = vadd.f32 0.001143296, %v1542_v16  ;;  %v1533_v62 = vmul.f32 %v1532_v33, %v4285_v15 }
 0x171   :  { %v4321_v27 = vmul.f32 0.70710677, %v4308_v57  ;;  %v1455_v51 = vmul.f32 %v1454_v6, %v4275_v46  ;;  %v1466_v29 = vmul.f32 %v1465_v55, %v4275_v46  ;;  %v4328_v56 = vmul.f32 0.70710677, %v4314_v48 }
 0x172   :  { %v1495_v13 = vmul.f32 %v1494_v22, %v4279_v4  ;;  %v1506_v61 = vmul.f32 %v1505_v18, %v4279_v4  ;;  %v1544_v22 = vmul.f32 %v1543_v8, %v4285_v15 }
 0x173   :  { %v513_v58 = vmul.f32 %v4321_v27, %v4321_v27  ;;  %v1456_v11 = vadd.f32 0.05243302, %v1455_v51  ;;  %v1467_v1 = vadd.f32 0.112945676, %v1466_v29  ;;  %v473_v52 = vmul.f32 %v4328_v56, %v4328_v56 }
 0x174   :  { %v1496_v6 = vadd.f32 0.05243302, %v1495_v13  ;;  %v1507_v55 = vadd.f32 0.112945676, %v1506_v61  ;;  %v1569_v29 = vmul.f32 %v4331_v21, %v4331_v21 }
 0x175   :  { %v4339_v18 = vmin.f32 %v513_v58, 16.0  ;;  %v1457_v54 = vmul.f32 %v1456_v11, %v4275_v46  ;;  %v1468_v26 = vmul.f32 %v1467_v1, %v4275_v46  ;;  %v4346_v51 = vmin.f32 %v473_v52, 16.0 }
 0x176   :  { %v1497_v17 = vmul.f32 %v1496_v6, %v4279_v4  ;;  %v1508_v16 = vmul.f32 %v1507_v55, %v4279_v4  ;;  %v1534_v52 = vadd.f32 0.0036580483, %v1533_v62 }
 0x177   :  { %v1458_v13 = vadd.f32 0.18741608, %v1457_v54  ;;  %v1469_v61 = vadd.f32 0.4994258, %v1468_v26  ;;  %v515_v58 = vmul.f32 2.1237322e-06, %v4339_v18 }
 0x178   :  { %v1498_v11 = vadd.f32 0.18741608, %v1497_v17  ;;  %v1509_v43 = vadd.f32 0.4994258, %v1508_v16  ;;  %v475_v1 = vmul.f32 2.1237322e-06, %v4346_v51 }
 0x179   :  { %v1459_v6 = vmul.f32 %v1458_v13, %v4275_v46  ;;  %v1470_v55 = vmul.f32 %v1469_v61, %v4275_v46  ;;  %v3549_v54 = vld [vmem:[%s6489_s6 + $0x10] sm:$0xff]  ;;  %v486_v26 = vmul.f32 3.8918573e-05, %v4346_v51  ;;  %v516_v35 = vadd.f32 0.00028619796, %v515_v58  ;;  %v3548_v46 = vld [vmem:[%s6489_s6 + $0x8] sm:$0xff] }
 0x17a   :  { %v1499_v8 = vmul.f32 %v1498_v11, %v4279_v4  ;;  %v1510_v17 = vmul.f32 %v1509_v43, %v4279_v4  ;;  %v476_v16 = vadd.f32 0.00028619796, %v475_v1  ;;  %2319 = vmatpush.bf16.msrb.mxu1 %v3549_v54  ;;  %v1545_v13 = vadd.f32 0.014752088, %v1544_v22 }
 0x17b   :  { %v4363_v42 = vadd.f32 1.0, %v1470_v55  ;;  %v4368_v61 = vmin.f32 %v1569_v29, 16.0  ;;  %v487_v43 = vadd.f32 0.001143296, %v486_v26  ;;  %v517_v4 = vmul.f32 %v516_v35, %v4339_v18  ;;  %v3547_v35 = vld [vmem:[%s6489_s6] sm:$0xff] }
 0x17c   :  { %v4372_v62 = vadd.f32 1.0, %v1510_v17  ;;  %v477_v11 = vmul.f32 %v476_v16, %v4346_v51  ;;  %v4377_v58 = vmul.f32 0.5, %v4245_v2  ;;  %v1460_v1 = vadd.f32 1.1283791, %v1459_v6 }
 0x17d   :  { %3626 = vrcp.f32 %v4363_v42  ;;  %v1535_v22 = vmul.f32 %v1534_v52, %v4285_v15  ;;  %v4382_v29 = vmul.f32 0.5, %v4248_v39  ;;  %v1500_v55 = vadd.f32 1.1283791, %v1499_v8 }
 0x17e   :  { %3628 = vrcp.f32 %v4372_v62  ;;  %v4386_v54 = vmul.f32 0.5, %v4251_v53  ;;  %2320 = vmatpush.bf16.msrb.mxu1 %v3548_v46  ;;  %v478_v2 = vadd.f32 0.0036580483, %v477_v11  ;;  %v1546_v6 = vmul.f32 %v1545_v13, %v4285_v15 }
 0x17f   :  { %v1571_v26 = vmul.f32 2.1237322e-06, %v4368_v61  ;;  %v6523_v39 = vsub.f32 %v4020_v63, %v4201_v7  ;;  %v1481_v8 = vand.u32 2147483647, %v4363_v42  ;;  %v488_v53 = vmul.f32 %v487_v43, %v4346_v51 }
 0x180   :  { %v518_v17 = vadd.f32 0.0036580483, %v517_v4  ;;  %v526_v16 = vmul.f32 3.8918573e-05, %v4339_v18  ;;  %v1461_v46 = vmul.f32 %v1460_v1, %v4257_v38  ;;  %v1483_v11 = vand.u32 2147483648, %v4363_v42 }
 0x181   :  { %v4397_v52 = vmul.f32 %v4239_v20, %v6523_v39  ;;  %v479_v13 = vmul.f32 %v478_v2, %v4346_v51  ;;  %v1536_v33 = vadd.f32 0.05243302, %v1535_v22  ;;  %vm1477_vm9 = vweird.f32 %v4363_v42 }
 0x182   :  { %v1501_v63 = vmul.f32 %v1500_v55, %v4263_v60  ;;  %v489_v39 = vadd.f32 0.014752088, %v488_v53  ;;  %v519_v25 = vmul.f32 %v518_v17, %v4339_v18  ;;  %v527_v19 = vadd.f32 0.001143296, %v526_v16  ;;  %2321 = vmatpush.bf16.msrb.mxu1 %v3547_v35 }
 0x183   :  { %v3627_v31 = vpop.eup %3626  ;;  %vm1517_vm10 = vweird.f32 %v4372_v62  ;;  %v1521_v43 = vand.u32 2147483647, %v4372_v62  ;;  %v480_v38 = vadd.f32 0.05243302, %v479_v13  ;;  %v1537_v4 = vmul.f32 %v1536_v33, %v4285_v15 }
 0x184   :  { %v1547_v1 = vadd.f32 0.112945676, %v1546_v6  ;;  %v3629_v2 = vpop.eup %3628  ;;  %v1473_v22 = vmul.f32 %v3627_v31, %v4363_v42  ;;  %vm4412_vm11 = vcmp.eq.f32.partialorder %v1481_v8, 8.507059e+37  ;;  %v1523_v60 = vand.u32 2147483648, %v4372_v62 }
 0x185   :  { %v490_v55 = vmul.f32 %v489_v39, %v4346_v51  ;;  %v520_v53 = vadd.f32 0.05243302, %v519_v25  ;;  %v1484_v17 = vor.u32 1.1754944e-38, %v1483_v11  ;;  %v1513_v16 = vmul.f32 %v3629_v2, %v4372_v62 }
 0x186   :  { %v481_v35 = vmul.f32 %v480_v38, %v4346_v51  ;;  %v528_v33 = vmul.f32 %v527_v19, %v4339_v18  ;;  %v1474_v6 = vsub.f32 1.0, %v1473_v22  ;;  %v1538_v8 = vadd.f32 0.18741608, %v1537_v4 }
 0x187   :  { %v491_v13 = vadd.f32 0.112945676, %v490_v55  ;;  %v521_v44 = vmul.f32 %v520_v53, %v4339_v18  ;;  %vm1478_vm12 = vweird.f32 %v3627_v31  ;;  %v1514_v40 = vsub.f32 1.0, %v1513_v16 }
 0x188   :  { %v529_v34 = vadd.f32 0.014752088, %v528_v33  ;;  %v1548_v50 = vmul.f32 %v1547_v1, %v4285_v15  ;;  %v1475_v45 = vmul.f32 %v3627_v31, %v1474_v6  ;;  %vm1518_vm13 = vweird.f32 %v3629_v2  ;;  %vm1479_vm15 = vmor %vm1477_vm9, %vm1478_vm12 }
 0x189   :  { %v482_v25 = vadd.f32 0.18741608, %v481_v35  ;;  %v492_v11 = vmul.f32 %v491_v13, %v4346_v51  ;;  %v1515_v39 = vmul.f32 %v3629_v2, %v1514_v40  ;;  %v522_v36 = vadd.f32 0.18741608, %v521_v44  ;;  %vm1519_vm0 = vmor %vm1517_vm10, %vm1518_vm13 }
 0x18a   :  { %v530_v38 = vmul.f32 %v529_v34, %v4339_v18  ;;  %v1549_v19 = vadd.f32 0.4994258, %v1548_v50  ;;  %v1476_v22 = vadd.f32 %v3627_v31, %v1475_v45  ;;  %vm4425_vm14 = vcmp.eq.f32.partialorder %v1521_v43, 8.507059e+37 }
 0x18b   :  { %v493_v4 = vadd.f32 0.4994258, %v492_v11  ;;  %v1539_v53 = vmul.f32 %v1538_v8, %v4285_v15  ;;  %v1516_v1 = vadd.f32 %v3629_v2, %v1515_v39  ;;  %v1524_v16 = vor.u32 1.1754944e-38, %v1523_v60 }
 0x18c   :  { %v531_v35 = vadd.f32 0.112945676, %v530_v38  ;;  %v1550_v40 = vmul.f32 %v1549_v19, %v4285_v15  ;;  %v1480_v44 = vsel %vm1479_vm15, %v3627_v31, %v1476_v22  ;;  %v483_v45 = vmul.f32 %v482_v25, %v4346_v51 }
 0x18d   :  { %v494_v50 = vmul.f32 %v493_v4, %v4346_v51  ;;  %v1572_v34 = vadd.f32 0.00028619796, %v1571_v26  ;;  %v1485_v43 = vsel %vm4412_vm11, %v1484_v17, %v1480_v44  ;;  %v1520_v42 = vsel %vm1519_vm0, %v3629_v2, %v1516_v1 }
 0x18e   :  { %v523_v33 = vmul.f32 %v522_v36, %v4339_v18  ;;  %v532_v60 = vmul.f32 %v531_v35, %v4339_v18  ;;  %v1486_v6 = vmul.f32 %v1485_v43, %v1461_v46  ;;  %v1525_v31 = vsel %vm4425_vm14, %v1524_v16, %v1520_v42 }
 0x18f   :  { %v4445_v15 = vadd.f32 1.0, %v494_v50  ;;  %v1540_v62 = vadd.f32 1.1283791, %v1539_v53  ;;  %v1526_v13 = vmul.f32 %v1525_v31, %v1501_v63  ;;  %v4447_v25 = vadd.f32 1.0, %v1550_v40 }
 0x190   :  { %v533_v8 = vadd.f32 0.4994258, %v532_v60  ;;  %v1582_v51 = vmul.f32 3.8918573e-05, %v4368_v61  ;;  %v3413_v12 = vclamps-f32 %v1486_v6, 1.0  ;;  %v1573_v36 = vmul.f32 %v1572_v34, %v4368_v61 }
 0x191   :  { %v484_v26 = vadd.f32 1.1283791, %v483_v45  ;;  %3630 = vrcp.f32 %v4445_v15  ;;  %v3414_v2 = vclamps-f32 %v1526_v13, 1.0  ;;  %v524_v46 = vadd.f32 1.1283791, %v523_v33 }
 0x192   :  { %v534_v17 = vmul.f32 %v533_v8, %v4339_v18  ;;  %3632 = vrcp.f32 %v4447_v25  ;;  %v2089_v11 = vadd.f32 1.0, %v3413_v12  ;;  %v4455_v63 = vmul.f32 %v1540_v62, %v4268_v10 }
 0x193   :  { %v6528_v39 = vsub.f32 %v4064_v41, %v4207_v59  ;;  %v6529_v19 = vsub.f32 %v4027_v3, %v4201_v7  ;;  %v2090_v55 = vadd.f32 1.0, %v3414_v2  ;;  %v505_v18 = vand.u32 2147483647, %v4445_v15 }
 0x194   :  { %v507_v4 = vand.u32 2147483648, %v4445_v15  ;;  %v4471_v53 = vadd.f32 1.0, %v534_v17  ;;  %v2105_v10 = vmul.f32 %v2089_v11, %v4377_v58  ;;  %v1561_v41 = vand.u32 2147483647, %v4447_v25 }
 0x195   :  { %v4461_v38 = vmul.f32 %v4302_v0, %v6528_v39  ;;  %v4467_v22 = vmul.f32 %v4239_v20, %v6529_v19  ;;  %v1574_v1 = vadd.f32 0.0036580483, %v1573_v36  ;;  %v1583_v16 = vadd.f32 0.001143296, %v1582_v51 }
 0x196   :  { %v2106_v35 = vmul.f32 %v2090_v55, %v4382_v29  ;;  %v485_v3 = vmul.f32 %v484_v26, %v4328_v56  ;;  %v4478_v40 = vmul.f32 %v524_v46, %v4321_v27  ;;  %3634 = vrcp.f32 %v4471_v53 }
 0x197   :  { %v3631_v44 = vpop.eup %3630  ;;  %vm501_vm1 = vweird.f32 %v4445_v15  ;;  %v1563_v45 = vand.u32 2147483648, %v4447_v25  ;;  %v1575_v58 = vmul.f32 %v1574_v1, %v4368_v61  ;;  %v1584_v50 = vmul.f32 %v1583_v16, %v4368_v61 }
 0x198   :  { %v3633_v34 = vpop.eup %3632  ;;  %v2145_v43 = vpack.c.bf16 %v2106_v35, %v2105_v10  ;;  %v497_v29 = vmul.f32 %v3631_v44, %v4445_v15  ;;  %vm4486_vm2 = vcmp.eq.f32.partialorder %v505_v18, 8.507059e+37  ;;  %v508_v27 = vor.u32 1.1754944e-38, %v507_v4 }
 0x199   :  { %vm1557_vm3 = vweird.f32 %v4447_v25  ;;  %v545_v42 = vand.u32 2147483647, %v4471_v53  ;;  %v1553_v33 = vmul.f32 %v3633_v34, %v4447_v25  ;;  %vm4493_vm4 = vcmp.eq.f32.partialorder %v1561_v41, 8.507059e+37 }
 0x19a   :  { %v1576_v6 = vadd.f32 0.05243302, %v1575_v58  ;;  %2225 = vmatmul.bf16.vlgmr.msrb.gmra.mxu3 %v2145_v43  ;;  %v498_v31 = vsub.f32 1.0, %v497_v29  ;;  %v547_v62 = vand.u32 2147483648, %v4471_v53  ;;  %v1585_v13 = vadd.f32 0.014752088, %v1584_v50 }
 0x19b   :  { %v6534_v8 = vsub.f32 %v4074_v47, %v4207_v59  ;;  %vm541_vm5 = vweird.f32 %v4471_v53  ;;  %v1554_v12 = vsub.f32 1.0, %v1553_v33  ;;  %v1564_v26 = vor.u32 1.1754944e-38, %v1563_v45 }
 0x19c   :  { %v1577_v36 = vmul.f32 %v1576_v6, %v4368_v61  ;;  %v4507_v2 = vmul.f32 0.70710677, %v4461_v38  ;;  %v3635_v46 = vpop.eup %3634  ;;  %v499_v17 = vmul.f32 %v3631_v44, %v498_v31  ;;  %vm502_vm6 = vweird.f32 %v3631_v44 }
 0x19d   :  { %v4502_v51 = vmul.f32 %v4302_v0, %v6534_v8  ;;  %v1586_v11 = vmul.f32 %v1585_v13, %v4368_v61  ;;  %v537_v47 = vmul.f32 %v3635_v46, %v4471_v53  ;;  %v1555_v19 = vmul.f32 %v3633_v34, %v1554_v12  ;;  %vm503_vm8 = vmor %vm501_vm1, %vm502_vm6 }
 0x19e   :  { %vm1558_vm7 = vweird.f32 %v3633_v34  ;;  %v1578_v55 = vadd.f32 0.18741608, %v1577_v36  ;;  %v500_v18 = vadd.f32 %v3631_v44, %v499_v17  ;;  %v553_v10 = vmul.f32 %v4507_v2, %v4507_v2 }
 0x19f   :  { %v4511_v39 = vmul.f32 0.70710677, %v4502_v51  ;;  %v1587_v4 = vadd.f32 0.112945676, %v1586_v11  ;;  %v538_v1 = vsub.f32 1.0, %v537_v47  ;;  %vm542_vm9 = vweird.f32 %v3635_v46  ;;  %vm1559_vm11 = vmor %vm1557_vm3, %vm1558_vm7 }
 0x1a0   :  { %vm4520_vm10 = vcmp.eq.f32.partialorder %v545_v42, 8.507059e+37  ;;  %v1556_v35 = vadd.f32 %v3633_v34, %v1555_v19  ;;  %v504_v45 = vsel %vm503_vm8, %v3631_v44, %v500_v18  ;;  %v4527_v50 = vmin.f32 %v553_v10, 16.0  ;;  %vm543_vm12 = vmor %vm541_vm5, %vm542_vm9 }
 0x1a1   :  { %v593_v41 = vmul.f32 %v4511_v39, %v4511_v39  ;;  %v1588_v58 = vmul.f32 %v1587_v4, %v4368_v61  ;;  %v509_v15 = vsel %vm4486_vm2, %v508_v27, %v504_v45  ;;  %v539_v29 = vmul.f32 %v3635_v46, %v538_v1 }
 0x1a2   :  { %v1560_v33 = vsel %vm1559_vm11, %v3633_v34, %v1556_v35  ;;  %v1579_v42 = vmul.f32 %v1578_v55, %v4368_v61  ;;  %v510_v6 = vmul.f32 %v509_v15, %v485_v3  ;;  %v555_v25 = vmul.f32 2.1237322e-06, %v4527_v50 }
 0x1a3   :  { %v4529_v43 = vmin.f32 %v593_v41, 16.0  ;;  %v1565_v44 = vsel %vm4493_vm4, %v1564_v26, %v1560_v33  ;;  %v1589_v31 = vadd.f32 0.4994258, %v1588_v58  ;;  %v540_v13 = vadd.f32 %v3635_v46, %v539_v29 }
 0x1a4   :  { %v548_v8 = vor.u32 1.1754944e-38, %v547_v62  ;;  %v1566_v12 = vmul.f32 %v1565_v44, %v4455_v63  ;;  %v566_v36 = vmul.f32 3.8918573e-05, %v4527_v50  ;;  %v3341_v17 = vclamps-f32 %v510_v6, 1.0 }
 0x1a5   :  { %v1590_v34 = vmul.f32 %v1589_v31, %v4368_v61  ;;  %v556_v3 = vadd.f32 0.00028619796, %v555_v25  ;;  %v595_v56 = vmul.f32 2.1237322e-06, %v4529_v43  ;;  %v544_v27 = vsel %vm543_vm12, %v3635_v46, %v540_v13 }
 0x1a6   :  { %v3415_v60 = vclamps-f32 %v1566_v12, 1.0  ;;  %v1580_v26 = vadd.f32 1.1283791, %v1579_v42  ;;  %v567_v11 = vadd.f32 0.001143296, %v566_v36  ;;  %v549_v62 = vsel %vm4520_vm10, %v548_v8, %v544_v27 }
 0x1a7   :  { %v4546_v63 = vadd.f32 1.0, %v1590_v34  ;;  %v557_v47 = vmul.f32 %v556_v3, %v4527_v50  ;;  %v606_v19 = vmul.f32 3.8918573e-05, %v4529_v43  ;;  %v550_v53 = vmul.f32 %v549_v62, %v4478_v40 }
 0x1a8   :  { %v1113_v55 = vadd.f32 1.0, %v3341_v17  ;;  %v568_v61 = vmul.f32 %v567_v11, %v4527_v50  ;;  %v596_v18 = vadd.f32 0.00028619796, %v595_v56  ;;  %v441_v46 = vmul.f32 0.5, %v4314_v48 }
 0x1a9   :  { %v4554_v4 = vmul.f32 0.5, %v4299_v49  ;;  %3636 = vrcp.f32 %v4546_v63  ;;  %v4558_v10 = vmul.f32 0.70710677, %v4397_v52  ;;  %v442_v41 = vmul.f32 0.5, %v4308_v57 }
 0x1aa   :  { %v3342_v1 = vclamps-f32 %v550_v53, 1.0  ;;  %v4562_v16 = vmul.f32 %v1580_v26, %v4331_v21  ;;  %v558_v40 = vadd.f32 0.0036580483, %v557_v47  ;;  %v4564_v35 = vadd.f32 1.0, %v3415_v60 }
 0x1ab   :  { %v569_v45 = vadd.f32 0.014752088, %v568_v61  ;;  %v597_v48 = vmul.f32 %v596_v18, %v4529_v43  ;;  %v607_v58 = vadd.f32 0.001143296, %v606_v19  ;;  %v1129_v15 = vmul.f32 %v1113_v55, %v441_v46 }
 0x1ac   :  { %v1114_v49 = vadd.f32 1.0, %v3342_v1  ;;  %v559_v29 = vmul.f32 %v558_v40, %v4527_v50  ;;  %v4569_v33 = vmul.f32 0.70710677, %v4467_v22  ;;  %v1609_v6 = vmul.f32 %v4558_v10, %v4558_v10 }
 0x1ad   :  { %v570_v57 = vmul.f32 %v569_v45, %v4527_v50  ;;  %v598_v42 = vadd.f32 0.0036580483, %v597_v48  ;;  %v608_v21 = vmul.f32 %v607_v58, %v4529_v43  ;;  %vm1597_vm13 = vweird.f32 %v4546_v63 }
 0x1ae   :  { %v1130_v44 = vmul.f32 %v1114_v49, %v442_v41  ;;  %v1601_v31 = vand.u32 2147483647, %v4546_v63  ;;  %v560_v25 = vadd.f32 0.05243302, %v559_v29  ;;  %v1649_v13 = vmul.f32 %v4569_v33, %v4569_v33 }
 0x1af   :  { %v3637_v8 = vpop.eup %3636  ;;  %v571_v12 = vadd.f32 0.112945676, %v570_v57  ;;  %v599_v36 = vmul.f32 %v598_v42, %v4529_v43  ;;  %v609_v17 = vadd.f32 0.014752088, %v608_v21  ;;  %v4580_v34 = vmin.f32 %v1609_v6, 16.0 }
 0x1b0   :  { %v2121_v3 = vpack.c.bf16 %v1130_v44, %v1129_v15  ;;  %v1593_v56 = vmul.f32 %v3637_v8, %v4546_v63  ;;  %v1603_v27 = vand.u32 2147483648, %v4546_v63  ;;  %v561_v60 = vmul.f32 %v560_v25, %v4527_v50 }
 0x1b1   :  { %v572_v26 = vmul.f32 %v571_v12, %v4527_v50  ;;  %v600_v11 = vadd.f32 0.05243302, %v599_v36  ;;  %v610_v62 = vmul.f32 %v609_v17, %v4529_v43  ;;  %v1611_v47 = vmul.f32 2.1237322e-06, %v4580_v34 }
 0x1b2   :  { %2322 = vmatmul.bf16.vlgmr.msrb.gmra.mxu1 %v2121_v3  ;;  %v1594_v19 = vsub.f32 1.0, %v1593_v56  ;;  %v562_v53 = vadd.f32 0.18741608, %v561_v60  ;;  %v1622_v55 = vmul.f32 3.8918573e-05, %v4580_v34  ;;  %v4589_v61 = vmin.f32 %v1649_v13, 16.0 }
 0x1b3   :  { %vm1598_vm14 = vweird.f32 %v3637_v8  ;;  %v573_v18 = vadd.f32 0.4994258, %v572_v26  ;;  %v611_v46 = vadd.f32 0.112945676, %v610_v62  ;;  %v1612_v41 = vadd.f32 0.00028619796, %v1611_v47 }
 0x1b4   :  { %v1595_v1 = vmul.f32 %v3637_v8, %v1594_v19  ;;  %v601_v40 = vmul.f32 %v600_v11, %v4529_v43  ;;  %v1623_v45 = vadd.f32 0.001143296, %v1622_v55  ;;  %v1651_v48 = vmul.f32 2.1237322e-06, %v4589_v61  ;;  %vm1599_vm0 = vmor %vm1597_vm13, %vm1598_vm14 }
 0x1b5   :  { %vm4593_vm15 = vcmp.eq.f32.partialorder %v1601_v31, 8.507059e+37  ;;  %v574_v49 = vmul.f32 %v573_v18, %v4527_v50  ;;  %v612_v15 = vmul.f32 %v611_v46, %v4529_v43  ;;  %v1613_v29 = vmul.f32 %v1612_v41, %v4580_v34 }
 0x1b6   :  { %v1596_v57 = vadd.f32 %v3637_v8, %v1595_v1  ;;  %v1604_v42 = vor.u32 1.1754944e-38, %v1603_v27  ;;  %v1624_v21 = vmul.f32 %v1623_v45, %v4580_v34  ;;  %v1652_v6 = vadd.f32 0.00028619796, %v1651_v48 }
 0x1b7   :  { %v563_v44 = vmul.f32 %v562_v53, %v4527_v50  ;;  %v4605_v31 = vadd.f32 1.0, %v574_v49  ;;  %v613_v25 = vadd.f32 0.4994258, %v612_v15  ;;  %v1614_v13 = vadd.f32 0.0036580483, %v1613_v29 }
 0x1b8   :  { %v1600_v12 = vsel %vm1599_vm0, %v3637_v8, %v1596_v57  ;;  %v602_v36 = vadd.f32 0.18741608, %v601_v40  ;;  %v1625_v17 = vadd.f32 0.014752088, %v1624_v21  ;;  %v1653_v3 = vmul.f32 %v1652_v6, %v4589_v61 }
 0x1b9   :  { %v1605_v56 = vsel %vm4593_vm15, %v1604_v42, %v1600_v12  ;;  %v4611_v27 = vmul.f32 0.5, %v4461_v38  ;;  %3638 = vrcp.f32 %v4605_v31  ;;  %v4615_v63 = vmul.f32 0.5, %v4397_v52 }
 0x1ba   :  { %v1606_v50 = vmul.f32 %v1605_v56, %v4562_v16  ;;  %v4619_v60 = vmul.f32 0.5, %v4502_v51  ;;  %v614_v8 = vmul.f32 %v613_v25, %v4529_v43  ;;  %v4623_v26 = vmul.f32 0.5, %v4467_v22 }
 0x1bb   :  { %v2107_v11 = vmul.f32 %v4564_v35, %v4386_v54  ;;  %v1615_v38 = vmul.f32 %v1614_v13, %v4580_v34  ;;  %v1626_v62 = vmul.f32 %v1625_v17, %v4580_v34  ;;  %v1654_v47 = vadd.f32 0.0036580483, %v1653_v3 }
 0x1bc   :  { %v3416_v52 = vclamps-f32 %v1606_v50, 1.0  ;;  %v564_v19 = vadd.f32 1.1283791, %v563_v44  ;;  %v603_v16 = vmul.f32 %v602_v36, %v4529_v43  ;;  %v4630_v53 = vadd.f32 1.0, %v614_v8 }
 0x1bd   :  { %v585_v51 = vand.u32 2147483647, %v4605_v31  ;;  %v1616_v55 = vadd.f32 0.05243302, %v1615_v38  ;;  %v1627_v18 = vadd.f32 0.112945676, %v1626_v62  ;;  %v1655_v22 = vmul.f32 %v1654_v47, %v4589_v61 }
 0x1be   :  { %v2092_v46 = vadd.f32 1.0, %v3416_v52  ;;  %3640 = vrcp.f32 %v4630_v53  ;;  %v1662_v54 = vmul.f32 3.8918573e-05, %v4589_v61  ;;  %v402_v35 = vsub.f32 %v4103_v14, %v4207_v59 }
 0x1bf   :  { %v3639_v41 = vpop.eup %3638  ;;  %v587_v1 = vand.u32 2147483648, %v4605_v31  ;;  %v1617_v43 = vmul.f32 %v1616_v55, %v4580_v34  ;;  %v1628_v40 = vmul.f32 %v1627_v18, %v4580_v34  ;;  %v1656_v45 = vadd.f32 0.05243302, %v1655_v22 }
 0x1c0   :  { %v2108_v48 = vmul.f32 %v2092_v46, %v4554_v4  ;;  %v565_v58 = vmul.f32 %v564_v19, %v4507_v2  ;;  %v577_v49 = vmul.f32 %v3639_v41, %v4605_v31  ;;  %v604_v15 = vadd.f32 1.1283791, %v603_v16 }
 0x1c1   :  { %vm581_vm1 = vweird.f32 %v4605_v31  ;;  %vm4645_vm2 = vcmp.eq.f32.partialorder %v585_v51, 8.507059e+37  ;;  %v1618_v14 = vadd.f32 0.18741608, %v1617_v43  ;;  %v1629_v57 = vadd.f32 0.4994258, %v1628_v40 }
 0x1c2   :  { %v2146_v42 = vpack.c.bf16 %v2108_v48, %v2107_v11  ;;  %v578_v21 = vsub.f32 1.0, %v577_v49  ;;  %v1657_v6 = vmul.f32 %v1656_v45, %v4589_v61  ;;  %v1663_v44 = vadd.f32 0.001143296, %v1662_v54 }
 0x1c3   :  { %v588_v25 = vor.u32 1.1754944e-38, %v587_v1  ;;  %v625_v4 = vand.u32 2147483647, %v4630_v53  ;;  %v1619_v2 = vmul.f32 %v1618_v14, %v4580_v34  ;;  %v1630_v13 = vmul.f32 %v1629_v57, %v4580_v34 }
 0x1c4   :  { %v3641_v12 = vpop.eup %3640  ;;  %2230 = vmatmul.bf16.gmra.mxu3 %v2146_v42  ;;  %v579_v36 = vmul.f32 %v3639_v41, %v578_v21  ;;  %vm582_vm3 = vweird.f32 %v3639_v41  ;;  %v627_v17 = vand.u32 2147483648, %v4630_v53  ;;  %v1664_v3 = vmul.f32 %v1663_v44, %v4589_v61 }
 0x1c5   :  { %v605_v56 = vmul.f32 %v604_v15, %v4511_v39  ;;  %v617_v50 = vmul.f32 %v3641_v12, %v4630_v53  ;;  %v4657_v8 = vadd.f32 1.0, %v1630_v13  ;;  %v403_v11 = vsub.f32 %v4114_v5, %v4207_v59  ;;  %vm583_vm4 = vmor %vm581_vm1, %vm582_vm3 }
 0x1c6   :  { %v580_v38 = vadd.f32 %v3639_v41, %v579_v36  ;;  %v1620_v62 = vadd.f32 1.1283791, %v1619_v2  ;;  %v1658_v34 = vadd.f32 0.18741608, %v1657_v6  ;;  %v1665_v47 = vadd.f32 0.014752088, %v1664_v3 }
 0x1c7   :  { %v618_v52 = vsub.f32 1.0, %v617_v50  ;;  %3642 = vrcp.f32 %v4657_v8  ;;  %v4665_v19 = vmul.f32 %v4302_v0, %v402_v35  ;;  %v4668_v39 = vmul.f32 %v4302_v0, %v403_v11 }
 0x1c8   :  { %v584_v16 = vsel %vm583_vm4, %v3639_v41, %v580_v38  ;;  %vm621_vm5 = vweird.f32 %v4630_v53  ;;  %vm4671_vm6 = vcmp.eq.f32.partialorder %v625_v4, 8.507059e+37  ;;  %v628_v51 = vor.u32 1.1754944e-38, %v627_v17 }
 0x1c9   :  { %v589_v31 = vsel %vm4645_vm2, %v588_v25, %v584_v16  ;;  %v619_v55 = vmul.f32 %v3641_v12, %v618_v52  ;;  %vm622_vm7 = vweird.f32 %v3641_v12  ;;  %v1666_v18 = vmul.f32 %v1665_v47, %v4589_v61 }
 0x1ca   :  { %v590_v22 = vmul.f32 %v589_v31, %v565_v58  ;;  %v1621_v46 = vmul.f32 %v1620_v62, %v4558_v10  ;;  %v1659_v54 = vmul.f32 %v1658_v34, %v4589_v61  ;;  %v1380_v35 = vsub.f32 %v4033_v9, %v4201_v7  ;;  %vm623_vm8 = vmor %vm621_vm5, %vm622_vm7 }
 0x1cb   :  { %v620_v41 = vadd.f32 %v3641_v12, %v619_v55  ;;  %v1667_v1 = vadd.f32 0.112945676, %v1666_v18  ;;  %v4683_v43 = vmul.f32 0.70710677, %v4665_v19  ;;  %v4686_v40 = vmul.f32 0.70710677, %v4668_v39 }
 0x1cc   :  { %v3343_v45 = vclamps-f32 %v590_v22, 1.0  ;;  %vm1637_vm9 = vweird.f32 %v4657_v8  ;;  %v1641_v10 = vand.u32 2147483647, %v4657_v8  ;;  %v1643_v48 = vand.u32 2147483648, %v4657_v8 }
 0x1cd   :  { %v3643_v58 = vpop.eup %3642  ;;  %v624_v9 = vsel %vm623_vm8, %v3641_v12, %v620_v41  ;;  %v1668_v49 = vmul.f32 %v1667_v1, %v4589_v61  ;;  %v633_v15 = vmul.f32 %v4683_v43, %v4683_v43  ;;  %v673_v29 = vmul.f32 %v4686_v40, %v4686_v40 }
 0x1ce   :  { %v629_v53 = vsel %vm4671_vm6, %v628_v51, %v624_v9  ;;  %v1115_v14 = vadd.f32 1.0, %v3343_v45  ;;  %v1633_v57 = vmul.f32 %v3643_v58, %v4657_v8  ;;  %v1660_v42 = vadd.f32 1.1283791, %v1659_v54 }
 0x1cf   :  { %v630_v21 = vmul.f32 %v629_v53, %v605_v56  ;;  %v1669_v6 = vadd.f32 0.4994258, %v1668_v49  ;;  %v4701_v44 = vmin.f32 %v633_v15, 16.0  ;;  %v4703_v25 = vmin.f32 %v673_v29, 16.0 }
 0x1d0   :  { %v1634_v4 = vsub.f32 1.0, %v1633_v57  ;;  %vm1638_vm10 = vweird.f32 %v3643_v58  ;;  %v1381_v2 = vsub.f32 %v4042_v23, %v4201_v7  ;;  %v4708_v13 = vmul.f32 %v4239_v20, %v1380_v35 }
 0x1d1   :  { %v3344_v12 = vclamps-f32 %v630_v21, 1.0  ;;  %v1670_v36 = vmul.f32 %v1669_v6, %v4589_v61  ;;  %v635_v17 = vmul.f32 2.1237322e-06, %v4701_v44  ;;  %v646_v3 = vmul.f32 3.8918573e-05, %v4701_v44  ;;  %vm1639_vm11 = vmor %vm1637_vm9, %vm1638_vm10 }
 0x1d2   :  { %v1131_v56 = vmul.f32 %v1115_v14, %v4611_v27  ;;  %v1635_v50 = vmul.f32 %v3643_v58, %v1634_v4  ;;  %v675_v11 = vmul.f32 2.1237322e-06, %v4703_v25  ;;  %v686_v38 = vmul.f32 3.8918573e-05, %v4703_v25 }
 0x1d3   :  { %v1116_v62 = vadd.f32 1.0, %v3344_v12  ;;  %v4716_v34 = vadd.f32 1.0, %v1670_v36  ;;  %v636_v23 = vadd.f32 0.00028619796, %v635_v17  ;;  %v647_v47 = vadd.f32 0.001143296, %v646_v3 }
 0x1d4   :  { %v1636_v52 = vadd.f32 %v3643_v58, %v1635_v50  ;;  %v1644_v16 = vor.u32 1.1754944e-38, %v1643_v48  ;;  %v676_v5 = vadd.f32 0.00028619796, %v675_v11  ;;  %v4719_v61 = vmul.f32 %v4239_v20, %v1381_v2 }
 0x1d5   :  { %v1132_v51 = vmul.f32 %v1116_v62, %v4619_v60  ;;  %3644 = vrcp.f32 %v4716_v34  ;;  %v687_v27 = vadd.f32 0.001143296, %v686_v38  ;;  %v4727_v31 = vmul.f32 0.70710677, %v4708_v13 }
 0x1d6   :  { %v1640_v55 = vsel %vm1639_vm11, %v3643_v58, %v1636_v52  ;;  %vm1642_vm12 = vcmp.eq.f32.partialorder %v1641_v10, 8.507059e+37  ;;  %v637_v18 = vmul.f32 %v636_v23, %v4701_v44  ;;  %v648_v22 = vmul.f32 %v647_v47, %v4701_v44 }
 0x1d7   :  { %v2122_v54 = vpack.c.bf16 %v1132_v51, %v1131_v56  ;;  %v1645_v35 = vsel %vm1642_vm12, %v1644_v16, %v1640_v55  ;;  %v4732_v60 = vmul.f32 0.5, %v4665_v19  ;;  %v677_v8 = vmul.f32 %v676_v5, %v4703_v25 }
 0x1d8   :  { %v1646_v41 = vmul.f32 %v1645_v35, %v1621_v46  ;;  %v1661_v1 = vmul.f32 %v1660_v42, %v4569_v33  ;;  %v638_v45 = vadd.f32 0.0036580483, %v637_v18  ;;  %v649_v48 = vadd.f32 0.014752088, %v648_v22 }
 0x1d9   :  { %2327 = vmatmul.bf16.gmra.mxu1 %v2122_v54  ;;  %v678_v9 = vadd.f32 0.0036580483, %v677_v8  ;;  %v688_v10 = vmul.f32 %v687_v27, %v4703_v25  ;;  %v4738_v58 = vmul.f32 0.70710677, %v4719_v61  ;;  %v1689_v49 = vmul.f32 %v4727_v31, %v4727_v31 }
 0x1da   :  { %vm1677_vm13 = vweird.f32 %v4716_v34  ;;  %v1681_v19 = vand.u32 2147483647, %v4716_v34  ;;  %v639_v46 = vmul.f32 %v638_v45, %v4701_v44  ;;  %v650_v33 = vmul.f32 %v649_v48, %v4701_v44 }
 0x1db   :  { %v3645_v15 = vpop.eup %3644  ;;  %v1683_v29 = vand.u32 2147483648, %v4716_v34  ;;  %v679_v53 = vmul.f32 %v678_v9, %v4703_v25  ;;  %v689_v14 = vadd.f32 0.014752088, %v688_v10  ;;  %v4748_v57 = vmin.f32 %v1689_v49, 16.0 }
 0x1dc   :  { %v3417_v42 = vclamps-f32 %v1646_v41, 1.0  ;;  %v1673_v21 = vmul.f32 %v3645_v15, %v4716_v34  ;;  %v640_v6 = vadd.f32 0.05243302, %v639_v46  ;;  %v1729_v4 = vmul.f32 %v4738_v58, %v4738_v58 }
 0x1dd   :  { %v651_v2 = vadd.f32 0.112945676, %v650_v33  ;;  %v680_v12 = vadd.f32 0.05243302, %v679_v53  ;;  %v690_v36 = vmul.f32 %v689_v14, %v4703_v25  ;;  %v1691_v17 = vmul.f32 2.1237322e-06, %v4748_v57 }
 0x1de   :  { %v1674_v3 = vsub.f32 1.0, %v1673_v21  ;;  %vm1678_vm14 = vweird.f32 %v3645_v15  ;;  %v641_v56 = vmul.f32 %v640_v6, %v4701_v44  ;;  %v1702_v50 = vmul.f32 3.8918573e-05, %v4748_v57 }
 0x1df   :  { %v652_v11 = vmul.f32 %v651_v2, %v4701_v44  ;;  %v681_v38 = vmul.f32 %v680_v12, %v4703_v25  ;;  %v691_v62 = vadd.f32 0.112945676, %v690_v36  ;;  %v1692_v23 = vadd.f32 0.00028619796, %v1691_v17  ;;  %vm1679_vm15 = vmor %vm1677_vm13, %vm1678_vm14 }
 0x1e0   :  { %v1675_v47 = vmul.f32 %v3645_v15, %v1674_v3  ;;  %v642_v52 = vadd.f32 0.18741608, %v641_v56  ;;  %v1703_v16 = vadd.f32 0.001143296, %v1702_v50  ;;  %v4759_v5 = vmin.f32 %v1729_v4, 16.0 }
 0x1e1   :  { %v1684_v51 = vor.u32 1.1754944e-38, %v1683_v29  ;;  %v653_v27 = vadd.f32 0.4994258, %v652_v11  ;;  %v692_v55 = vmul.f32 %v691_v62, %v4703_v25  ;;  %v1693_v18 = vmul.f32 %v1692_v23, %v4748_v57 }
 0x1e2   :  { %v1676_v22 = vadd.f32 %v3645_v15, %v1675_v47  ;;  %v682_v54 = vadd.f32 0.18741608, %v681_v38  ;;  %v1704_v35 = vmul.f32 %v1703_v16, %v4748_v57  ;;  %v1731_v8 = vmul.f32 2.1237322e-06, %v4759_v5 }
 0x1e3   :  { %v643_v41 = vmul.f32 %v642_v52, %v4701_v44  ;;  %v654_v45 = vmul.f32 %v653_v27, %v4701_v44  ;;  %v693_v48 = vadd.f32 0.4994258, %v692_v55  ;;  %v1694_v9 = vadd.f32 0.0036580483, %v1693_v18 }
 0x1e4   :  { %v1680_v10 = vsel %vm1679_vm15, %v3645_v15, %v1676_v22  ;;  %vm1682_vm0 = vcmp.eq.f32.partialorder %v1681_v19, 8.507059e+37  ;;  %v2093_v49 = vadd.f32 1.0, %v3417_v42  ;;  %v1705_v46 = vadd.f32 0.014752088, %v1704_v35 }
 0x1e5   :  { %v1685_v33 = vsel %vm1682_vm0, %v1684_v51, %v1680_v10  ;;  %v4770_v29 = vadd.f32 1.0, %v654_v45  ;;  %v694_v53 = vmul.f32 %v693_v48, %v4703_v25  ;;  %v1732_v14 = vadd.f32 0.00028619796, %v1731_v8 }
 0x1e6   :  { %v1686_v21 = vmul.f32 %v1685_v33, %v1661_v1  ;;  %v683_v34 = vmul.f32 %v682_v54, %v4703_v25  ;;  %v1695_v6 = vmul.f32 %v1694_v9, %v4748_v57  ;;  %v1706_v4 = vmul.f32 %v1705_v46, %v4748_v57 }
 0x1e7   :  { %v4777_v44 = vmul.f32 0.5, %v4668_v39  ;;  %v644_v15 = vadd.f32 1.1283791, %v643_v41  ;;  %3646 = vrcp.f32 %v4770_v29  ;;  %v404_v19 = vsub.f32 %v3971_v24, %v4207_v59 }
 0x1e8   :  { %v3418_v42 = vclamps-f32 %v1686_v21, 1.0  ;;  %v4782_v2 = vadd.f32 1.0, %v694_v53  ;;  %v4785_v1 = vmul.f32 0.5, %v4708_v13  ;;  %v1696_v25 = vadd.f32 0.05243302, %v1695_v6 }
 0x1e9   :  { %v4788_v12 = vmul.f32 0.5, %v4719_v61  ;;  %v1707_v36 = vadd.f32 0.112945676, %v1706_v4  ;;  %v1733_v39 = vmul.f32 %v1732_v14, %v4759_v5  ;;  %v405_v17 = vsub.f32 %v3974_v28, %v4207_v59 }
 0x1ea   :  { %v2094_v3 = vadd.f32 1.0, %v3418_v42  ;;  %v2109_v56 = vmul.f32 %v2093_v49, %v4615_v63  ;;  %v684_v24 = vadd.f32 1.1283791, %v683_v34  ;;  %3648 = vrcp.f32 %v4782_v2 }
 0x1eb   :  { %v645_v50 = vmul.f32 %v644_v15, %v4683_v43  ;;  %v1697_v13 = vmul.f32 %v1696_v25, %v4748_v57  ;;  %v1708_v11 = vmul.f32 %v1707_v36, %v4748_v57  ;;  %v1734_v61 = vadd.f32 0.0036580483, %v1733_v39 }
 0x1ec   :  { %v2110_v38 = vmul.f32 %v2094_v3, %v4623_v26  ;;  %vm661_vm1 = vweird.f32 %v4770_v29  ;;  %v665_v62 = vand.u32 2147483647, %v4770_v29  ;;  %v1742_v28 = vmul.f32 3.8918573e-05, %v4759_v5 }
 0x1ed   :  { %v3647_v23 = vpop.eup %3646  ;;  %v667_v63 = vand.u32 2147483648, %v4770_v29  ;;  %v1698_v47 = vadd.f32 0.18741608, %v1697_v13  ;;  %v1709_v52 = vadd.f32 0.4994258, %v1708_v11  ;;  %v4804_v43 = vmul.f32 %v4302_v0, %v404_v19 }
 0x1ee   :  { %v2147_v16 = vpack.c.bf16 %v2110_v38, %v2109_v56  ;;  %v657_v51 = vmul.f32 %v3647_v23, %v4770_v29  ;;  %v1735_v27 = vmul.f32 %v1734_v61, %v4759_v5  ;;  %v1743_v26 = vadd.f32 0.001143296, %v1742_v28 }
 0x1ef   :  { %v685_v55 = vmul.f32 %v684_v24, %v4686_v40  ;;  %v705_v18 = vand.u32 2147483647, %v4782_v2  ;;  %v1699_v22 = vmul.f32 %v1698_v47, %v4748_v57  ;;  %v1710_v54 = vmul.f32 %v1709_v52, %v4748_v57 }
 0x1f0   :  { %v3649_v35 = vpop.eup %3648  ;;  %2235 = vmatmul.bf16.gmra.mxu3 %v2147_v16  ;;  %v658_v8 = vsub.f32 1.0, %v657_v51  ;;  %vm662_vm2 = vweird.f32 %v3647_v23  ;;  %v707_v41 = vand.u32 2147483648, %v4782_v2  ;;  %v1744_v45 = vmul.f32 %v1743_v26, %v4759_v5 }
 0x1f1   :  { %v697_v48 = vmul.f32 %v3649_v35, %v4782_v2  ;;  %v4815_v9 = vadd.f32 1.0, %v1710_v54  ;;  %v4818_v40 = vmul.f32 %v4302_v0, %v405_v17  ;;  %v4821_v10 = vmul.f32 0.70710677, %v4804_v43  ;;  %vm663_vm7 = vmor %vm661_vm1, %vm662_vm2 }
 0x1f2   :  { %v659_v49 = vmul.f32 %v3647_v23, %v658_v8  ;;  %v1700_v57 = vadd.f32 1.1283791, %v1699_v22  ;;  %v1736_v46 = vadd.f32 0.05243302, %v1735_v27  ;;  %v1745_v33 = vadd.f32 0.014752088, %v1744_v45 }
 0x1f3   :  { %vm4823_vm3 = vcmp.eq.f32.partialorder %v665_v62, 8.507059e+37  ;;  %v668_v14 = vor.u32 1.1754944e-38, %v667_v63  ;;  %v698_v21 = vsub.f32 1.0, %v697_v48  ;;  %3650 = vrcp.f32 %v4815_v9 }
 0x1f4   :  { %v660_v34 = vadd.f32 %v3647_v23, %v659_v49  ;;  %vm701_vm4 = vweird.f32 %v4782_v2  ;;  %vm702_vm5 = vweird.f32 %v3649_v35  ;;  %vm4829_vm6 = vcmp.eq.f32.partialorder %v705_v18, 8.507059e+37 }
 0x1f5   :  { %v699_v4 = vmul.f32 %v3649_v35, %v698_v21  ;;  %v1746_v15 = vmul.f32 %v1745_v33, %v4759_v5  ;;  %v4838_v19 = vmul.f32 0.70710677, %v4818_v40  ;;  %v713_v42 = vmul.f32 %v4821_v10, %v4821_v10  ;;  %vm703_vm8 = vmor %vm701_vm4, %vm702_vm5 }
 0x1f6   :  { %v664_v25 = vsel %vm663_vm7, %v3647_v23, %v660_v34  ;;  %v708_v36 = vor.u32 1.1754944e-38, %v707_v41  ;;  %v1701_v39 = vmul.f32 %v1700_v57, %v4727_v31  ;;  %v1737_v17 = vmul.f32 %v1736_v46, %v4759_v5 }
 0x1f7   :  { %v669_v3 = vsel %vm4823_vm3, %v668_v14, %v664_v25  ;;  %v700_v29 = vadd.f32 %v3649_v35, %v699_v4  ;;  %v1747_v56 = vadd.f32 0.112945676, %v1746_v15  ;;  %v4846_v24 = vmin.f32 %v713_v42, 16.0 }
 0x1f8   :  { %v670_v13 = vmul.f32 %v669_v3, %v645_v50  ;;  %vm1717_vm9 = vweird.f32 %v4815_v9  ;;  %v1721_v11 = vand.u32 2147483647, %v4815_v9  ;;  %v753_v31 = vmul.f32 %v4838_v19, %v4838_v19 }
 0x1f9   :  { %v3651_v61 = vpop.eup %3650  ;;  %v704_v38 = vsel %vm703_vm8, %v3649_v35, %v700_v29  ;;  %v1748_v62 = vmul.f32 %v1747_v56, %v4759_v5  ;;  %v715_v28 = vmul.f32 2.1237322e-06, %v4846_v24  ;;  %v726_v23 = vmul.f32 3.8918573e-05, %v4846_v24 }
 0x1fa   :  { %v3345_v50 = vclamps-f32 %v670_v13, 1.0  ;;  %v709_v2 = vsel %vm4829_vm6, %v708_v36, %v704_v38  ;;  %v1713_v63 = vmul.f32 %v3651_v61, %v4815_v9  ;;  %v1723_v47 = vand.u32 2147483648, %v4815_v9 }
 0x1fb   :  { %v710_v52 = vmul.f32 %v709_v2, %v685_v55  ;;  %v1738_v16 = vadd.f32 0.18741608, %v1737_v17  ;;  %v1749_v51 = vadd.f32 0.4994258, %v1748_v62  ;;  %v716_v27 = vadd.f32 0.00028619796, %v715_v28 }
 0x1fc   :  { %v1117_v26 = vadd.f32 1.0, %v3345_v50  ;;  %v1714_v18 = vsub.f32 1.0, %v1713_v63  ;;  %v727_v22 = vadd.f32 0.001143296, %v726_v23  ;;  %v4862_v54 = vmin.f32 %v753_v31, 16.0 }
 0x1fd   :  { %v3346_v35 = vclamps-f32 %v710_v52, 1.0  ;;  %vm4864_vm10 = vcmp.eq.f32.partialorder %v1721_v11, 8.507059e+37  ;;  %v1750_v41 = vmul.f32 %v1749_v51, %v4759_v5  ;;  %v717_v45 = vmul.f32 %v716_v27, %v4846_v24 }
 0x1fe   :  { %v1715_v48 = vmul.f32 %v3651_v61, %v1714_v18  ;;  %vm1718_vm11 = vweird.f32 %v3651_v61  ;;  %v728_v55 = vmul.f32 %v727_v22, %v4846_v24  ;;  %v755_v49 = vmul.f32 2.1237322e-06, %v4862_v54 }
 0x1ff   :  { %v1118_v57 = vadd.f32 1.0, %v3346_v35  ;;  %v1133_v46 = vmul.f32 %v1117_v26, %v4732_v60  ;;  %v4873_v33 = vadd.f32 1.0, %v1750_v41  ;;  %v718_v53 = vadd.f32 0.0036580483, %v717_v45  ;;  %vm1719_vm12 = vmor %vm1717_vm9, %vm1718_vm11 }
 0x200   :  { %v1716_v14 = vadd.f32 %v3651_v61, %v1715_v48  ;;  %v729_v21 = vadd.f32 0.014752088, %v728_v55  ;;  %v756_v34 = vadd.f32 0.00028619796, %v755_v49  ;;  %v1382_v6 = vsub.f32 %v4050_v30, %v4201_v7 }
 0x201   :  { %v1134_v4 = vmul.f32 %v1118_v57, %v4777_v44  ;;  %v1724_v15 = vor.u32 1.1754944e-38, %v1723_v47  ;;  %3652 = vrcp.f32 %v4873_v33  ;;  %v766_v42 = vmul.f32 3.8918573e-05, %v4862_v54 }
 0x202   :  { %v1720_v60 = vsel %vm1719_vm12, %v3651_v61, %v1716_v14  ;;  %v719_v25 = vmul.f32 %v718_v53, %v4846_v24  ;;  %v730_v36 = vmul.f32 %v729_v21, %v4846_v24  ;;  %v4885_v17 = vmul.f32 %v4239_v20, %v1382_v6 }
 0x203   :  { %v2123_v3 = vpack.c.bf16 %v1134_v4, %v1133_v46  ;;  %v1725_v30 = vsel %vm4864_vm10, %v1724_v15, %v1720_v60  ;;  %v757_v44 = vmul.f32 %v756_v34, %v4862_v54  ;;  %v1383_v9 = vsub.f32 %v4060_v37, %v4201_v7 }
 0x204   :  { %v1726_v29 = vmul.f32 %v1725_v30, %v1701_v39  ;;  %v1739_v56 = vmul.f32 %v1738_v16, %v4759_v5  ;;  %v720_v13 = vadd.f32 0.05243302, %v719_v25  ;;  %v731_v11 = vadd.f32 0.112945676, %v730_v36 }
 0x205   :  { %2332 = vmatmul.bf16.gmra.mxu1 %v2123_v3  ;;  %v4894_v31 = vmul.f32 0.5, %v4804_v43  ;;  %v758_v61 = vadd.f32 0.0036580483, %v757_v44  ;;  %v767_v38 = vadd.f32 0.001143296, %v766_v42  ;;  %v4897_v62 = vmul.f32 %v4239_v20, %v1383_v9 }
 0x206   :  { %v3419_v28 = vclamps-f32 %v1726_v29, 1.0  ;;  %v721_v23 = vmul.f32 %v720_v13, %v4846_v24  ;;  %v732_v50 = vmul.f32 %v731_v11, %v4846_v24  ;;  %v4902_v37 = vmul.f32 0.70710677, %v4885_v17  ;;  %v6551_v29 = vld [vmem:[#allocation2_spill] sm:$0xff] }
 0x207   :  { %v3653_v5 = vpop.eup %3652  ;;  %v4905_v39 = vmul.f32 0.5, %v4818_v40  ;;  %v759_v43 = vmul.f32 %v758_v61, %v4862_v54  ;;  %v768_v2 = vmul.f32 %v767_v38, %v4862_v54  ;;  %v4910_v63 = vmul.f32 0.70710677, %v4897_v62 }
 0x208   :  { %v1740_v47 = vadd.f32 1.1283791, %v1739_v56  ;;  %v1753_v52 = vmul.f32 %v3653_v5, %v4873_v33  ;;  %v1761_v16 = vand.u32 2147483647, %v4873_v33  ;;  %v722_v51 = vadd.f32 0.18741608, %v721_v23 }
 0x209   :  { %v733_v27 = vadd.f32 0.4994258, %v732_v50  ;;  %v760_v26 = vadd.f32 0.05243302, %v759_v43  ;;  %v769_v18 = vadd.f32 0.014752088, %v768_v2  ;;  %v1769_v40 = vmul.f32 %v4902_v37, %v4902_v37 }
 0x20a   :  { %v1754_v22 = vsub.f32 1.0, %v1753_v52  ;;  %v1763_v35 = vand.u32 2147483648, %v4873_v33  ;;  %v2095_v8 = vadd.f32 1.0, %v3419_v28  ;;  %v723_v41 = vmul.f32 %v722_v51, %v4846_v24 }
 0x20b   :  { %v734_v45 = vmul.f32 %v733_v27, %v4846_v24  ;;  %v770_v48 = vmul.f32 %v769_v18, %v4862_v54  ;;  %v4920_v55 = vmin.f32 %v1769_v40, 16.0  ;;  %v1809_v49 = vmul.f32 %v4910_v63, %v4910_v63 }
 0x20c   :  { %v1741_v57 = vmul.f32 %v1740_v47, %v4738_v58  ;;  %v1755_v46 = vmul.f32 %v3653_v5, %v1754_v22  ;;  %vm1758_vm13 = vweird.f32 %v3653_v5  ;;  %v761_v53 = vmul.f32 %v760_v26, %v4862_v54 }
 0x20d   :  { %vm1757_vm14 = vweird.f32 %v4873_v33  ;;  %vm4927_vm15 = vcmp.eq.f32.partialorder %v1761_v16, 8.507059e+37  ;;  %v4931_v24 = vadd.f32 1.0, %v734_v45  ;;  %v771_v21 = vadd.f32 0.112945676, %v770_v48 }
 0x20e   :  { %v1756_v34 = vadd.f32 %v3653_v5, %v1755_v46  ;;  %v724_v6 = vadd.f32 1.1283791, %v723_v41  ;;  %v1771_v4 = vmul.f32 2.1237322e-06, %v4920_v55  ;;  %v1782_v15 = vmul.f32 3.8918573e-05, %v4920_v55  ;;  %vm1759_vm0 = vmor %vm1757_vm14, %vm1758_vm13 }
 0x20f   :  { %v1764_v58 = vor.u32 1.1754944e-38, %v1763_v35  ;;  %v2111_v42 = vmul.f32 %v2095_v8, %v4785_v1  ;;  %3654 = vrcp.f32 %v4931_v24  ;;  %v4937_v33 = vmin.f32 %v1809_v49, 16.0 }
 0x210   :  { %v1760_v60 = vsel %vm1759_vm0, %v3653_v5, %v1756_v34  ;;  %v762_v25 = vadd.f32 0.18741608, %v761_v53  ;;  %v772_v36 = vmul.f32 %v771_v21, %v4862_v54  ;;  %v1772_v3 = vadd.f32 0.00028619796, %v1771_v4 }
 0x211   :  { %v1765_v30 = vsel %vm4927_vm15, %v1764_v58, %v1760_v60  ;;  %v1783_v44 = vadd.f32 0.001143296, %v1782_v15  ;;  %v406_v9 = vsub.f32 %v3977_v32, %v4207_v59  ;;  %v407_v56 = vsub.f32 %v6551_v29, %v4207_v59 }
 0x212   :  { %v1766_v1 = vmul.f32 %v1765_v30, %v1741_v57  ;;  %v725_v13 = vmul.f32 %v724_v6, %v4821_v10  ;;  %v773_v11 = vadd.f32 0.4994258, %v772_v36  ;;  %v1773_v61 = vmul.f32 %v1772_v3, %v4920_v55 }
 0x213   :  { %v745_v38 = vand.u32 2147483647, %v4931_v24  ;;  %v1784_v28 = vmul.f32 %v1783_v44, %v4920_v55  ;;  %v1811_v23 = vmul.f32 2.1237322e-06, %v4937_v33  ;;  %v1822_v50 = vmul.f32 3.8918573e-05, %v4937_v33 }
 0x214   :  { %v3420_v5 = vclamps-f32 %v1766_v1, 1.0  ;;  %v763_v32 = vmul.f32 %v762_v25, %v4862_v54  ;;  %v774_v43 = vmul.f32 %v773_v11, %v4862_v54  ;;  %v1774_v2 = vadd.f32 0.0036580483, %v1773_v61 }
 0x215   :  { %v3655_v47 = vpop.eup %3654  ;;  %vm741_vm1 = vweird.f32 %v4931_v24  ;;  %v1785_v10 = vadd.f32 0.014752088, %v1784_v28  ;;  %v1812_v52 = vadd.f32 0.00028619796, %v1811_v23  ;;  %v1823_v16 = vadd.f32 0.001143296, %v1822_v50 }
 0x216   :  { %v2096_v51 = vadd.f32 1.0, %v3420_v5  ;;  %v737_v27 = vmul.f32 %v3655_v47, %v4931_v24  ;;  %v747_v26 = vand.u32 2147483648, %v4931_v24  ;;  %v4957_v18 = vadd.f32 1.0, %v774_v43 }
 0x217   :  { %v1775_v40 = vmul.f32 %v1774_v2, %v4920_v55  ;;  %v1786_v22 = vmul.f32 %v1785_v10, %v4920_v55  ;;  %v1813_v54 = vmul.f32 %v1812_v52, %v4937_v33  ;;  %v1824_v35 = vmul.f32 %v1823_v16, %v4937_v33 }
 0x218   :  { %v2112_v8 = vmul.f32 %v2096_v51, %v4788_v12  ;;  %v738_v41 = vsub.f32 1.0, %v737_v27  ;;  %v764_v45 = vadd.f32 1.1283791, %v763_v32  ;;  %3656 = vrcp.f32 %v4957_v18 }
 0x219   :  { %vm742_vm2 = vweird.f32 %v3655_v47  ;;  %v1776_v48 = vadd.f32 0.05243302, %v1775_v40  ;;  %v4966_v49 = vmul.f32 %v4302_v0, %v406_v9  ;;  %v4969_v57 = vmul.f32 %v4302_v0, %v407_v56 }
 0x21a   :  { %v2148_v46 = vpack.c.bf16 %v2112_v8, %v2111_v42  ;;  %v739_v53 = vmul.f32 %v3655_v47, %v738_v41  ;;  %v1787_v14 = vadd.f32 0.112945676, %v1786_v22  ;;  %v1814_v21 = vadd.f32 0.0036580483, %v1813_v54  ;;  %vm743_vm4 = vmor %vm741_vm1, %vm742_vm2 }
 0x21b   :  { %vm4971_vm3 = vcmp.eq.f32.partialorder %v745_v38, 8.507059e+37  ;;  %v748_v12 = vor.u32 1.1754944e-38, %v747_v26  ;;  %v1777_v6 = vmul.f32 %v1776_v48, %v4920_v55  ;;  %v1825_v4 = vadd.f32 0.014752088, %v1824_v35  ;;  %v6556_v48 = vld [vmem:[#allocation5_spill] sm:$0xff] }
 0x21c   :  { %2240 = vmatmul.bf16.gmra.mxu3 %v2148_v46  ;;  %v740_v15 = vadd.f32 %v3655_v47, %v739_v53  ;;  %v765_v58 = vmul.f32 %v764_v45, %v4838_v19  ;;  %v1788_v60 = vmul.f32 %v1787_v14, %v4920_v55  ;;  %v1815_v25 = vmul.f32 %v1814_v21, %v4937_v33 }
 0x21d   :  { %v1778_v42 = vadd.f32 0.18741608, %v1777_v6  ;;  %v1826_v36 = vmul.f32 %v1825_v4, %v4937_v33  ;;  %v4984_v3 = vmul.f32 0.70710677, %v4966_v49  ;;  %v4987_v30 = vmul.f32 0.70710677, %v4969_v57 }
 0x21e   :  { %v3657_v44 = vpop.eup %3656  ;;  %v744_v9 = vsel %vm743_vm4, %v3655_v47, %v740_v15  ;;  %v785_v19 = vand.u32 2147483647, %v4957_v18  ;;  %v1789_v29 = vadd.f32 0.4994258, %v1788_v60  ;;  %v1816_v56 = vadd.f32 0.05243302, %v1815_v25 }
 0x21f   :  { %v749_v1 = vsel %vm4971_vm3, %v748_v12, %v744_v9  ;;  %v777_v24 = vmul.f32 %v3657_v44, %v4957_v18  ;;  %v787_v11 = vand.u32 2147483648, %v4957_v18  ;;  %v1779_v61 = vmul.f32 %v1778_v42, %v4920_v55 }
 0x220   :  { %v750_v38 = vmul.f32 %v749_v1, %v725_v13  ;;  %v1790_v28 = vmul.f32 %v1789_v29, %v4920_v55  ;;  %v1817_v23 = vmul.f32 %v1816_v56, %v4937_v33  ;;  %v1827_v50 = vadd.f32 0.112945676, %v1826_v36 }
 0x221   :  { %v778_v5 = vsub.f32 1.0, %v777_v24  ;;  %vm781_vm5 = vweird.f32 %v4957_v18  ;;  %v793_v32 = vmul.f32 %v4984_v3, %v4984_v3  ;;  %v833_v43 = vmul.f32 %v4987_v30, %v4987_v30 }
 0x222   :  { %v3347_v2 = vclamps-f32 %v750_v38, 1.0  ;;  %v5002_v47 = vadd.f32 1.0, %v1790_v28  ;;  %v1818_v10 = vadd.f32 0.18741608, %v1817_v23  ;;  %v1828_v13 = vmul.f32 %v1827_v50, %v4937_v33  ;;  %v6559_v50 = vld [vmem:[#allocation6_spill] sm:$0xff] }
 0x223   :  { %v779_v52 = vmul.f32 %v3657_v44, %v778_v5  ;;  %vm782_vm6 = vweird.f32 %v3657_v44  ;;  %vm5005_vm7 = vcmp.eq.f32.partialorder %v785_v19, 8.507059e+37  ;;  %v5009_v16 = vmin.f32 %v793_v32, 16.0 }
 0x224   :  { %v788_v51 = vor.u32 1.1754944e-38, %v787_v11  ;;  %v1780_v27 = vadd.f32 1.1283791, %v1779_v61  ;;  %3658 = vrcp.f32 %v5002_v47  ;;  %v5012_v26 = vmin.f32 %v833_v43, 16.0  ;;  %vm783_vm8 = vmor %vm781_vm5, %vm782_vm6 }
 0x225   :  { %v780_v40 = vadd.f32 %v3657_v44, %v779_v52  ;;  %v1119_v22 = vadd.f32 1.0, %v3347_v2  ;;  %v1819_v54 = vmul.f32 %v1818_v10, %v4937_v33  ;;  %v1829_v35 = vadd.f32 0.4994258, %v1828_v13 }
 0x226   :  { %v1801_v8 = vand.u32 2147483647, %v5002_v47  ;;  %v795_v41 = vmul.f32 2.1237322e-06, %v5009_v16  ;;  %v806_v45 = vmul.f32 3.8918573e-05, %v5009_v16  ;;  %v1384_v46 = vsub.f32 %v6556_v48, %v4201_v7 }
 0x227   :  { %v784_v53 = vsel %vm783_vm8, %v3657_v44, %v780_v40  ;;  %v1803_v14 = vand.u32 2147483648, %v5002_v47  ;;  %v1820_v21 = vadd.f32 1.1283791, %v1819_v54  ;;  %v1830_v34 = vmul.f32 %v1829_v35, %v4937_v33 }
 0x228   :  { %v789_v12 = vsel %vm5005_vm7, %v788_v51, %v784_v53  ;;  %v796_v18 = vadd.f32 0.00028619796, %v795_v41  ;;  %v807_v6 = vadd.f32 0.001143296, %v806_v45  ;;  %v835_v4 = vmul.f32 2.1237322e-06, %v5012_v26 }
 0x229   :  { %v790_v15 = vmul.f32 %v789_v12, %v765_v58  ;;  %v1781_v60 = vmul.f32 %v1780_v27, %v4902_v37  ;;  %vm1797_vm9 = vweird.f32 %v5002_v47  ;;  %v5029_v25 = vadd.f32 1.0, %v1830_v34 }
 0x22a   :  { %v3659_v42 = vpop.eup %3658  ;;  %v797_v36 = vmul.f32 %v796_v18, %v5009_v16  ;;  %v808_v44 = vmul.f32 %v807_v6, %v5009_v16  ;;  %v836_v33 = vadd.f32 0.00028619796, %v835_v4  ;;  %v846_v9 = vmul.f32 3.8918573e-05, %v5012_v26 }
 0x22b   :  { %v3348_v19 = vclamps-f32 %v790_v15, 1.0  ;;  %v1135_v29 = vmul.f32 %v1119_v22, %v4894_v31  ;;  %v1793_v56 = vmul.f32 %v3659_v42, %v5002_v47  ;;  %3660 = vrcp.f32 %v5029_v25 }
 0x22c   :  { %vm5037_vm10 = vcmp.eq.f32.partialorder %v1801_v8, 8.507059e+37  ;;  %v1804_v58 = vor.u32 1.1754944e-38, %v1803_v14  ;;  %v5042_v1 = vmul.f32 %v1820_v21, %v4910_v63  ;;  %v798_v24 = vadd.f32 0.0036580483, %v797_v36 }
 0x22d   :  { %v1120_v11 = vadd.f32 1.0, %v3348_v19  ;;  %v1794_v61 = vsub.f32 1.0, %v1793_v56  ;;  %v809_v38 = vadd.f32 0.014752088, %v808_v44  ;;  %v837_v28 = vmul.f32 %v836_v33, %v5012_v26 }
 0x22e   :  { %vm1798_vm11 = vweird.f32 %v3659_v42  ;;  %v799_v31 = vmul.f32 %v798_v24, %v5009_v16  ;;  %v847_v23 = vadd.f32 0.001143296, %v846_v9  ;;  %v1385_v5 = vsub.f32 %v6559_v50, %v4201_v7 }
 0x22f   :  { %v1136_v32 = vmul.f32 %v1120_v11, %v4905_v39  ;;  %v1795_v43 = vmul.f32 %v3659_v42, %v1794_v61  ;;  %v810_v2 = vmul.f32 %v809_v38, %v5009_v16  ;;  %v838_v63 = vadd.f32 0.0036580483, %v837_v28  ;;  %vm1799_vm13 = vmor %vm1797_vm9, %vm1798_vm11  ;;  %v6560_v28 = vld [vmem:[#allocation10_spill] sm:$0xff] }
 0x230   :  { %vm1837_vm12 = vweird.f32 %v5029_v25  ;;  %v1841_v10 = vand.u32 2147483647, %v5029_v25  ;;  %v800_v13 = vadd.f32 0.05243302, %v799_v31  ;;  %v848_v52 = vmul.f32 %v847_v23, %v5012_v26 }
 0x231   :  { %v3661_v55 = vpop.eup %3660  ;;  %v2124_v51 = vpack.c.bf16 %v1136_v32, %v1135_v29  ;;  %v1796_v27 = vadd.f32 %v3659_v42, %v1795_v43  ;;  %v811_v40 = vadd.f32 0.112945676, %v810_v2  ;;  %v839_v22 = vmul.f32 %v838_v63, %v5012_v26 }
 0x232   :  { %v1833_v39 = vmul.f32 %v3661_v55, %v5029_v25  ;;  %v801_v54 = vmul.f32 %v800_v13, %v5009_v16  ;;  %v849_v35 = vadd.f32 0.014752088, %v848_v52  ;;  %v5060_v8 = vmul.f32 %v4239_v20, %v1384_v46 }
 0x233   :  { %2337 = vmatmul.bf16.gmra.mxu1 %v2124_v51  ;;  %v1800_v41 = vsel %vm1799_vm13, %v3659_v42, %v1796_v27  ;;  %v812_v45 = vmul.f32 %v811_v40, %v5009_v16  ;;  %v840_v48 = vadd.f32 0.05243302, %v839_v22  ;;  %v5064_v53 = vmul.f32 %v4239_v20, %v1385_v5 }
 0x234   :  { %v1805_v47 = vsel %vm5037_vm10, %v1804_v58, %v1800_v41  ;;  %v1834_v14 = vsub.f32 1.0, %v1833_v39  ;;  %v802_v21 = vadd.f32 0.18741608, %v801_v54  ;;  %v850_v34 = vmul.f32 %v849_v35, %v5012_v26 }
 0x235   :  { %v1806_v12 = vmul.f32 %v1805_v47, %v1781_v60  ;;  %v1843_v18 = vand.u32 2147483648, %v5029_v25  ;;  %v813_v46 = vadd.f32 0.4994258, %v812_v45  ;;  %v841_v6 = vmul.f32 %v840_v48, %v5012_v26 }
 0x236   :  { %v1835_v4 = vmul.f32 %v3661_v55, %v1834_v14  ;;  %vm1838_vm14 = vweird.f32 %v3661_v55  ;;  %v851_v15 = vadd.f32 0.112945676, %v850_v34  ;;  %v5072_v42 = vmul.f32 0.70710677, %v5060_v8 }
 0x237   :  { %v803_v36 = vmul.f32 %v802_v21, %v5009_v16  ;;  %v814_v44 = vmul.f32 %v813_v46, %v5009_v16  ;;  %v842_v33 = vadd.f32 0.18741608, %v841_v6  ;;  %v5077_v9 = vmul.f32 0.70710677, %v5064_v53  ;;  %vm1839_vm15 = vmor %vm1837_vm12, %vm1838_vm14  ;;  %v6565_v6 = vld [vmem:[#allocation4_spill] sm:$0xff] }
 0x238   :  { %v3421_v60 = vclamps-f32 %v1806_v12, 1.0  ;;  %v1836_v19 = vadd.f32 %v3661_v55, %v1835_v4  ;;  %v852_v29 = vmul.f32 %v851_v15, %v5012_v26  ;;  %v1849_v56 = vmul.f32 %v5072_v42, %v5072_v42 }
 0x239   :  { %vm1842_vm0 = vcmp.eq.f32.partialorder %v1841_v10, 8.507059e+37  ;;  %v1844_v37 = vor.u32 1.1754944e-38, %v1843_v18  ;;  %v5084_v58 = vadd.f32 1.0, %v814_v44  ;;  %v1889_v16 = vmul.f32 %v5077_v9, %v5077_v9  ;;  %v6564_v18 = vld [vmem:[#allocation3_spill] sm:$0xff] }
 0x23a   :  { %v1840_v24 = vsel %vm1839_vm15, %v3661_v55, %v1836_v19  ;;  %v843_v11 = vmul.f32 %v842_v33, %v5012_v26  ;;  %v853_v61 = vadd.f32 0.4994258, %v852_v29  ;;  %v5089_v38 = vmin.f32 %v1849_v56, 16.0 }
 0x23b   :  { %v6561_v31 = vsub.f32 %v6560_v28, %v4201_v7  ;;  %v1845_v25 = vsel %vm1842_vm0, %v1844_v37, %v1840_v24  ;;  %3662 = vrcp.f32 %v5084_v58  ;;  %v2097_v5 = vadd.f32 1.0, %v3421_v60 }
 0x23c   :  { %v1846_v50 = vmul.f32 %v1845_v25, %v5042_v1  ;;  %v804_v32 = vadd.f32 1.1283791, %v803_v36  ;;  %v827_v43 = vand.u32 2147483648, %v5084_v58  ;;  %v854_v2 = vmul.f32 %v853_v61, %v5012_v26 }
 0x23d   :  { %v5095_v23 = vmul.f32 %v4239_v20, %v6561_v31  ;;  %v1851_v63 = vmul.f32 2.1237322e-06, %v5089_v38  ;;  %v1862_v10 = vmul.f32 3.8918573e-05, %v5089_v38  ;;  %v5103_v13 = vmin.f32 %v1889_v16, 16.0 }
 0x23e   :  { %v1425_v52 = vmul.f32 0.5, %v4885_v17  ;;  %v3422_v55 = vclamps-f32 %v1846_v50, 1.0  ;;  %v825_v51 = vand.u32 2147483647, %v5084_v58  ;;  %v844_v27 = vadd.f32 1.1283791, %v843_v11 }
 0x23f   :  { %v1426_v1 = vmul.f32 0.5, %v4897_v62  ;;  %v5108_v40 = vadd.f32 1.0, %v854_v2  ;;  %v1852_v22 = vadd.f32 0.00028619796, %v1851_v63  ;;  %v1863_v39 = vadd.f32 0.001143296, %v1862_v10 }
 0x240   :  { %v2098_v54 = vadd.f32 1.0, %v3422_v55  ;;  %v2113_v26 = vmul.f32 %v2097_v5, %v1425_v52  ;;  %v1891_v35 = vmul.f32 2.1237322e-06, %v5103_v13  ;;  %v1902_v41 = vmul.f32 3.8918573e-05, %v5103_v13 }
 0x241   :  { %v3663_v45 = vpop.eup %3662  ;;  %v805_v48 = vmul.f32 %v804_v32, %v4984_v3  ;;  %vm821_vm1 = vweird.f32 %v5084_v58  ;;  %v828_v17 = vor.u32 1.1754944e-38, %v827_v43  ;;  %3664 = vrcp.f32 %v5108_v40 }
 0x242   :  { %v2114_v47 = vmul.f32 %v2098_v54, %v1426_v1  ;;  %v817_v62 = vmul.f32 %v3663_v45, %v5084_v58  ;;  %vm5116_vm2 = vcmp.eq.f32.partialorder %v825_v51, 8.507059e+37  ;;  %v5121_v21 = vmul.f32 %v844_v27, %v4987_v30 }
 0x243   :  { %v1853_v34 = vmul.f32 %v1852_v22, %v5089_v38  ;;  %v1864_v12 = vmul.f32 %v1863_v39, %v5089_v38  ;;  %v1892_v3 = vadd.f32 0.00028619796, %v1891_v35  ;;  %v408_v46 = vsub.f32 %v6564_v18, %v4207_v59 }
 0x244   :  { %v409_v4 = vsub.f32 %v6565_v6, %v4207_v59  ;;  %v2149_v15 = vpack.c.bf16 %v2114_v47, %v2113_v26  ;;  %v818_v36 = vsub.f32 1.0, %v817_v62  ;;  %v1903_v33 = vadd.f32 0.001143296, %v1902_v41 }
 0x245   :  { %v1854_v44 = vadd.f32 0.0036580483, %v1853_v34  ;;  %vm822_vm3 = vweird.f32 %v3663_v45  ;;  %v1865_v60 = vadd.f32 0.014752088, %v1864_v12  ;;  %v1893_v30 = vmul.f32 %v1892_v3, %v5103_v13 }
 0x246   :  { %v5131_v19 = vmul.f32 %v4302_v0, %v408_v46  ;;  %2245 = vmatmul.bf16.gmra.mxu3 %v2149_v15  ;;  %v819_v29 = vmul.f32 %v3663_v45, %v818_v36  ;;  %vm861_vm4 = vweird.f32 %v5108_v40  ;;  %v1904_v37 = vmul.f32 %v1903_v33, %v5103_v13  ;;  %vm823_vm6 = vmor %vm821_vm1, %vm822_vm3 }
 0x247   :  { %v1855_v56 = vmul.f32 %v1854_v44, %v5089_v38  ;;  %v5137_v16 = vmul.f32 %v4302_v0, %v409_v4  ;;  %v3665_v24 = vpop.eup %3664  ;;  %v865_v11 = vand.u32 2147483647, %v5108_v40  ;;  %v867_v61 = vand.u32 2147483648, %v5108_v40 }
 0x248   :  { %v1866_v28 = vmul.f32 %v1865_v60, %v5089_v38  ;;  %v1894_v31 = vadd.f32 0.0036580483, %v1893_v30  ;;  %v820_v25 = vadd.f32 %v3663_v45, %v819_v29  ;;  %v857_v50 = vmul.f32 %v3665_v24, %v5108_v40 }
 0x249   :  { %vm862_vm5 = vweird.f32 %v3665_v24  ;;  %v1856_v5 = vadd.f32 0.05243302, %v1855_v56  ;;  %v1905_v2 = vadd.f32 0.014752088, %v1904_v37  ;;  %v5148_v63 = vmul.f32 0.70710677, %v5131_v19 }
 0x24a   :  { %v1867_v32 = vadd.f32 0.112945676, %v1866_v28  ;;  %v1895_v43 = vmul.f32 %v1894_v31, %v5103_v13  ;;  %v824_v10 = vsel %vm823_vm6, %v3663_v45, %v820_v25  ;;  %v858_v52 = vsub.f32 1.0, %v857_v50  ;;  %vm863_vm8 = vmor %vm861_vm4, %vm862_vm5  ;;  %v6566_v28 = vld [vmem:[#allocation7_spill] sm:$0xff] }
 0x24b   :  { %v1857_v55 = vmul.f32 %v1856_v5, %v5089_v38  ;;  %v5152_v51 = vmul.f32 0.70710677, %v5137_v16  ;;  %v829_v27 = vsel %vm5116_vm2, %v828_v17, %v824_v10  ;;  %v1906_v22 = vmul.f32 %v1905_v2, %v5103_v13 }
 0x24c   :  { %v1868_v58 = vmul.f32 %v1867_v32, %v5089_v38  ;;  %v1896_v1 = vadd.f32 0.05243302, %v1895_v43  ;;  %v830_v39 = vmul.f32 %v829_v27, %v805_v48  ;;  %v859_v54 = vmul.f32 %v3665_v24, %v858_v52 }
 0x24d   :  { %v1858_v26 = vadd.f32 0.18741608, %v1857_v55  ;;  %v873_v35 = vmul.f32 %v5148_v63, %v5148_v63  ;;  %v1907_v47 = vadd.f32 0.112945676, %v1906_v22  ;;  %v913_v62 = vmul.f32 %v5152_v51, %v5152_v51 }
 0x24e   :  { %v1869_v41 = vadd.f32 0.4994258, %v1868_v58  ;;  %v1897_v45 = vmul.f32 %v1896_v1, %v5103_v13  ;;  %v3349_v14 = vclamps-f32 %v830_v39, 1.0  ;;  %v860_v17 = vadd.f32 %v3665_v24, %v859_v54 }
 0x24f   :  { %vm866_vm7 = vcmp.eq.f32.partialorder %v865_v11, 8.507059e+37  ;;  %v5163_v34 = vmin.f32 %v873_v35, 16.0  ;;  %v868_v48 = vor.u32 1.1754944e-38, %v867_v61  ;;  %v1859_v12 = vmul.f32 %v1858_v26, %v5089_v38 }
 0x250   :  { %v1870_v3 = vmul.f32 %v1869_v41, %v5089_v38  ;;  %v1908_v18 = vmul.f32 %v1907_v47, %v5103_v13  ;;  %v864_v46 = vsel %vm863_vm8, %v3665_v24, %v860_v17  ;;  %v1898_v6 = vadd.f32 0.18741608, %v1897_v45  ;;  %v6569_v41 = vld [vmem:[#allocation8_spill] sm:$0xff] }
 0x251   :  { %v875_v4 = vmul.f32 2.1237322e-06, %v5163_v34  ;;  %v5172_v15 = vmin.f32 %v913_v62, 16.0  ;;  %v869_v36 = vsel %vm866_vm7, %v868_v48, %v864_v46  ;;  %v1121_v44 = vadd.f32 1.0, %v3349_v14 }
 0x252   :  { %v5174_v33 = vadd.f32 1.0, %v1870_v3  ;;  %v1909_v60 = vadd.f32 0.4994258, %v1908_v18  ;;  %v5177_v40 = vmul.f32 0.70710677, %v5095_v23  ;;  %v870_v30 = vmul.f32 %v869_v36, %v5121_v21 }
 0x253   :  { %v876_v29 = vadd.f32 0.00028619796, %v875_v4  ;;  %v449_v38 = vmul.f32 0.5, %v4966_v49  ;;  %v450_v56 = vmul.f32 0.5, %v4969_v57  ;;  %v1860_v37 = vadd.f32 1.1283791, %v1859_v12 }
 0x254   :  { %3666 = vrcp.f32 %v5174_v33  ;;  %v3350_v24 = vclamps-f32 %v870_v30, 1.0  ;;  %v1910_v11 = vmul.f32 %v1909_v60, %v5103_v13  ;;  %v1386_v31 = vsub.f32 %v6566_v28, %v4201_v7 }
 0x255   :  { %v877_v61 = vmul.f32 %v876_v29, %v5163_v34  ;;  %v1137_v25 = vmul.f32 %v1121_v44, %v449_v38  ;;  %v1899_v50 = vmul.f32 %v1898_v6, %v5103_v13  ;;  %v886_v21 = vmul.f32 3.8918573e-05, %v5163_v34 }
 0x256   :  { %v915_v49 = vmul.f32 2.1237322e-06, %v5172_v15  ;;  %v1122_v5 = vadd.f32 1.0, %v3350_v24  ;;  %v1881_v57 = vand.u32 2147483647, %v5174_v33  ;;  %v5191_v32 = vadd.f32 1.0, %v1910_v11 }
 0x257   :  { %v878_v43 = vadd.f32 0.0036580483, %v877_v61  ;;  %v1861_v2 = vmul.f32 %v1860_v37, %v5072_v42  ;;  %v1883_v10 = vand.u32 2147483648, %v5174_v33  ;;  %v887_v52 = vadd.f32 0.001143296, %v886_v21 }
 0x258   :  { %v916_v55 = vadd.f32 0.00028619796, %v915_v49  ;;  %v1138_v27 = vmul.f32 %v1122_v5, %v450_v56  ;;  %vm1877_vm9 = vweird.f32 %v5174_v33  ;;  %3668 = vrcp.f32 %v5191_v32 }
 0x259   :  { %v926_v13 = vmul.f32 3.8918573e-05, %v5172_v15  ;;  %v1900_v1 = vadd.f32 1.1283791, %v1899_v50  ;;  %v879_v22 = vmul.f32 %v878_v43, %v5163_v34  ;;  %v888_v39 = vmul.f32 %v887_v52, %v5163_v34 }
 0x25a   :  { %v3667_v58 = vpop.eup %3666  ;;  %v917_v54 = vmul.f32 %v916_v55, %v5172_v15  ;;  %v2125_v42 = vpack.c.bf16 %v1138_v27, %v1137_v25  ;;  %vm5202_vm10 = vcmp.eq.f32.partialorder %v1881_v57, 8.507059e+37  ;;  %v1387_v45 = vsub.f32 %v6569_v41, %v4201_v7 }
 0x25b   :  { %v1873_v26 = vmul.f32 %v3667_v58, %v5174_v33  ;;  %v1884_v47 = vor.u32 1.1754944e-38, %v1883_v10  ;;  %v880_v62 = vadd.f32 0.05243302, %v879_v22  ;;  %v889_v14 = vadd.f32 0.014752088, %v888_v39 }
 0x25c   :  { %v5209_v17 = vmul.f32 %v4239_v20, %v1386_v31  ;;  %2342 = vmatmul.bf16.gmra.mxu1 %v2125_v42  ;;  %v918_v12 = vadd.f32 0.0036580483, %v917_v54  ;;  %v927_v3 = vadd.f32 0.001143296, %v926_v13  ;;  %v5212_v18 = vmul.f32 %v4239_v20, %v1387_v45 }
 0x25d   :  { %v1874_v48 = vsub.f32 1.0, %v1873_v26  ;;  %vm1878_vm11 = vweird.f32 %v3667_v58  ;;  %v1901_v46 = vmul.f32 %v1900_v1, %v5077_v9  ;;  %v890_v6 = vmul.f32 %v889_v14, %v5163_v34 }
 0x25e   :  { %v5217_v4 = vmul.f32 0.70710677, %v5209_v17  ;;  %v3669_v36 = vpop.eup %3668  ;;  %v881_v60 = vmul.f32 %v880_v62, %v5163_v34  ;;  %v919_v30 = vmul.f32 %v918_v12, %v5172_v15  ;;  %v928_v29 = vmul.f32 %v927_v3, %v5172_v15  ;;  %vm1879_vm13 = vmor %vm1877_vm9, %vm1878_vm11 }
 0x25f   :  { %v1875_v44 = vmul.f32 %v3667_v58, %v1874_v48  ;;  %v1913_v38 = vmul.f32 %v3669_v36, %v5191_v32  ;;  %vm1917_vm12 = vweird.f32 %v5191_v32  ;;  %v1921_v56 = vand.u32 2147483647, %v5191_v32 }
 0x260   :  { %v891_v9 = vadd.f32 0.112945676, %v890_v6  ;;  %v920_v24 = vadd.f32 0.05243302, %v919_v30  ;;  %v929_v11 = vadd.f32 0.014752088, %v928_v29  ;;  %v1929_v50 = vmul.f32 %v5217_v4, %v5217_v4 }
 0x261   :  { %v1876_v37 = vadd.f32 %v3667_v58, %v1875_v44  ;;  %v5226_v61 = vmul.f32 0.70710677, %v5212_v18  ;;  %v1914_v28 = vsub.f32 1.0, %v1913_v38  ;;  %v1923_v31 = vand.u32 2147483648, %v5191_v32 }
 0x262   :  { %v892_v25 = vmul.f32 %v891_v9, %v5163_v34  ;;  %v882_v49 = vadd.f32 0.18741608, %v881_v60  ;;  %v930_v5 = vmul.f32 %v929_v11, %v5172_v15  ;;  %vm1918_vm14 = vweird.f32 %v3669_v36 }
 0x263   :  { %v1880_v21 = vsel %vm1879_vm13, %v3667_v58, %v1876_v37  ;;  %v1969_v57 = vmul.f32 %v5226_v61, %v5226_v61  ;;  %v1915_v33 = vmul.f32 %v3669_v36, %v1914_v28  ;;  %v921_v55 = vmul.f32 %v920_v24, %v5172_v15  ;;  %vm1919_vm0 = vmor %vm1917_vm12, %vm1918_vm14 }
 0x264   :  { %v1885_v43 = vsel %vm5202_vm10, %v1884_v47, %v1880_v21  ;;  %v893_v10 = vadd.f32 0.4994258, %v892_v25  ;;  %v931_v27 = vadd.f32 0.112945676, %v930_v5  ;;  %v5241_v13 = vmin.f32 %v1929_v50, 16.0 }
 0x265   :  { %v1886_v52 = vmul.f32 %v1885_v43, %v1861_v2  ;;  %v1916_v1 = vadd.f32 %v3669_v36, %v1915_v33  ;;  %vm1922_vm15 = vcmp.eq.f32.partialorder %v1921_v56, 8.507059e+37  ;;  %v5244_v22 = vmin.f32 %v1969_v57, 16.0 }
 0x266   :  { %v894_v58 = vmul.f32 %v893_v10, %v5163_v34  ;;  %v1924_v54 = vor.u32 1.1754944e-38, %v1923_v31  ;;  %v883_v42 = vmul.f32 %v882_v49, %v5163_v34  ;;  %v932_v2 = vmul.f32 %v931_v27, %v5172_v15 }
 0x267   :  { %v3423_v39 = vclamps-f32 %v1886_v52, 1.0  ;;  %v1920_v26 = vsel %vm1919_vm0, %v3669_v36, %v1916_v1  ;;  %v1931_v41 = vmul.f32 2.1237322e-06, %v5241_v13  ;;  %v1942_v45 = vmul.f32 3.8918573e-05, %v5241_v13 }
 0x268   :  { %v5250_v35 = vadd.f32 1.0, %v894_v58  ;;  %v1925_v47 = vsel %vm1922_vm15, %v1924_v54, %v1920_v26  ;;  %v922_v62 = vadd.f32 0.18741608, %v921_v55  ;;  %v933_v14 = vadd.f32 0.4994258, %v932_v2  ;;  %v6572_v58 = vld [vmem:[#allocation11_spill] sm:$0xff] }
 0x269   :  { %v1971_v48 = vmul.f32 2.1237322e-06, %v5244_v22  ;;  %v1926_v12 = vmul.f32 %v1925_v47, %v1901_v46  ;;  %v2099_v32 = vadd.f32 1.0, %v3423_v39  ;;  %v5258_v34 = vmul.f32 %v5177_v40, %v5177_v40  ;;  %v6573_v47 = vld [vmem:[#allocation12_spill] sm:$0xff] }
 0x26a   :  { %3670 = vrcp.f32 %v5250_v35  ;;  %v1427_v3 = vmul.f32 0.5, %v5060_v8  ;;  %v884_v6 = vadd.f32 1.1283791, %v883_v42  ;;  %v934_v36 = vmul.f32 %v933_v14, %v5172_v15 }
 0x26b   :  { %v1428_v44 = vmul.f32 0.5, %v5064_v53  ;;  %v3424_v60 = vclamps-f32 %v1926_v12, 1.0  ;;  %v1932_v30 = vadd.f32 0.00028619796, %v1931_v41  ;;  %v1943_v29 = vadd.f32 0.001143296, %v1942_v45 }
 0x26c   :  { %v905_v38 = vand.u32 2147483647, %v5250_v35  ;;  %v923_v46 = vmul.f32 %v922_v62, %v5172_v15  ;;  %v5265_v56 = vadd.f32 1.0, %v934_v36  ;;  %v1972_v9 = vadd.f32 0.00028619796, %v1971_v48 }
 0x26d   :  { %v2100_v37 = vadd.f32 1.0, %v3424_v60  ;;  %v2115_v24 = vmul.f32 %v2099_v32, %v1427_v3  ;;  %v1933_v11 = vmul.f32 %v1932_v30, %v5241_v13  ;;  %v1944_v8 = vmul.f32 %v1943_v29, %v5241_v13 }
 0x26e   :  { %v885_v28 = vmul.f32 %v884_v6, %v5148_v63  ;;  %v907_v53 = vand.u32 2147483648, %v5250_v35  ;;  %3672 = vrcp.f32 %v5265_v56  ;;  %v1982_v31 = vmul.f32 3.8918573e-05, %v5244_v22 }
 0x26f   :  { %v2116_v50 = vmul.f32 %v2100_v37, %v1428_v44  ;;  %v1934_v15 = vadd.f32 0.0036580483, %v1933_v11  ;;  %v1945_v21 = vadd.f32 0.014752088, %v1944_v8  ;;  %v1973_v49 = vmul.f32 %v1972_v9, %v5244_v22 }
 0x270   :  { %v3671_v25 = vpop.eup %3670  ;;  %vm901_vm1 = vweird.f32 %v5250_v35  ;;  %vm5276_vm2 = vcmp.eq.f32.partialorder %v905_v38, 8.507059e+37  ;;  %v924_v63 = vadd.f32 1.1283791, %v923_v46  ;;  %v908_v27 = vor.u32 1.1754944e-38, %v907_v53 }
 0x271   :  { %v897_v5 = vmul.f32 %v3671_v25, %v5250_v35  ;;  %v2150_v43 = vpack.c.bf16 %v2116_v50, %v2115_v24  ;;  %v1935_v33 = vmul.f32 %v1934_v15, %v5241_v13  ;;  %v1946_v10 = vmul.f32 %v1945_v21, %v5241_v13 }
 0x272   :  { %v1974_v52 = vadd.f32 0.0036580483, %v1973_v49  ;;  %v1983_v1 = vadd.f32 0.001143296, %v1982_v31  ;;  %v410_v39 = vsub.f32 %v6572_v58, %v4207_v59  ;;  %vm902_vm3 = vweird.f32 %v3671_v25 }
 0x273   :  { %v898_v55 = vsub.f32 1.0, %v897_v5  ;;  %2250 = vmatmul.bf16.gmra.mxu3 %v2150_v43  ;;  %v1936_v54 = vadd.f32 0.05243302, %v1935_v33  ;;  %v1947_v42 = vadd.f32 0.112945676, %v1946_v10  ;;  %v411_v62 = vsub.f32 %v6573_v47, %v4207_v59  ;;  %vm903_vm5 = vmor %vm901_vm1, %vm902_vm3 }
 0x274   :  { %v1975_v2 = vmul.f32 %v1974_v52, %v5244_v22  ;;  %v3673_v26 = vpop.eup %3672  ;;  %v1984_v45 = vmul.f32 %v1983_v1, %v5244_v22  ;;  %v5289_v14 = vmul.f32 %v4302_v0, %v410_v39  ;;  %vm941_vm4 = vweird.f32 %v5265_v56 }
 0x275   :  { %v899_v41 = vmul.f32 %v3671_v25, %v898_v55  ;;  %v937_v48 = vmul.f32 %v3673_v26, %v5265_v56  ;;  %v1937_v12 = vmul.f32 %v1936_v54, %v5241_v13  ;;  %v1948_v32 = vmul.f32 %v1947_v42, %v5241_v13  ;;  %v6574_v54 = vld [vmem:[#allocation9_spill] sm:$0xff] }
 0x276   :  { %v1976_v6 = vadd.f32 0.05243302, %v1975_v2  ;;  %v1985_v36 = vadd.f32 0.014752088, %v1984_v45  ;;  %v5296_v44 = vmul.f32 %v4302_v0, %v411_v62  ;;  %v945_v30 = vand.u32 2147483647, %v5265_v56 }
 0x277   :  { %v900_v3 = vadd.f32 %v3671_v25, %v899_v41  ;;  %v938_v60 = vsub.f32 1.0, %v937_v48  ;;  %v947_v29 = vand.u32 2147483648, %v5265_v56  ;;  %v1949_v38 = vadd.f32 0.4994258, %v1948_v32 }
 0x278   :  { %v1938_v9 = vadd.f32 0.18741608, %v1937_v12  ;;  %v1986_v37 = vmul.f32 %v1985_v36, %v5244_v22  ;;  %v5305_v24 = vmul.f32 0.70710677, %v5289_v14  ;;  %vm942_vm6 = vweird.f32 %v3673_v26 }
 0x279   :  { %v904_v46 = vsel %vm903_vm5, %v3671_v25, %v900_v3  ;;  %v939_v8 = vmul.f32 %v3673_v26, %v938_v60  ;;  %v1950_v35 = vmul.f32 %v1949_v38, %v5241_v13  ;;  %v1977_v31 = vmul.f32 %v1976_v6, %v5244_v22  ;;  %vm943_vm7 = vmor %vm941_vm4, %vm942_vm6 }
 0x27a   :  { %v909_v11 = vsel %vm5276_vm2, %v908_v27, %v904_v46  ;;  %v1987_v50 = vadd.f32 0.112945676, %v1986_v37  ;;  %v5312_v15 = vmul.f32 0.70710677, %v5296_v44  ;;  %v948_v21 = vor.u32 1.1754944e-38, %v947_v29 }
 0x27b   :  { %v910_v53 = vmul.f32 %v909_v11, %v885_v28  ;;  %v940_v25 = vadd.f32 %v3673_v26, %v939_v8  ;;  %v5314_v49 = vadd.f32 1.0, %v1950_v35  ;;  %v953_v5 = vmul.f32 %v5305_v24, %v5305_v24 }
 0x27c   :  { %v1939_v43 = vmul.f32 %v1938_v9, %v5241_v13  ;;  %v1988_v28 = vmul.f32 %v1987_v50, %v5244_v22  ;;  %v993_v33 = vmul.f32 %v5312_v15, %v5312_v15  ;;  %v925_v10 = vmul.f32 %v924_v63, %v5152_v51 }
 0x27d   :  { %v3351_v57 = vclamps-f32 %v910_v53, 1.0  ;;  %v944_v52 = vsel %vm943_vm7, %v3673_v26, %v940_v25  ;;  %vm946_vm8 = vcmp.eq.f32.partialorder %v945_v30, 8.507059e+37  ;;  %3674 = vrcp.f32 %v5314_v49 }
 0x27e   :  { %v5327_v55 = vmin.f32 %v5258_v34, 16.0  ;;  %v949_v27 = vsel %vm946_vm8, %v948_v21, %v944_v52  ;;  %v1978_v56 = vadd.f32 0.18741608, %v1977_v31  ;;  %v1989_v39 = vadd.f32 0.4994258, %v1988_v28 }
 0x27f   :  { %v1123_v1 = vadd.f32 1.0, %v3351_v57  ;;  %v950_v58 = vmul.f32 %v949_v27, %v925_v10  ;;  %v5329_v13 = vmin.f32 %v953_v5, 16.0  ;;  %v1388_v42 = vsub.f32 %v6574_v54, %v4201_v7 }
 0x280   :  { %v451_v2 = vmul.f32 0.5, %v5131_v19  ;;  %v452_v51 = vmul.f32 0.5, %v5137_v16  ;;  %v1940_v63 = vadd.f32 1.1283791, %v1939_v43  ;;  %v5335_v26 = vmin.f32 %v993_v33, 16.0 }
 0x281   :  { %v3352_v41 = vclamps-f32 %v950_v58, 1.0  ;;  %v1990_v34 = vmul.f32 %v1989_v39, %v5244_v22  ;;  %v955_v45 = vmul.f32 2.1237322e-06, %v5329_v13  ;;  %v5340_v47 = vmul.f32 %v4239_v20, %v1388_v42 }
 0x282   :  { %v1139_v62 = vmul.f32 %v1123_v1, %v451_v2  ;;  %v1979_v48 = vmul.f32 %v1978_v56, %v5244_v22  ;;  %v966_v7 = vmul.f32 3.8918573e-05, %v5329_v13  ;;  %v995_v19 = vmul.f32 2.1237322e-06, %v5335_v26 }
 0x283   :  { %v3675_v12 = vpop.eup %3674  ;;  %v1124_v16 = vadd.f32 1.0, %v3352_v41  ;;  %v5345_v32 = vadd.f32 1.0, %v1990_v34  ;;  %v956_v3 = vadd.f32 0.00028619796, %v955_v45  ;;  %v1006_v6 = vmul.f32 3.8918573e-05, %v5335_v26 }
 0x284   :  { %v1941_v36 = vmul.f32 %v1940_v63, %v5217_v4  ;;  %v1953_v60 = vmul.f32 %v3675_v12, %v5314_v49  ;;  %v967_v20 = vadd.f32 0.001143296, %v966_v7  ;;  %v996_v30 = vadd.f32 0.00028619796, %v995_v19 }
 0x285   :  { %v1140_v29 = vmul.f32 %v1124_v16, %v452_v51  ;;  %vm1957_vm9 = vweird.f32 %v5314_v49  ;;  %v1961_v22 = vand.u32 2147483647, %v5314_v49  ;;  %3676 = vrcp.f32 %v5345_v32 }
 0x286   :  { %v1954_v38 = vsub.f32 1.0, %v1953_v60  ;;  %v1963_v46 = vand.u32 2147483648, %v5314_v49  ;;  %v957_v9 = vmul.f32 %v956_v3, %v5329_v13  ;;  %v968_v37 = vmul.f32 %v967_v20, %v5329_v13 }
 0x287   :  { %v2126_v11 = vpack.c.bf16 %v1140_v29, %v1139_v62  ;;  %v1980_v4 = vadd.f32 1.1283791, %v1979_v48  ;;  %v997_v8 = vmul.f32 %v996_v30, %v5335_v26  ;;  %v1007_v35 = vadd.f32 0.001143296, %v1006_v6 }
 0x288   :  { %v1955_v53 = vmul.f32 %v3675_v12, %v1954_v38  ;;  %vm1958_vm10 = vweird.f32 %v3675_v12  ;;  %v958_v31 = vadd.f32 0.0036580483, %v957_v9  ;;  %v969_v50 = vadd.f32 0.014752088, %v968_v37 }
 0x289   :  { %2347 = vmatmul.bf16.gmra.mxu1 %v2126_v11  ;;  %vm5357_vm11 = vcmp.eq.f32.partialorder %v1961_v22, 8.507059e+37  ;;  %v998_v21 = vadd.f32 0.0036580483, %v997_v8  ;;  %v1008_v5 = vmul.f32 %v1007_v35, %v5335_v26  ;;  %v5363_v57 = vmul.f32 0.70710677, %v5340_v47  ;;  %vm1959_vm12 = vmor %vm1957_vm9, %vm1958_vm10 }
 0x28a   :  { %v1956_v43 = vadd.f32 %v3675_v12, %v1955_v53  ;;  %v1964_v28 = vor.u32 1.1754944e-38, %v1963_v46  ;;  %v959_v33 = vmul.f32 %v958_v31, %v5329_v13  ;;  %v970_v10 = vmul.f32 %v969_v50, %v5329_v13 }
 0x28b   :  { %v3677_v52 = vpop.eup %3676  ;;  %v1981_v27 = vmul.f32 %v1980_v4, %v5226_v61  ;;  %v999_v1 = vmul.f32 %v998_v21, %v5335_v26  ;;  %v1009_v56 = vadd.f32 0.014752088, %v1008_v5  ;;  %v2009_v58 = vmul.f32 %v5363_v57, %v5363_v57 }
 0x28c   :  { %v1960_v39 = vsel %vm1959_vm12, %v3675_v12, %v1956_v43  ;;  %v1993_v54 = vmul.f32 %v3677_v52, %v5345_v32  ;;  %vm1997_vm13 = vweird.f32 %v5345_v32  ;;  %v960_v42 = vadd.f32 0.05243302, %v959_v33 }
 0x28d   :  { %v1965_v2 = vsel %vm5357_vm11, %v1964_v28, %v1960_v39  ;;  %v971_v51 = vadd.f32 0.112945676, %v970_v10  ;;  %v1000_v49 = vadd.f32 0.05243302, %v999_v1  ;;  %v1010_v63 = vmul.f32 %v1009_v56, %v5335_v26 }
 0x28e   :  { %v1966_v61 = vmul.f32 %v1965_v2, %v1941_v36  ;;  %v1994_v41 = vsub.f32 1.0, %v1993_v54  ;;  %v961_v34 = vmul.f32 %v960_v42, %v5329_v13  ;;  %v5379_v45 = vmin.f32 %v2009_v58, 16.0 }
 0x28f   :  { %v2003_v62 = vand.u32 2147483648, %v5345_v32  ;;  %v972_v48 = vmul.f32 %v971_v51, %v5329_v13  ;;  %v1001_v7 = vmul.f32 %v1000_v49, %v5335_v26  ;;  %v1011_v19 = vadd.f32 0.112945676, %v1010_v63 }
 0x290   :  { %v1995_v12 = vmul.f32 %v3677_v52, %v1994_v41  ;;  %vm1998_vm14 = vweird.f32 %v3677_v52  ;;  %v2001_v16 = vand.u32 2147483647, %v5345_v32  ;;  %v2011_v3 = vmul.f32 2.1237322e-06, %v5379_v45 }
 0x291   :  { %v962_v6 = vadd.f32 0.18741608, %v961_v34  ;;  %v973_v36 = vadd.f32 0.4994258, %v972_v48  ;;  %v1012_v60 = vmul.f32 %v1011_v19, %v5335_v26  ;;  %v2022_v20 = vmul.f32 3.8918573e-05, %v5379_v45  ;;  %vm1999_vm15 = vmor %vm1997_vm13, %vm1998_vm14 }
 0x292   :  { %v3425_v30 = vclamps-f32 %v1966_v61, 1.0  ;;  %v1996_v29 = vadd.f32 %v3677_v52, %v1995_v12  ;;  %v1002_v22 = vadd.f32 0.18741608, %v1001_v7  ;;  %v2012_v38 = vadd.f32 0.00028619796, %v2011_v3  ;;  %v6577_v61 = vld [vmem:[#allocation13_spill] sm:$0xff] }
 0x293   :  { %v2004_v46 = vor.u32 1.1754944e-38, %v2003_v62  ;;  %v974_v9 = vmul.f32 %v973_v36, %v5329_v13  ;;  %v1013_v37 = vadd.f32 0.4994258, %v1012_v60  ;;  %v2023_v11 = vadd.f32 0.001143296, %v2022_v20  ;;  %v6580_v60 = vld [vmem:[#allocation14_spill] sm:$0xff] }
 0x294   :  { %v2000_v4 = vsel %vm1999_vm15, %v3677_v52, %v1996_v29  ;;  %vm2002_vm0 = vcmp.eq.f32.partialorder %v2001_v16, 8.507059e+37  ;;  %v2013_v8 = vmul.f32 %v2012_v38, %v5379_v45  ;;  %v2051_v35 = vmul.f32 2.1237322e-06, %v5327_v55 }
 0x295   :  { %v2005_v53 = vsel %vm2002_vm0, %v2004_v46, %v2000_v4  ;;  %v963_v31 = vmul.f32 %v962_v6, %v5329_v13  ;;  %v975_v50 = vadd.f32 1.0, %v974_v9  ;;  %v1014_v25 = vmul.f32 %v1013_v37, %v5335_v26 }
 0x296   :  { %v2006_v21 = vmul.f32 %v2005_v53, %v1981_v27  ;;  %v2101_v32 = vadd.f32 1.0, %v3425_v30  ;;  %v1003_v5 = vmul.f32 %v1002_v22, %v5335_v26  ;;  %v2024_v43 = vmul.f32 %v2023_v11, %v5379_v45 }
 0x297   :  { %v1429_v28 = vmul.f32 0.5, %v5209_v17  ;;  %3678 = vrcp.f32 %v975_v50  ;;  %v2014_v33 = vadd.f32 0.0036580483, %v2013_v8  ;;  %v5398_v52 = vadd.f32 1.0, %v1014_v25 }
 0x298   :  { %v3426_v10 = vclamps-f32 %v2006_v21, 1.0  ;;  %v2052_v1 = vadd.f32 0.00028619796, %v2051_v35  ;;  %v2062_v56 = vmul.f32 3.8918573e-05, %v5327_v55  ;;  %v1430_v13 = vmul.f32 0.5, %v5212_v18 }
 0x299   :  { %v964_v58 = vadd.f32 1.1283791, %v963_v31  ;;  %v2025_v39 = vadd.f32 0.014752088, %v2024_v43  ;;  %v2117_v54 = vmul.f32 %v2101_v32, %v1429_v28  ;;  %v1004_v42 = vadd.f32 1.1283791, %v1003_v5 }
 0x29a   :  { %v2102_v27 = vadd.f32 1.0, %v3426_v10  ;;  %3680 = vrcp.f32 %v5398_v52  ;;  %v985_v26 = vand.u32 2147483647, %v975_v50  ;;  %v2015_v17 = vmul.f32 %v2014_v33, %v5379_v45 }
 0x29b   :  { %v2026_v2 = vmul.f32 %v2025_v39, %v5379_v45  ;;  %v2053_v49 = vmul.f32 %v2052_v1, %v5327_v55  ;;  %v2063_v63 = vadd.f32 0.001143296, %v2062_v56  ;;  %v412_v41 = vsub.f32 %v6577_v61, %v4207_v59 }
 0x29c   :  { %v2118_v51 = vmul.f32 %v2102_v27, %v1430_v13  ;;  %v965_v34 = vmul.f32 %v964_v58, %v5305_v24  ;;  %vm981_vm1 = vweird.f32 %v975_v50  ;;  %v987_v62 = vand.u32 2147483648, %v975_v50 }
 0x29d   :  { %v3679_v18 = vpop.eup %3678  ;;  %v2027_v48 = vadd.f32 0.112945676, %v2026_v2  ;;  %v1005_v12 = vmul.f32 %v1004_v42, %v5312_v15  ;;  %v2064_v16 = vmul.f32 %v2063_v63, %v5327_v55  ;;  %vm5411_vm2 = vcmp.eq.f32.partialorder %v985_v26, 8.507059e+37 }
 0x29e   :  { %v2151_v7 = vpack.c.bf16 %v2118_v51, %v2117_v54  ;;  %v977_v19 = vmul.f32 %v3679_v18, %v975_v50  ;;  %v2016_v6 = vadd.f32 0.05243302, %v2015_v17  ;;  %v413_v20 = vsub.f32 %v6580_v60, %v4207_v59 }
 0x29f   :  { %v2028_v36 = vmul.f32 %v2027_v48, %v5379_v45  ;;  %v2054_v29 = vadd.f32 0.0036580483, %v2053_v49  ;;  %v2065_v22 = vadd.f32 0.014752088, %v2064_v16  ;;  %v5419_v38 = vmul.f32 %v4302_v0, %v412_v41 }
 0x2a0   :  { %v3681_v24 = vpop.eup %3680  ;;  %2255 = vmatmul.bf16.gmra.mxu3 %v2151_v7  ;;  %v978_v30 = vsub.f32 1.0, %v977_v19  ;;  %v988_v15 = vor.u32 1.1754944e-38, %v987_v62  ;;  %v5423_v37 = vmul.f32 %v4302_v0, %v413_v20  ;;  %vm982_vm3 = vweird.f32 %v3679_v18 }
 0x2a1   :  { %v1017_v46 = vmul.f32 %v3681_v24, %v5398_v52  ;;  %v2029_v9 = vadd.f32 0.4994258, %v2028_v36  ;;  %v1025_v4 = vand.u32 2147483647, %v5398_v52  ;;  %v2066_v59 = vmul.f32 %v2065_v22, %v5327_v55  ;;  %vm983_vm4 = vmor %vm981_vm1, %vm982_vm3 }
 0x2a2   :  { %v979_v11 = vmul.f32 %v3679_v18, %v978_v30  ;;  %v1027_v35 = vand.u32 2147483648, %v5398_v52  ;;  %v2017_v53 = vmul.f32 %v2016_v6, %v5379_v45  ;;  %v2055_v21 = vmul.f32 %v2054_v29, %v5327_v55 }
 0x2a3   :  { %v1018_v8 = vsub.f32 1.0, %v1017_v46  ;;  %v2030_v31 = vmul.f32 %v2029_v9, %v5379_v45  ;;  %v2067_v32 = vadd.f32 0.112945676, %v2066_v59  ;;  %v5432_v0 = vmul.f32 0.70710677, %v5419_v38 }
 0x2a4   :  { %v980_v25 = vadd.f32 %v3679_v18, %v979_v11  ;;  %vm1022_vm5 = vweird.f32 %v3681_v24  ;;  %v5438_v28 = vmul.f32 0.70710677, %v5423_v37  ;;  %vm1021_vm6 = vweird.f32 %v5398_v52 }
 0x2a5   :  { %v1019_v5 = vmul.f32 %v3681_v24, %v1018_v8  ;;  %v5435_v43 = vadd.f32 1.0, %v2030_v31  ;;  %v2068_v10 = vmul.f32 %v2067_v32, %v5327_v55  ;;  %v1033_v1 = vmul.f32 %v5432_v0, %v5432_v0  ;;  %vm1023_vm7 = vmor %vm1021_vm6, %vm1022_vm5 }
 0x2a6   :  { %v984_v33 = vsel %vm983_vm4, %v3679_v18, %v980_v25  ;;  %v2018_v13 = vadd.f32 0.18741608, %v2017_v53  ;;  %vm1026_vm8 = vcmp.eq.f32.partialorder %v1025_v4, 8.507059e+37  ;;  %v1028_v39 = vor.u32 1.1754944e-38, %v1027_v35 }
 0x2a7   :  { %v989_v56 = vsel %vm5411_vm2, %v988_v15, %v984_v33  ;;  %v1020_v50 = vadd.f32 %v3681_v24, %v1019_v5  ;;  %3682 = vrcp.f32 %v5435_v43  ;;  %v2056_v27 = vadd.f32 0.05243302, %v2055_v21 }
 0x2a8   :  { %v990_v58 = vmul.f32 %v989_v56, %v965_v34  ;;  %v2069_v42 = vadd.f32 0.4994258, %v2068_v10  ;;  %v5447_v52 = vmin.f32 %v1033_v1, 16.0  ;;  %v1073_v26 = vmul.f32 %v5438_v28, %v5438_v28 }
 0x2a9   :  { %v1024_v54 = vsel %vm1023_vm7, %v3681_v24, %v1020_v50  ;;  %v2019_v49 = vmul.f32 %v2018_v13, %v5379_v45  ;;  %v453_v41 = vmul.f32 0.5, %v5289_v14  ;;  %v2057_v34 = vmul.f32 %v2056_v27, %v5327_v55 }
 0x2aa   :  { %v3353_v17 = vclamps-f32 %v990_v58, 1.0  ;;  %v1029_v2 = vsel %vm1026_vm8, %v1028_v39, %v1024_v54  ;;  %v2070_v63 = vmul.f32 %v2069_v42, %v5327_v55  ;;  %v1035_v61 = vmul.f32 2.1237322e-06, %v5447_v52 }
 0x2ab   :  { %v1030_v51 = vmul.f32 %v1029_v2, %v1005_v12  ;;  %v1046_v62 = vmul.f32 3.8918573e-05, %v5447_v52  ;;  %v5459_v3 = vmin.f32 %v1073_v26, 16.0  ;;  %v454_v45 = vmul.f32 0.5, %v5296_v44 }
 0x2ac   :  { %v1125_v18 = vadd.f32 1.0, %v3353_v17  ;;  %v5457_v19 = vadd.f32 1.0, %v2070_v63  ;;  %v1036_v16 = vadd.f32 0.00028619796, %v1035_v61  ;;  %v2020_v14 = vadd.f32 1.1283791, %v2019_v49 }
 0x2ad   :  { %v3683_v48 = vpop.eup %3682  ;;  %v3354_v7 = vclamps-f32 %v1030_v51, 1.0  ;;  %v1047_v6 = vadd.f32 0.001143296, %v1046_v62  ;;  %v2058_v24 = vadd.f32 0.18741608, %v2057_v34  ;;  %v2043_v15 = vand.u32 2147483648, %v5435_v43 }
 0x2ae   :  { %v2033_v12 = vmul.f32 %v3683_v48, %v5435_v43  ;;  %v1141_v60 = vmul.f32 %v1125_v18, %v453_v41  ;;  %3684 = vrcp.f32 %v5457_v19  ;;  %v1037_v30 = vmul.f32 %v1036_v16, %v5447_v52 }
 0x2af   :  { %v1126_v36 = vadd.f32 1.0, %v3354_v7  ;;  %v1048_v29 = vmul.f32 %v1047_v6, %v5447_v52  ;;  %v1075_v46 = vmul.f32 2.1237322e-06, %v5459_v3  ;;  %v1086_v44 = vmul.f32 3.8918573e-05, %v5459_v3 }
 0x2b0   :  { %v2034_v20 = vsub.f32 1.0, %v2033_v12  ;;  %vm2038_vm9 = vweird.f32 %v3683_v48  ;;  %v2041_v11 = vand.u32 2147483647, %v5435_v43  ;;  %v1038_v8 = vadd.f32 0.0036580483, %v1037_v30  ;;  %v2323_v30 = vpop.f32.mrf.mxu1 }
 0x2b1   :  { %v1142_v22 = vmul.f32 %v1126_v36, %v454_v45  ;;  %v1049_v4 = vadd.f32 0.014752088, %v1048_v29  ;;  %v1076_v35 = vadd.f32 0.00028619796, %v1075_v46  ;;  %v1087_v53 = vadd.f32 0.001143296, %v1086_v44 }
 0x2b2   :  { %v2035_v9 = vmul.f32 %v3683_v48, %v2034_v20  ;;  %vm2037_vm10 = vweird.f32 %v5435_v43  ;;  %v2021_v32 = vmul.f32 %v2020_v14, %v5363_v57  ;;  %v2044_v5 = vor.u32 1.1754944e-38, %v2043_v15 }
 0x2b3   :  { %v2127_v59 = vpack.c.bf16 %v1142_v22, %v1141_v60  ;;  %v1050_v25 = vmul.f32 %v1049_v4, %v5447_v52  ;;  %vm2039_vm11 = vmor %vm2037_vm10, %vm2038_vm9  ;;  %v1077_v33 = vmul.f32 %v1076_v35, %v5459_v3  ;;  %v1088_v10 = vmul.f32 %v1087_v53, %v5459_v3 }
 0x2b4   :  { %v2036_v31 = vadd.f32 %v3683_v48, %v2035_v9  ;;  %v3685_v21 = vpop.eup %3684  ;;  %vm2042_vm12 = vcmp.eq.f32.partialorder %v2041_v11, 8.507059e+37  ;;  %v2059_v56 = vmul.f32 %v2058_v24, %v5327_v55  ;;  %v1039_v43 = vmul.f32 %v1038_v8, %v5447_v52  ;;  %v2226_v24 = vpop.f32.mrf.mxu3 }
 0x2b5   :  { %2352 = vmatmul.bf16.gmra.mxu1 %v2127_v59  ;;  %v2073_v50 = vmul.f32 %v3685_v21, %v5457_v19  ;;  %v1051_v58 = vadd.f32 0.112945676, %v1050_v25  ;;  %v1089_v39 = vadd.f32 0.014752088, %v1088_v10  ;;  %v1078_v57 = vadd.f32 0.0036580483, %v1077_v33 }
 0x2b6   :  { %v2040_v1 = vsel %vm2039_vm11, %v3683_v48, %v2036_v31  ;;  %v2083_v42 = vand.u32 2147483648, %v5457_v19  ;;  %v2060_v2 = vadd.f32 1.1283791, %v2059_v56  ;;  %vm2078_vm13 = vweird.f32 %v3685_v21 }
 0x2b7   :  { %v2045_v13 = vsel %vm2042_vm12, %v2044_v5, %v2040_v1  ;;  %v2074_v54 = vsub.f32 1.0, %v2073_v50  ;;  %v1052_v26 = vmul.f32 %v1051_v58, %v5447_v52  ;;  %v1090_v17 = vmul.f32 %v1089_v39, %v5459_v3 }
 0x2b8   :  { %v2046_v27 = vmul.f32 %v2045_v13, %v2021_v32  ;;  %v2081_v55 = vand.u32 2147483647, %v5457_v19  ;;  %v1040_v49 = vadd.f32 0.05243302, %v1039_v43  ;;  %vm2077_vm14 = vweird.f32 %v5457_v19  ;;  %v2325_v32 = vpop.f32.mrf.mxu1 }
 0x2b9   :  { %v2075_v51 = vmul.f32 %v3685_v21, %v2074_v54  ;;  %v1053_v63 = vadd.f32 0.4994258, %v1052_v26  ;;  %v1091_v61 = vadd.f32 0.112945676, %v1090_v17  ;;  %v1079_v34 = vmul.f32 %v1078_v57, %v5459_v3  ;;  %vm2079_vm15 = vmor %vm2077_vm14, %vm2078_vm13 }
 0x2ba   :  { %v3427_v41 = vclamps-f32 %v2046_v27, 1.0  ;;  %v2084_v62 = vor.u32 1.1754944e-38, %v2083_v42  ;;  %v2061_v16 = vmul.f32 %v2060_v2, %v5177_v40  ;;  %vm2082_vm0 = vcmp.eq.f32.partialorder %v2081_v55, 8.507059e+37 }
 0x2bb   :  { %v2076_v18 = vadd.f32 %v3685_v21, %v2075_v51  ;;  %v1054_v48 = vmul.f32 %v1053_v63, %v5447_v52  ;;  %v1092_v7 = vmul.f32 %v1091_v61, %v5459_v3  ;;  %v1041_v6 = vmul.f32 %v1040_v49, %v5447_v52 }
 0x2bc   :  { %v2103_v20 = vadd.f32 1.0, %v3427_v41  ;;  %v1080_v19 = vadd.f32 0.05243302, %v1079_v34  ;;  %v1431_v29 = vmul.f32 0.5, %v5340_v47  ;;  %v5490_v46 = vadd.f32 %v2323_v30, %v2226_v24 }
 0x2bd   :  { %v2080_v45 = vsel %vm2079_vm15, %v3685_v21, %v2076_v18  ;;  %v1055_v36 = vadd.f32 1.0, %v1054_v48  ;;  %v1093_v60 = vadd.f32 0.4994258, %v1092_v7  ;;  %v1432_v40 = vmul.f32 0.5, %v5095_v23  ;;  %v2228_v21 = vpop.f32.mrf.mxu3 }
 0x2be   :  { %v2085_v12 = vsel %vm2082_vm0, %v2084_v62, %v2080_v45  ;;  %v1042_v44 = vadd.f32 0.18741608, %v1041_v6  ;;  %v2119_v11 = vmul.f32 %v2103_v20, %v1431_v29  ;;  %v1081_v4 = vmul.f32 %v1080_v19, %v5459_v3 }
 0x2bf   :  { %v2086_v14 = vmul.f32 %v2085_v12, %v2061_v16  ;;  %3686 = vrcp.f32 %v1055_v36  ;;  %v1094_v15 = vmul.f32 %v1093_v60, %v5459_v3  ;;  %v5495_v33 = vadd.f32 %v2325_v32, %v2228_v21 }
 0x2c0   :  { %v1043_v53 = vmul.f32 %v1042_v44, %v5447_v52  ;;  %v1082_v25 = vadd.f32 0.18741608, %v1081_v4  ;;  %v1067_v10 = vand.u32 2147483648, %v1055_v36  ;;  %v1065_v50 = vand.u32 2147483647, %v1055_v36  ;;  %v2328_v55 = vpop.f32.mrf.mxu1 }
 0x2c1   :  { %v3428_v22 = vclamps-f32 %v2086_v14, 1.0  ;;  %v1095_v59 = vadd.f32 1.0, %v1094_v15  ;;  %vm1061_vm2 = vweird.f32 %v1055_v36  ;;  %v455_v7 = vmul.f32 0.5, %v5419_v38 }
 0x2c2   :  { %v1044_v23 = vadd.f32 1.1283791, %v1043_v53  ;;  %v1083_v13 = vmul.f32 %v1082_v25, %v5459_v3  ;;  %v1068_v39 = vor.u32 1.1754944e-38, %v1067_v10  ;;  %vm1066_vm4 = vcmp.eq.f32.partialorder %v1065_v50, 8.507059e+37 }
 0x2c3   :  { %v2104_v9 = vadd.f32 1.0, %v3428_v22  ;;  %3688 = vrcp.f32 %v1095_v59  ;;  %v1107_v42 = vand.u32 2147483648, %v1095_v59  ;;  %v1105_v2 = vand.u32 2147483647, %v1095_v59 }
 0x2c4   :  { %v1045_v52 = vmul.f32 %v1044_v23, %v5432_v0  ;;  %v1084_v57 = vadd.f32 1.1283791, %v1083_v13  ;;  %vm1101_vm6 = vweird.f32 %v1095_v59 }
 0x2c5   :  { %v2120_v8 = vmul.f32 %v2104_v9, %v1432_v40  ;;  %v3687_v35 = vpop.eup %3686  ;;  %v2231_v51 = vpop.f32.mrf.mxu3  ;;  %v1108_v0 = vor.u32 1.1754944e-38, %v1107_v42  ;;  %vm1106_vm8 = vcmp.eq.f32.partialorder %v1105_v2, 8.507059e+37 }
 0x2c6   :  { %v1057_v47 = vmul.f32 %v3687_v35, %v1055_v36  ;;  %vm1062_vm1 = vweird.f32 %v3687_v35  ;;  %v2329_v3 = vadd.f32 %v2328_v55, %v2231_v51  ;;  %v1085_v41 = vmul.f32 %v1084_v57, %v5438_v28 }
 0x2c7   :  { %v2152_v31 = vpack.c.bf16 %v2120_v8, %v2119_v11  ;;  %vm1063_vm3 = vmor %vm1061_vm2, %vm1062_vm1  ;;  %v456_v36 = vmul.f32 0.5, %v5423_v37 }
 0x2c8   :  { %v1058_v5 = vsub.f32 1.0, %v1057_v47  ;;  %v2330_v12 = vpop.f32.mrf.mxu1 }
 0x2c9   :  { %2260 = vmatmul.bf16.gmra.mxu3 %v2152_v31  ;;  %v3689_v1 = vpop.eup %3688  ;;  %v5505_v31 = vld [vmem:[%s6490_s8] ss:$0 sm:$0xff] }
 0x2ca   :  { %v1059_v56 = vmul.f32 %v3687_v35, %v1058_v5  ;;  %v1097_v43 = vmul.f32 %v3689_v1, %v1095_v59  ;;  %vm1102_vm5 = vweird.f32 %v3689_v1  ;;  %v5509_v47 = vadd.f32 %v5505_v31, %v5495_v33 }
 0x2cb   :  { %vm1103_vm7 = vmor %vm1101_vm6, %vm1102_vm5  ;;  %v5513_v21 = vadd.f32 %v5505_v31, %v5490_v46  ;;  %v5516_v32 = vadd.f32 %v5505_v31, %v2329_v3 }
 0x2cc   :  { %v1060_v58 = vadd.f32 %v3687_v35, %v1059_v56  ;;  %v1098_v27 = vsub.f32 1.0, %v1097_v43  ;;  %v2406_v23 = vmul.f32 %v5509_v47, %v5509_v47 }
 0x2cd   :  { %v2233_v45 = vpop.f32.mrf.mxu3  ;;  %v2405_v33 = vmul.f32 %v5513_v21, %v5513_v21  ;;  %v2407_v56 = vmul.f32 %v5516_v32, %v5516_v32  ;;  %v2383_v13 = vadd.f32 %v5509_v47, %v5513_v21 }
 0x2ce   :  { %v1064_v54 = vsel %vm1063_vm3, %v3687_v35, %v1060_v58  ;;  %v1099_v17 = vmul.f32 %v3689_v1, %v1098_v27  ;;  %v2331_v6 = vadd.f32 %v2330_v12, %v2233_v45 }
 0x2cf   :  { %v1069_v26 = vsel %vm1066_vm4, %v1068_v39, %v1064_v54  ;;  %v2421_v43 = vadd.f32 %v2406_v23, %v2405_v33  ;;  %v2384_v27 = vadd.f32 %v2383_v13, %v5516_v32 }
 0x2d0   :  { %v1070_v49 = vmul.f32 %v1069_v26, %v1045_v52  ;;  %v1100_v63 = vadd.f32 %v3689_v1, %v1099_v17  ;;  %v2333_v28 = vpop.f32.mrf.mxu1  ;;  %v5521_v10 = vadd.f32 %v5505_v31, %v2331_v6 }
 0x2d1   :  { %v2422_v54 = vadd.f32 %v2421_v43, %v2407_v56 }
 0x2d2   :  { %v3355_v61 = vclamps-f32 %v1070_v49, 1.0  ;;  %v1104_v18 = vsel %vm1103_vm7, %v3689_v1, %v1100_v63  ;;  %v2408_v58 = vmul.f32 %v5521_v10, %v5521_v10  ;;  %v2385_v2 = vadd.f32 %v2384_v27, %v5521_v10 }
 0x2d3   :  { %v1109_v34 = vsel %vm1106_vm8, %v1108_v0, %v1104_v18 }
 0x2d4   :  { %v1110_v62 = vmul.f32 %v1109_v34, %v1085_v41  ;;  %v1127_v48 = vadd.f32 1.0, %v3355_v61  ;;  %v2423_v51 = vadd.f32 %v2422_v54, %v2408_v58 }
 0x2d5   :  { %v2236_v24 = vpop.f32.mrf.mxu3 }
 0x2d6   :  { %v3356_v16 = vclamps-f32 %v1110_v62, 1.0  ;;  %v1143_v14 = vmul.f32 %v1127_v48, %v455_v7  ;;  %v2334_v30 = vadd.f32 %v2333_v28, %v2236_v24 }
 0x2d8   :  { %v1128_v60 = vadd.f32 1.0, %v3356_v16  ;;  %v2335_v22 = vpop.f32.mrf.mxu1  ;;  %v5528_v46 = vadd.f32 %v5505_v31, %v2334_v30 }
 0x2da   :  { %v1144_v20 = vmul.f32 %v1128_v60, %v456_v36  ;;  %v2409_v57 = vmul.f32 %v5528_v46, %v5528_v46  ;;  %v2386_v63 = vadd.f32 %v2385_v2, %v5528_v46 }
 0x2dc   :  { %v2128_v19 = vpack.c.bf16 %v1144_v20, %v1143_v14  ;;  %v2424_v0 = vadd.f32 %v2423_v51, %v2409_v57 }
 0x2dd   :  { %v2238_v29 = vpop.f32.mrf.mxu3 }
 0x2de   :  { %2357 = vmatmul.bf16.gmra.mxu1 %v2128_v19  ;;  %v2336_v1 = vadd.f32 %v2335_v22, %v2238_v29 }
 0x2e0   :  { %v2338_v40 = vpop.f32.mrf.mxu1  ;;  %v5535_v52 = vadd.f32 %v5505_v31, %v2336_v1 }
 0x2e2   :  { %v2410_v55 = vmul.f32 %v5535_v52, %v5535_v52  ;;  %v2387_v34 = vadd.f32 %v2386_v63, %v5535_v52 }
 0x2e4   :  { %v2425_v48 = vadd.f32 %v2424_v0, %v2410_v55 }
 0x2e5   :  { %v2241_v15 = vpop.f32.mrf.mxu3 }
 0x2e6   :  { %v2339_v50 = vadd.f32 %v2338_v40, %v2241_v15 }
 0x2e8   :  { %v2340_v38 = vpop.f32.mrf.mxu1  ;;  %v5541_v42 = vadd.f32 %v5505_v31, %v2339_v50 }
 0x2ea   :  { %v2411_v41 = vmul.f32 %v5541_v42, %v5541_v42  ;;  %v2388_v16 = vadd.f32 %v2387_v34, %v5541_v42 }
 0x2ec   :  { %v2426_v6 = vadd.f32 %v2425_v48, %v2411_v41 }
 0x2ed   :  { %v2243_v44 = vpop.f32.mrf.mxu3 }
 0x2ee   :  { %v2341_v39 = vadd.f32 %v2340_v38, %v2243_v44 }
 0x2f0   :  { %v2343_v11 = vpop.f32.mrf.mxu1  ;;  %v5547_v49 = vadd.f32 %v5505_v31, %v2341_v39 }
 0x2f2   :  { %v2412_v7 = vmul.f32 %v5547_v49, %v5547_v49  ;;  %v2389_v60 = vadd.f32 %v2388_v16, %v5547_v49 }
 0x2f4   :  { %v2427_v19 = vadd.f32 %v2426_v6, %v2412_v7 }
 0x2f5   :  { %v2246_v9 = vpop.f32.mrf.mxu3 }
 0x2f6   :  { %v2344_v26 = vadd.f32 %v2343_v11, %v2246_v9 }
 0x2f8   :  { %v2345_v59 = vpop.f32.mrf.mxu1  ;;  %v5553_v18 = vadd.f32 %v5505_v31, %v2344_v26 }
 0x2fa   :  { %v2413_v36 = vmul.f32 %v5553_v18, %v5553_v18  ;;  %v2390_v28 = vadd.f32 %v2389_v60, %v5553_v18 }
 0x2fc   :  { %v2428_v15 = vadd.f32 %v2427_v19, %v2413_v36 }
 0x2fd   :  { %v2248_v4 = vpop.f32.mrf.mxu3 }
 0x2fe   :  { %v2346_v61 = vadd.f32 %v2345_v59, %v2248_v4 }
 0x300   :  { %v5560_v45 = vadd.f32 %v5505_v31, %v2346_v61 }
 0x302   :  { %v2414_v30 = vmul.f32 %v5560_v45, %v5560_v45  ;;  %v2391_v44 = vadd.f32 %v2390_v28, %v5560_v45 }
 0x304   :  { %v2429_v4 = vadd.f32 %v2428_v15, %v2414_v30 }
 0x305   :  { %v2251_v8 = vpop.f32.mrf.mxu3 }
 0x306   :  { %v2348_v37 = vpop.f32.mrf.mxu1 }
 0x307   :  { %v2349_v62 = vadd.f32 %v2348_v37, %v2251_v8 }
 0x309   :  { %v5566_v14 = vadd.f32 %v5505_v31, %v2349_v62 }
 0x30b   :  { %v2415_v38 = vmul.f32 %v5566_v14, %v5566_v14  ;;  %v2392_v59 = vadd.f32 %v2391_v44, %v5566_v14 }
 0x30d   :  { %v2253_v35 = vpop.f32.mrf.mxu3 }
 0x30e   :  { %v2350_v53 = vpop.f32.mrf.mxu1 }
 0x30f   :  { %v2351_v12 = vadd.f32 %v2350_v53, %v2253_v35  ;;  %v2430_v35 = vadd.f32 %v2429_v4, %v2415_v38 }
 0x311   :  { %v5572_v29 = vadd.f32 %v5505_v31, %v2351_v12 }
 0x313   :  { %v2416_v8 = vmul.f32 %v5572_v29, %v5572_v29  ;;  %v2393_v53 = vadd.f32 %v2392_v59, %v5572_v29 }
 0x315   :  { %v2431_v23 = vadd.f32 %v2430_v35, %v2416_v8 }
 0x323   :  { %v2256_v25 = vpop.f32.mrf.mxu3 }
 0x32b   :  { %v2258_v17 = vpop.f32.mrf.mxu3 }
 0x332   :  { %v2353_v5 = vpop.f32.mrf.mxu1 }
 0x333   :  { %v2354_v20 = vadd.f32 %v2353_v5, %v2256_v25 }
 0x335   :  { %v5578_v9 = vadd.f32 %v5505_v31, %v2354_v20 }
 0x337   :  { %v2417_v25 = vmul.f32 %v5578_v9, %v5578_v9  ;;  %v2394_v1 = vadd.f32 %v2393_v53, %v5578_v9 }
 0x339   :  { %v2432_v13 = vadd.f32 %v2431_v23, %v2417_v25 }
 0x33a   :  { %v2355_v3 = vpop.f32.mrf.mxu1 }
 0x33b   :  { %v2356_v22 = vadd.f32 %v2355_v3, %v2258_v17 }
 0x33d   :  { %v5584_v37 = vadd.f32 %v5505_v31, %v2356_v22 }
 0x33f   :  { %v2418_v33 = vmul.f32 %v5584_v37, %v5584_v37  ;;  %v2395_v43 = vadd.f32 %v2394_v1, %v5584_v37 }
 0x341   :  { %v2433_v27 = vadd.f32 %v2432_v13, %v2418_v33 }
 0x34c   :  { %v2261_v24 = vpop.f32.mrf.mxu3 }
 0x354   :  { %v2263_v56 = vpop.f32.mrf.mxu3 }
 0x35b   :  { %v2358_v40 = vpop.f32.mrf.mxu1 }
 0x35c   :  { %v2359_v11 = vadd.f32 %v2358_v40, %v2261_v24 }
 0x35e   :  { %v2381_v5 = vadd.f32 %v5505_v31, %v2359_v11 }
 0x360   :  { %v2419_v58 = vmul.f32 %v2381_v5, %v2381_v5  ;;  %v2396_v54 = vadd.f32 %v2395_v43, %v2381_v5 }
 0x362   :  { %v2434_v26 = vadd.f32 %v2433_v27, %v2419_v58 }
 0x363   :  { %v2360_v50 = vpop.f32.mrf.mxu1 }
 0x364   :  { %v2361_v39 = vadd.f32 %v2360_v50, %v2263_v56 }
 0x366   :  { %v5595_v57 = vadd.f32 %v5505_v31, %v2361_v39  ;;  %v6581_v31 = vld [vmem:[#allocation15_spill] sm:$0xff] }
 0x368   :  { %v2397_v17 = vadd.f32 %v2396_v54, %v5595_v57  ;;  %v2420_v2 = vmul.f32 %v5595_v57, %v5595_v57 }
 0x36a   :  { %v2398_v51 = vrot.slane %v2397_v17, 4  ;;  %v2435_v55 = vadd.f32 %v2434_v26, %v2420_v2 }
 0x36c   :  { %v2399_v3 = vadd.f32 %v2398_v51, %v2397_v17  ;;  %v2436_v63 = vrot.slane %v2435_v55, 4 }
 0x36e   :  { %v2400_v61 = vrot.slane %v2399_v3, 2  ;;  %v2437_v0 = vadd.f32 %v2436_v63, %v2435_v55 }
 0x370   :  { %v2401_v41 = vadd.f32 %v2400_v61, %v2399_v3  ;;  %v2438_v34 = vrot.slane %v2437_v0, 2 }
 0x372   :  { %v2402_v62 = vrot.slane %v2401_v41, 1  ;;  %v2439_v48 = vadd.f32 %v2438_v34, %v2437_v0 }
 0x374   :  { %v2403_v7 = vadd.f32 %v2402_v62, %v2401_v41  ;;  %v2440_v16 = vrot.slane %v2439_v48, 1 }
 0x376   :  { %v5601_v12 = vmul.f32 %v2403_v7, %v6581_v31  ;;  %v2441_v6 = vadd.f32 %v2440_v16, %v2439_v48 }
 0x378   :  { %v2442_v36 = vmul.f32 %v2441_v6, %v6581_v31  ;;  %v2443_v60 = vmul.f32 %v5601_v12, %v5601_v12  ;;  %v2450_v20 = vsub.f32 %v5528_v46, %v5601_v12  ;;  %v2460_v28 = vsub.f32 %v2381_v5, %v5601_v12 }
 0x379   :  { %v2446_v46 = vsub.f32 %v5513_v21, %v5601_v12  ;;  %v2447_v5 = vsub.f32 %v5509_v47, %v5601_v12  ;;  %v2448_v43 = vsub.f32 %v5516_v32, %v5601_v12  ;;  %v2449_v61 = vsub.f32 %v5521_v10, %v5601_v12 }
 0x37a   :  { %v2444_v19 = vsub.f32 %v2442_v36, %v2443_v60  ;;  %v2451_v10 = vsub.f32 %v5535_v52, %v5601_v12  ;;  %v2456_v52 = vsub.f32 %v5566_v14, %v5601_v12 }
 0x37c   :  { %v2445_v24 = vmax.f32 %v2444_v19, 0.0 }
 0x37e   :  { %v2462_v30 = vadd.f32 1e-05, %v2445_v24  ;;  %v2452_v24 = vsub.f32 %v5541_v42, %v5601_v12  ;;  %v2457_v42 = vsub.f32 %v5572_v29, %v5601_v12 }
 0x380   :  { %3690 = vrsqrt.f32 %v2462_v30  ;;  %vm2469_vm10 = vweird.f32 %v2462_v30 }
 0x386   :  { %v3691_v22 = vpop.eup %3690 }
 0x387   :  { %v2464_v15 = vmul.f32 %v3691_v22, %v2462_v30  ;;  %vm2470_vm9 = vweird.f32 %v3691_v22 }
 0x388   :  { %vm2471_vm11 = vmor %vm2469_vm10, %vm2470_vm9 }
 0x389   :  { %v2465_v40 = vmul.f32 %v3691_v22, %v2464_v15  ;;  %v2454_v15 = vsub.f32 %v5553_v18, %v5601_v12  ;;  %v2459_v18 = vsub.f32 %v5584_v37, %v5601_v12 }
 0x38b   :  { %v2466_v44 = vmul.f32 0.5, %v2465_v40  ;;  %v2455_v40 = vsub.f32 %v5560_v45, %v5601_v12 }
 0x38d   :  { %v2467_v38 = vsub.f32 1.5, %v2466_v44 }
 0x38f   :  { %v2468_v11 = vmul.f32 %v3691_v22, %v2467_v38 }
 0x391   :  { %v5609_v4 = vsel %vm2471_vm11, %v3691_v22, %v2468_v11 }
 0x392   :  { %v5612_v59 = vmul.f32 %v5609_v4, %v2450_v20  ;;  %v5617_v8 = vmul.f32 %v5609_v4, %v2460_v28  ;;  %v5620_v35 = vmul.f32 %v5609_v4, %v2446_v46  ;;  %v5632_v1 = vmul.f32 %v5609_v4, %v2447_v5 }
 0x393   :  { %v5646_v58 = vmul.f32 %v5609_v4, %v2448_v43  ;;  %v2476_v34 = vmul.f32 %v5609_v4, %v2449_v61  ;;  %v2453_v28 = vsub.f32 %v5547_v49, %v5601_v12  ;;  %v2458_v49 = vsub.f32 %v5578_v9, %v5601_v12 }
 0x394   :  { %6582 = vst [vmem:[#allocation2_spill] sm:$0xff] %v5617_v8  ;;  %v5623_v53 = vmul.f32 0.70710677, %v5620_v35  ;;  %v5636_v56 = vmul.f32 0.70710677, %v5632_v1  ;;  %v5705_v37 = vmul.f32 %v5609_v4, %v2454_v15 }
 0x395   :  { %v5650_v26 = vmul.f32 0.70710677, %v5646_v58  ;;  %v5667_v36 = vmul.f32 0.70710677, %v2476_v34  ;;  %v5722_v61 = vmul.f32 %v5609_v4, %v2458_v49 }
 0x396   :  { %v2521_v25 = vmul.f32 %v5623_v53, %v5623_v53  ;;  %v2561_v13 = vmul.f32 %v5636_v56, %v5636_v56 }
 0x397   :  { %v2601_v32 = vmul.f32 %v5650_v26, %v5650_v26  ;;  %v2641_v11 = vmul.f32 %v5667_v36, %v5667_v36 }
 0x398   :  { %v5629_v23 = vmin.f32 %v2521_v25, 16.0  ;;  %v5643_v47 = vmin.f32 %v2561_v13, 16.0  ;;  %v2461_v25 = vsub.f32 %v5595_v57, %v5601_v12 }
 0x399   :  { %v5656_v3 = vmin.f32 %v2601_v32, 16.0  ;;  %v5699_v9 = vmin.f32 %v2641_v11, 16.0 }
 0x39a   :  { %v2534_v21 = vmul.f32 3.8918573e-05, %v5629_v23  ;;  %v2574_v27 = vmul.f32 3.8918573e-05, %v5643_v47  ;;  %v2523_v62 = vmul.f32 2.1237322e-06, %v5629_v23 }
 0x39b   :  { %v2614_v41 = vmul.f32 3.8918573e-05, %v5656_v3  ;;  %v2563_v16 = vmul.f32 2.1237322e-06, %v5643_v47  ;;  %v2603_v38 = vmul.f32 2.1237322e-06, %v5656_v3 }
 0x39c   :  { %v2535_v33 = vadd.f32 0.001143296, %v2534_v21  ;;  %v2575_v54 = vadd.f32 0.001143296, %v2574_v27  ;;  %v2524_v60 = vadd.f32 0.00028619796, %v2523_v62  ;;  %v2478_v21 = vmul.f32 %v5609_v4, %v2451_v10 }
 0x39d   :  { %v2615_v7 = vadd.f32 0.001143296, %v2614_v41  ;;  %v2564_v30 = vadd.f32 0.00028619796, %v2563_v16  ;;  %v2604_v13 = vadd.f32 0.00028619796, %v2603_v38 }
 0x39e   :  { %v2536_v50 = vmul.f32 %v2535_v33, %v5629_v23  ;;  %v2576_v2 = vmul.f32 %v2575_v54, %v5643_v47  ;;  %v2525_v45 = vmul.f32 %v2524_v60, %v5629_v23  ;;  %v2479_v33 = vmul.f32 %v5609_v4, %v2452_v24 }
 0x39f   :  { %v2616_v6 = vmul.f32 %v2615_v7, %v5656_v3  ;;  %v2565_v29 = vmul.f32 %v2564_v30, %v5643_v47  ;;  %v2654_v27 = vmul.f32 3.8918573e-05, %v5699_v9  ;;  %v5711_v54 = vmul.f32 %v5609_v4, %v2455_v40 }
 0x3a0   :  { %v2537_v39 = vadd.f32 0.014752088, %v2536_v50  ;;  %v2577_v55 = vadd.f32 0.014752088, %v2576_v2  ;;  %v2480_v50 = vmul.f32 %v5609_v4, %v2453_v28  ;;  %v2526_v2 = vadd.f32 0.0036580483, %v2525_v45 }
 0x3a1   :  { %v2617_v19 = vadd.f32 0.014752088, %v2616_v6  ;;  %v2566_v32 = vadd.f32 0.0036580483, %v2565_v29  ;;  %v5728_v41 = vmul.f32 0.5, %v5620_v35  ;;  %v5731_v62 = vmul.f32 0.5, %v5632_v1 }
 0x3a2   :  { %v2538_v17 = vmul.f32 %v2537_v39, %v5629_v23  ;;  %v2578_v0 = vmul.f32 %v2577_v55, %v5643_v47  ;;  %v2643_v39 = vmul.f32 2.1237322e-06, %v5699_v9  ;;  %v5736_v6 = vmul.f32 0.5, %v5646_v58 }
 0x3a3   :  { %v2618_v44 = vmul.f32 %v2617_v19, %v5656_v3  ;;  %v5738_v10 = vmul.f32 0.5, %v2476_v34  ;;  %v5741_v60 = vmul.f32 0.70710677, %v5612_v59  ;;  %v2527_v35 = vmul.f32 %v2526_v2, %v5629_v23 }
 0x3a4   :  { %v2539_v51 = vadd.f32 0.112945676, %v2538_v17  ;;  %v2579_v31 = vadd.f32 0.112945676, %v2578_v0  ;;  %v5714_v17 = vmul.f32 %v5609_v4, %v2456_v52  ;;  %v5725_v0 = vmul.f32 %v5609_v4, %v2459_v18 }
 0x3a5   :  { %v2619_v14 = vadd.f32 0.112945676, %v2618_v44  ;;  %v2644_v16 = vadd.f32 0.00028619796, %v2643_v39  ;;  %v2567_v1 = vmul.f32 %v2566_v32, %v5643_v47  ;;  %v5752_v30 = vmul.f32 0.5, %v2478_v21 }
 0x3a6   :  { %v2540_v63 = vmul.f32 %v2539_v51, %v5629_v23  ;;  %v2580_v22 = vmul.f32 %v2579_v31, %v5643_v47  ;;  %v5718_v51 = vmul.f32 %v5609_v4, %v2457_v42  ;;  %v5754_v58 = vmul.f32 0.5, %v2479_v33 }
 0x3a7   :  { %v2620_v43 = vmul.f32 %v2619_v14, %v5656_v3  ;;  %v5756_v34 = vmul.f32 0.5, %v2480_v50  ;;  %v2645_v40 = vmul.f32 %v2644_v16, %v5699_v9  ;;  %v5765_v44 = vmul.f32 0.5, %v5711_v54 }
 0x3a8   :  { %v2541_v48 = vadd.f32 0.4994258, %v2540_v63  ;;  %v2581_v5 = vadd.f32 0.4994258, %v2580_v22  ;;  %v2655_v63 = vadd.f32 0.001143296, %v2654_v27  ;;  %v2681_v38 = vmul.f32 %v5741_v60, %v5741_v60 }
 0x3a9   :  { %v2621_v7 = vadd.f32 0.4994258, %v2620_v43  ;;  %v5759_v22 = vmul.f32 0.5, %v5705_v37  ;;  %v5768_v42 = vmul.f32 0.5, %v5714_v17  ;;  %v2528_v49 = vadd.f32 0.05243302, %v2527_v35 }
 0x3aa   :  { %v2542_v20 = vmul.f32 %v2541_v48, %v5629_v23  ;;  %v2582_v55 = vmul.f32 %v2581_v5, %v5643_v47  ;;  %v2605_v48 = vmul.f32 %v2604_v13, %v5656_v3  ;;  %v2656_v31 = vmul.f32 %v2655_v63, %v5699_v9 }
 0x3ab   :  { %v5773_v11 = vmul.f32 0.5, %v5718_v51  ;;  %v2568_v45 = vadd.f32 0.05243302, %v2567_v1  ;;  %v5779_v14 = vmul.f32 0.5, %v5722_v61  ;;  %v5782_v29 = vmul.f32 0.5, %v5725_v0 }
 0x3ac   :  { %v5694_v46 = vadd.f32 1.0, %v2542_v20  ;;  %v5745_v20 = vmul.f32 0.5, %v5612_v59  ;;  %v5748_v19 = vadd.f32 1.0, %v2582_v55  ;;  %v2657_v24 = vadd.f32 0.014752088, %v2656_v31 }
 0x3ad   :  { %v2606_v15 = vadd.f32 0.0036580483, %v2605_v48  ;;  %v2622_v59 = vmul.f32 %v2621_v7, %v5656_v3  ;;  %6583 = vst [vmem:[#allocation5_spill] sm:$0xff] %v5779_v14  ;;  %v5784_v13 = vmin.f32 %v2681_v38, 16.0  ;;  %v5786_v43 = vmul.f32 0.70710677, %v2478_v21 }
 0x3ae   :  { %3692 = vrcp.f32 %v5694_v46  ;;  %v2658_v52 = vmul.f32 %v2657_v24, %v5699_v9  ;;  %6584 = vst [vmem:[#allocation6_spill] sm:$0xff] %v5782_v29  ;;  %v2646_v2 = vadd.f32 0.0036580483, %v2645_v40  ;;  %v2529_v32 = vmul.f32 %v2528_v49, %v5629_v23 }
 0x3af   :  { %3694 = vrcp.f32 %v5748_v19  ;;  %v2607_v39 = vmul.f32 %v2606_v15, %v5656_v3  ;;  %v5789_v27 = vadd.f32 1.0, %v2622_v59  ;;  %v2683_v63 = vmul.f32 2.1237322e-06, %v5784_v13 }
 0x3b0   :  { %v2659_v5 = vadd.f32 0.112945676, %v2658_v52  ;;  %v2694_v48 = vmul.f32 3.8918573e-05, %v5784_v13  ;;  %v5795_v7 = vmul.f32 0.70710677, %v2479_v33  ;;  %v2569_v21 = vmul.f32 %v2568_v45, %v5643_v47 }
 0x3b1   :  { %v5797_v16 = vmul.f32 0.70710677, %v2480_v50  ;;  %v5804_v35 = vmul.f32 %v5609_v4, %v2461_v25  ;;  %v2684_v24 = vadd.f32 0.00028619796, %v2683_v63  ;;  %v5809_v40 = vmul.f32 0.70710677, %v5705_v37 }
 0x3b2   :  { %v2660_v55 = vmul.f32 %v2659_v5, %v5699_v9  ;;  %v2695_v15 = vadd.f32 0.001143296, %v2694_v48  ;;  %v2608_v33 = vadd.f32 0.05243302, %v2607_v39  ;;  %3696 = vrcp.f32 %v5789_v27 }
 0x3b3   :  { %6585 = vst [vmem:[#allocation10_spill] sm:$0xff] %v5804_v35  ;;  %v2647_v50 = vmul.f32 %v2646_v2, %v5699_v9  ;;  %v5814_v52 = vmul.f32 0.70710677, %v5711_v54  ;;  %v2530_v57 = vadd.f32 0.18741608, %v2529_v32  ;;  %v2685_v45 = vmul.f32 %v2684_v24, %v5784_v13 }
 0x3b4   :  { %v5750_v28 = vpop.eup %3692  ;;  %v2661_v1 = vadd.f32 0.4994258, %v2660_v55  ;;  %v2696_v4 = vmul.f32 %v2695_v15, %v5784_v13  ;;  %v5819_v25 = vmul.f32 0.70710677, %v5714_v17  ;;  %v5822_v49 = vmul.f32 0.70710677, %v5718_v51 }
 0x3b5   :  { %v2545_v18 = vmul.f32 %v5750_v28, %v5694_v46  ;;  %v5806_v59 = vpop.eup %3694  ;;  %v2570_v38 = vadd.f32 0.18741608, %v2569_v21  ;;  %v5832_v39 = vmul.f32 0.70710677, %v5725_v0  ;;  %v5835_v17 = vmul.f32 0.70710677, %v5617_v8 }
 0x3b6   :  { %v2662_v12 = vmul.f32 %v2661_v1, %v5699_v9  ;;  %v2585_v54 = vmul.f32 %v5806_v59, %v5748_v19  ;;  %v2697_v5 = vadd.f32 0.014752088, %v2696_v4  ;;  %v2609_v51 = vmul.f32 %v2608_v33, %v5656_v3 }
 0x3b7   :  { %v2546_v31 = vsub.f32 1.0, %v2545_v18  ;;  %v5826_v18 = vmul.f32 0.70710677, %v5722_v61  ;;  %v2648_v2 = vadd.f32 0.05243302, %v2647_v50  ;;  %v2531_v32 = vmul.f32 %v2530_v57, %v5629_v23 }
 0x3b8   :  { %vm2549_vm12 = vweird.f32 %v5694_v46  ;;  %vm2550_vm13 = vweird.f32 %v5750_v28  ;;  %v5841_v61 = vadd.f32 1.0, %v2662_v12  ;;  %v5843_v55 = vpop.eup %3696  ;;  %v2571_v0 = vmul.f32 %v2570_v38, %v5643_v47 }
 0x3b9   :  { %v2547_v37 = vmul.f32 %v5750_v28, %v2546_v31  ;;  %v2698_v48 = vmul.f32 %v2697_v5, %v5784_v13  ;;  %v2721_v31 = vmul.f32 %v5786_v43, %v5786_v43  ;;  %v2553_v21 = vand.u32 2147483647, %v5694_v46  ;;  %vm5862_vm14 = vmor %vm2549_vm12, %vm2550_vm13 }
 0x3ba   :  { %v2555_v23 = vand.u32 2147483648, %v5694_v46  ;;  %v2586_v1 = vsub.f32 1.0, %v2585_v54  ;;  %v2686_v24 = vadd.f32 0.0036580483, %v2685_v45  ;;  %v2610_v15 = vadd.f32 0.18741608, %v2609_v51 }
 0x3bb   :  { %v2548_v63 = vadd.f32 %v5750_v28, %v2547_v37  ;;  %v2649_v33 = vmul.f32 %v2648_v2, %v5699_v9  ;;  %v2699_v50 = vadd.f32 0.112945676, %v2698_v48  ;;  %v5853_v57 = vmin.f32 %v2721_v31, 16.0 }
 0x3bc   :  { %v5856_v12 = vmul.f32 0.70710677, %v5804_v35  ;;  %v2532_v47 = vadd.f32 1.1283791, %v2531_v32  ;;  %v2625_v37 = vmul.f32 %v5843_v55, %v5789_v27  ;;  %3698 = vrcp.f32 %v5841_v61 }
 0x3bd   :  { %v2552_v38 = vsel %vm5862_vm14, %v5750_v28, %v2548_v63  ;;  %v2572_v54 = vadd.f32 1.1283791, %v2571_v0  ;;  %v2700_v45 = vmul.f32 %v2699_v50, %v5784_v13  ;;  %v2723_v5 = vmul.f32 2.1237322e-06, %v5853_v57 }
 0x3be   :  { %v2556_v51 = vor.u32 1.1754944e-38, %v2555_v23  ;;  %v2587_v46 = vmul.f32 %v5806_v59, %v2586_v1  ;;  %v2687_v2 = vmul.f32 %v2686_v24, %v5784_v13  ;;  %v2734_v32 = vmul.f32 3.8918573e-05, %v5853_v57 }
 0x3bf   :  { %vm2554_vm15 = vcmp.eq.f32.partialorder %v2553_v21, 8.507059e+37  ;;  %v2611_v48 = vmul.f32 %v2610_v15, %v5656_v3  ;;  %v2650_v31 = vadd.f32 0.18741608, %v2649_v33  ;;  %v2701_v35 = vadd.f32 0.4994258, %v2700_v45 }
 0x3c0   :  { %v2557_v8 = vsel %vm2554_vm15, %v2556_v51, %v2552_v38  ;;  %v2626_v4 = vsub.f32 1.0, %v2625_v37  ;;  %v2724_v28 = vadd.f32 0.00028619796, %v2723_v5  ;;  %v2735_v63 = vadd.f32 0.001143296, %v2734_v32 }
 0x3c1   :  { %v2533_v0 = vmul.f32 %v2532_v47, %v5623_v53  ;;  %v2573_v50 = vmul.f32 %v2572_v54, %v5636_v56  ;;  %v2593_v23 = vand.u32 2147483647, %v5748_v19  ;;  %v2595_v1 = vand.u32 2147483648, %v5748_v19 }
 0x3c2   :  { %v5882_v24 = vpop.eup %3698  ;;  %v2588_v21 = vadd.f32 %v5806_v59, %v2587_v46  ;;  %vm2590_vm0 = vweird.f32 %v5806_v59  ;;  %v2688_v3 = vadd.f32 0.05243302, %v2687_v2  ;;  %v2736_v15 = vmul.f32 %v2735_v63, %v5853_v57 }
 0x3c3   :  { %v5887_v33 = vmul.f32 %v2557_v8, %v2533_v0  ;;  %vm2589_vm1 = vweird.f32 %v5748_v19  ;;  %v2612_v53 = vadd.f32 1.1283791, %v2611_v48  ;;  %v2702_v56 = vmul.f32 %v2701_v35, %v5784_v13 }
 0x3c4   :  { %v2627_v47 = vmul.f32 %v5843_v55, %v2626_v4  ;;  %v2651_v37 = vmul.f32 %v2650_v31, %v5699_v9  ;;  %v2725_v38 = vmul.f32 %v2724_v28, %v5853_v57  ;;  %v2737_v54 = vadd.f32 0.014752088, %v2736_v15  ;;  %vm5894_vm2 = vmor %vm2589_vm1, %vm2590_vm0 }
 0x3c5   :  { %vm5898_vm3 = vcmp.eq.f32.partialorder %v2593_v23, 8.507059e+37  ;;  %v2596_v8 = vor.u32 1.1754944e-38, %v2595_v1  ;;  %v2633_v19 = vand.u32 2147483647, %v5789_v27  ;;  %v2665_v35 = vmul.f32 %v5882_v24, %v5841_v61 }
 0x3c6   :  { %v2592_v9 = vsel %vm5894_vm2, %v5806_v59, %v2588_v21  ;;  %v2635_v51 = vand.u32 2147483648, %v5789_v27  ;;  %v2689_v46 = vmul.f32 %v2688_v3, %v5784_v13  ;;  %v2738_v2 = vmul.f32 %v2737_v54, %v5853_v57 }
 0x3c7   :  { %v2613_v48 = vmul.f32 %v2612_v53, %v5650_v26  ;;  %v5913_v31 = vadd.f32 1.0, %v2702_v56  ;;  %v2761_v4 = vmul.f32 %v5795_v7, %v5795_v7  ;;  %v2628_v28 = vadd.f32 %v5843_v55, %v2627_v47 }
 0x3c8   :  { %vm2630_vm4 = vweird.f32 %v5843_v55  ;;  %v2652_v59 = vadd.f32 1.1283791, %v2651_v37  ;;  %v2726_v63 = vadd.f32 0.0036580483, %v2725_v38  ;;  %v2597_v0 = vsel %vm5898_vm3, %v2596_v8, %v2592_v9 }
 0x3c9   :  { %v2666_v23 = vsub.f32 1.0, %v2665_v35  ;;  %v2739_v1 = vadd.f32 0.112945676, %v2738_v2  ;;  %v5921_v21 = vmin.f32 %v2761_v4, 16.0  ;;  %vm2629_vm5 = vweird.f32 %v5789_v27 }
 0x3ca   :  { %vm5924_vm6 = vcmp.eq.f32.partialorder %v2633_v19, 8.507059e+37  ;;  %v2636_v3 = vor.u32 1.1754944e-38, %v2635_v51  ;;  %v2690_v15 = vadd.f32 0.18741608, %v2689_v46  ;;  %vm5928_vm7 = vmor %vm2629_vm5, %vm2630_vm4  ;;  %3700 = vrcp.f32 %v5913_v31 }
 0x3cb   :  { %v2740_v56 = vmul.f32 %v2739_v1, %v5853_v57  ;;  %v2763_v47 = vmul.f32 2.1237322e-06, %v5921_v21  ;;  %v2774_v37 = vmul.f32 3.8918573e-05, %v5921_v21  ;;  %v5936_v38 = vmul.f32 %v2597_v0, %v2573_v50 }
 0x3cc   :  { %v2632_v27 = vsel %vm5928_vm7, %v5843_v55, %v2628_v28  ;;  %v5942_v54 = vmul.f32 %v2652_v59, %v5667_v36  ;;  %v2727_v45 = vmul.f32 %v2726_v63, %v5853_v57  ;;  %v2667_v5 = vmul.f32 %v5882_v24, %v2666_v23 }
 0x3cd   :  { %v2741_v8 = vadd.f32 0.4994258, %v2740_v56  ;;  %v2764_v19 = vadd.f32 0.00028619796, %v2763_v47  ;;  %v2775_v35 = vadd.f32 0.001143296, %v2774_v37  ;;  %vm2669_vm8 = vweird.f32 %v5841_v61 }
 0x3ce   :  { %v2673_v9 = vand.u32 2147483647, %v5841_v61  ;;  %v2675_v50 = vand.u32 2147483648, %v5841_v61  ;;  %v2691_v51 = vmul.f32 %v2690_v15, %v5784_v13  ;;  %v2801_v2 = vmul.f32 %v5797_v16, %v5797_v16 }
 0x3cf   :  { %v2742_v55 = vmul.f32 %v2741_v8, %v5853_v57  ;;  %v2765_v36 = vmul.f32 %v2764_v19, %v5921_v21  ;;  %v2776_v46 = vmul.f32 %v2775_v35, %v5921_v21  ;;  %v2637_v4 = vsel %vm5924_vm6, %v2636_v3, %v2632_v27 }
 0x3d0   :  { %vm2670_vm9 = vweird.f32 %v5882_v24  ;;  %v2728_v28 = vadd.f32 0.05243302, %v2727_v45  ;;  %v2841_v59 = vmul.f32 %v5809_v40, %v5809_v40  ;;  %v5960_v63 = vpop.eup %3700  ;;  %v2668_v13 = vadd.f32 %v5882_v24, %v2667_v5 }
 0x3d1   :  { %v5963_v0 = vadd.f32 1.0, %v2742_v55  ;;  %v2777_v23 = vadd.f32 0.014752088, %v2776_v46  ;;  %v5965_v1 = vmin.f32 %v2801_v2, 16.0  ;;  %vm5967_vm10 = vcmp.eq.f32.partialorder %v2673_v9, 8.507059e+37  ;;  %vm5982_vm11 = vmor %vm2669_vm8, %vm2670_vm9 }
 0x3d2   :  { %v2676_v26 = vor.u32 1.1754944e-38, %v2675_v50  ;;  %v2766_v3 = vadd.f32 0.0036580483, %v2765_v36  ;;  %v2881_v53 = vmul.f32 %v5814_v52, %v5814_v52  ;;  %v5973_v56 = vmul.f32 %v2637_v4, %v2613_v48 }
 0x3d3   :  { %v2692_v47 = vadd.f32 1.1283791, %v2691_v51  ;;  %3702 = vrcp.f32 %v5963_v0  ;;  %v5976_v37 = vmin.f32 %v2841_v59, 16.0  ;;  %v2705_v45 = vmul.f32 %v5960_v63, %v5913_v31 }
 0x3d4   :  { %v2729_v5 = vmul.f32 %v2728_v28, %v5853_v57  ;;  %v2778_v48 = vmul.f32 %v2777_v23, %v5921_v21  ;;  %v2803_v8 = vmul.f32 2.1237322e-06, %v5965_v1  ;;  %v2672_v19 = vsel %vm5982_vm11, %v5882_v24, %v2668_v13 }
 0x3d5   :  { %v2713_v35 = vand.u32 2147483647, %v5913_v31  ;;  %v2715_v61 = vand.u32 2147483648, %v5913_v31  ;;  %v2814_v9 = vmul.f32 3.8918573e-05, %v5965_v1  ;;  %v2767_v50 = vmul.f32 %v2766_v3, %v5921_v21 }
 0x3d6   :  { %v2779_v51 = vadd.f32 0.112945676, %v2778_v48  ;;  %v2804_v55 = vadd.f32 0.00028619796, %v2803_v8  ;;  %v5998_v36 = vmin.f32 %v2881_v53, 16.0  ;;  %v6001_v46 = vmul.f32 %v2692_v47, %v5741_v60 }
 0x3d7   :  { %v2815_v2 = vadd.f32 0.001143296, %v2814_v9  ;;  %v2843_v4 = vmul.f32 2.1237322e-06, %v5976_v37  ;;  %v2854_v24 = vmul.f32 3.8918573e-05, %v5976_v37  ;;  %v2677_v3 = vsel %vm5967_vm10, %v2676_v26, %v2672_v19 }
 0x3d8   :  { %v2706_v28 = vsub.f32 1.0, %v2705_v45  ;;  %v2730_v59 = vadd.f32 0.18741608, %v2729_v5  ;;  %v2780_v13 = vmul.f32 %v2779_v51, %v5921_v21  ;;  %v2805_v23 = vmul.f32 %v2804_v55, %v5965_v1 }
 0x3d9   :  { %v6007_v27 = vpop.eup %3702  ;;  %v2816_v53 = vmul.f32 %v2815_v2, %v5965_v1  ;;  %v2844_v60 = vadd.f32 0.00028619796, %v2843_v4  ;;  %v2855_v47 = vadd.f32 0.001143296, %v2854_v24  ;;  %vm2709_vm12 = vweird.f32 %v5913_v31 }
 0x3da   :  { %v2745_v48 = vmul.f32 %v6007_v27, %v5963_v0  ;;  %v2768_v45 = vadd.f32 0.05243302, %v2767_v50  ;;  %v2781_v5 = vadd.f32 0.4994258, %v2780_v13  ;;  %v2883_v8 = vmul.f32 2.1237322e-06, %v5998_v36 }
 0x3db   :  { %v2806_v9 = vadd.f32 0.0036580483, %v2805_v23  ;;  %v2817_v51 = vadd.f32 0.014752088, %v2816_v53  ;;  %v2845_v55 = vmul.f32 %v2844_v60, %v5976_v37  ;;  %v2856_v15 = vmul.f32 %v2855_v47, %v5976_v37 }
 0x3dc   :  { %v2707_v26 = vmul.f32 %v5960_v63, %v2706_v28  ;;  %v2731_v19 = vmul.f32 %v2730_v59, %v5853_v57  ;;  %v2746_v2 = vsub.f32 1.0, %v2745_v48  ;;  %v2782_v4 = vmul.f32 %v2781_v5, %v5921_v21 }
 0x3dd   :  { %v2807_v24 = vmul.f32 %v2806_v9, %v5965_v1  ;;  %v2818_v50 = vmul.f32 %v2817_v51, %v5965_v1  ;;  %v2846_v13 = vadd.f32 0.0036580483, %v2845_v55  ;;  %v2857_v32 = vadd.f32 0.014752088, %v2856_v15 }
 0x3de   :  { %vm6023_vm13 = vcmp.eq.f32.partialorder %v2713_v35, 8.507059e+37  ;;  %v2747_v53 = vmul.f32 %v6007_v27, %v2746_v2  ;;  %v2769_v60 = vmul.f32 %v2768_v45, %v5921_v21  ;;  %v2884_v28 = vadd.f32 0.00028619796, %v2883_v8 }
 0x3df   :  { %v6029_v47 = vadd.f32 1.0, %v2782_v4  ;;  %v2808_v57 = vadd.f32 0.05243302, %v2807_v24  ;;  %v2819_v59 = vadd.f32 0.112945676, %v2818_v50  ;;  %v2858_v48 = vmul.f32 %v2857_v32, %v5976_v37 }
 0x3e0   :  { %v2708_v5 = vadd.f32 %v5960_v63, %v2707_v26  ;;  %vm2710_vm14 = vweird.f32 %v5960_v63  ;;  %v2732_v9 = vadd.f32 1.1283791, %v2731_v19  ;;  %v2847_v35 = vmul.f32 %v2846_v13, %v5976_v37 }
 0x3e1   :  { %vm2749_vm15 = vweird.f32 %v5963_v0  ;;  %v2809_v51 = vmul.f32 %v2808_v57, %v5965_v1  ;;  %v2820_v45 = vmul.f32 %v2819_v59, %v5965_v1  ;;  %v2921_v8 = vmul.f32 %v5819_v25, %v5819_v25  ;;  %vm6045_vm1 = vmor %vm2709_vm12, %vm2710_vm14 }
 0x3e2   :  { %v2748_v55 = vadd.f32 %v6007_v27, %v2747_v53  ;;  %vm2750_vm0 = vweird.f32 %v6007_v27  ;;  %v2859_v32 = vadd.f32 0.112945676, %v2858_v48  ;;  %v2885_v15 = vmul.f32 %v2884_v28, %v5998_v36 }
 0x3e3   :  { %v2753_v19 = vand.u32 2147483647, %v5963_v0  ;;  %v2755_v2 = vand.u32 2147483648, %v5963_v0  ;;  %v2770_v4 = vadd.f32 0.18741608, %v2769_v60  ;;  %3704 = vrcp.f32 %v6029_v47  ;;  %vm6060_vm2 = vmor %vm2749_vm15, %vm2750_vm0 }
 0x3e4   :  { %v2712_v24 = vsel %vm6045_vm1, %v5960_v63, %v2708_v5  ;;  %v2821_v50 = vadd.f32 0.4994258, %v2820_v45  ;;  %v2848_v13 = vadd.f32 0.05243302, %v2847_v35  ;;  %v2860_v53 = vmul.f32 %v2859_v32, %v5976_v37 }
 0x3e5   :  { %v2716_v28 = vor.u32 1.1754944e-38, %v2715_v61  ;;  %v2810_v60 = vadd.f32 0.18741608, %v2809_v51  ;;  %v2894_v59 = vmul.f32 3.8918573e-05, %v5998_v36  ;;  %v6065_v48 = vmin.f32 %v2921_v8, 16.0 }
 0x3e6   :  { %v2752_v63 = vsel %vm6060_vm2, %v6007_v27, %v2748_v55  ;;  %v2822_v5 = vmul.f32 %v2821_v50, %v5965_v1  ;;  %v2861_v35 = vadd.f32 0.4994258, %v2860_v53  ;;  %v2886_v31 = vadd.f32 0.0036580483, %v2885_v15 }
 0x3e7   :  { %v6072_v61 = vmul.f32 %v2677_v3, %v5942_v54  ;;  %v2717_v0 = vsel %vm6023_vm13, %v2716_v28, %v2712_v24  ;;  %v2756_v45 = vor.u32 1.1754944e-38, %v2755_v2  ;;  %v2771_v51 = vmul.f32 %v2770_v4, %v5921_v21 }
 0x3e8   :  { %vm2754_vm3 = vcmp.eq.f32.partialorder %v2753_v19, 8.507059e+37  ;;  %v6077_v8 = vadd.f32 1.0, %v2822_v5  ;;  %v2862_v32 = vmul.f32 %v2861_v35, %v5976_v37  ;;  %v2895_v26 = vadd.f32 0.001143296, %v2894_v59 }
 0x3e9   :  { %v6080_v27 = vpop.eup %3704  ;;  %v2757_v55 = vsel %vm2754_vm3, %v2756_v45, %v2752_v63  ;;  %v2811_v15 = vmul.f32 %v2810_v60, %v5965_v1  ;;  %v2849_v54 = vmul.f32 %v2848_v13, %v5976_v37  ;;  %v2923_v3 = vmul.f32 2.1237322e-06, %v6065_v48 }
 0x3ea   :  { %v6086_v23 = vmul.f32 %v2717_v0, %v6001_v46  ;;  %v2733_v21 = vmul.f32 %v2732_v9, %v5786_v43  ;;  %3706 = vrcp.f32 %v6077_v8  ;;  %v2887_v19 = vmul.f32 %v2886_v31, %v5998_v36 }
 0x3eb   :  { %v2772_v4 = vadd.f32 1.1283791, %v2771_v51  ;;  %v2795_v24 = vand.u32 2147483648, %v6029_v47  ;;  %v6093_v50 = vadd.f32 1.0, %v2862_v32  ;;  %v2785_v13 = vmul.f32 %v6080_v27, %v6029_v47 }
 0x3ec   :  { %v6095_v1 = vmul.f32 %v2757_v55, %v2733_v21  ;;  %v2896_v46 = vmul.f32 %v2895_v26, %v5998_v36  ;;  %v2924_v53 = vadd.f32 0.00028619796, %v2923_v3  ;;  %v2812_v9 = vadd.f32 1.1283791, %v2811_v15 }
 0x3ed   :  { %v2850_v28 = vadd.f32 0.18741608, %v2849_v54  ;;  %3708 = vrcp.f32 %v6093_v50  ;;  %v2888_v59 = vadd.f32 0.05243302, %v2887_v19  ;;  %v6105_v5 = vmul.f32 %v2772_v4, %v5795_v7 }
 0x3ee   :  { %v2897_v63 = vadd.f32 0.014752088, %v2896_v46  ;;  %v2925_v35 = vmul.f32 %v2924_v53, %v6065_v48  ;;  %v2934_v31 = vmul.f32 3.8918573e-05, %v6065_v48  ;;  %v2961_v0 = vmul.f32 %v5822_v49, %v5822_v49 }
 0x3ef   :  { %v2786_v32 = vsub.f32 1.0, %v2785_v13  ;;  %v2793_v26 = vand.u32 2147483647, %v6029_v47  ;;  %v6115_v55 = vor.u32 1.1754944e-38, %v2795_v24  ;;  %vm2790_vm4 = vweird.f32 %v6080_v27 }
 0x3f0   :  { %v6111_v45 = vpop.eup %3706  ;;  %v6119_v7 = vmul.f32 %v2812_v9, %v5797_v16  ;;  %v2851_v54 = vmul.f32 %v2850_v28, %v5976_v37  ;;  %v2898_v3 = vmul.f32 %v2897_v63, %v5998_v36  ;;  %v2889_v21 = vmul.f32 %v2888_v59, %v5998_v36 }
 0x3f1   :  { %v2825_v15 = vmul.f32 %v6111_v45, %v6077_v8  ;;  %v2926_v19 = vadd.f32 0.0036580483, %v2925_v35  ;;  %v2935_v4 = vadd.f32 0.001143296, %v2934_v31  ;;  %v6126_v13 = vmin.f32 %v2961_v0, 16.0 }
 0x3f2   :  { %vm2789_vm5 = vweird.f32 %v6029_v47  ;;  %v2833_v16 = vand.u32 2147483647, %v6077_v8  ;;  %v2899_v53 = vadd.f32 0.112945676, %v2898_v3  ;;  %v3001_v9 = vmul.f32 %v5826_v18, %v5826_v18 }
 0x3f3   :  { %v6128_v24 = vpop.eup %3708  ;;  %v2826_v46 = vsub.f32 1.0, %v2825_v15  ;;  %v2787_v37 = vmul.f32 %v6080_v27, %v2786_v32  ;;  %v2835_v28 = vand.u32 2147483648, %v6077_v8  ;;  %v2936_v63 = vmul.f32 %v2935_v4, %v6065_v48  ;;  %vm6169_vm9 = vmor %vm2789_vm5, %vm2790_vm4 }
 0x3f4   :  { %v2865_v59 = vmul.f32 %v6128_v24, %v6093_v50  ;;  %vm2829_vm6 = vweird.f32 %v6077_v8  ;;  %v6140_v35 = vadd.f32 1.1283791, %v2851_v54  ;;  %v2900_v31 = vmul.f32 %v2899_v53, %v5998_v36 }
 0x3f5   :  { %v2963_v0 = vmul.f32 2.1237322e-06, %v6126_v13  ;;  %v2974_v15 = vmul.f32 3.8918573e-05, %v6126_v13  ;;  %v2927_v32 = vmul.f32 %v2926_v19, %v6065_v48  ;;  %v2937_v51 = vadd.f32 0.014752088, %v2936_v63 }
 0x3f6   :  { %v2866_v3 = vsub.f32 1.0, %v2865_v59  ;;  %v6146_v60 = vmin.f32 %v3001_v9, 16.0  ;;  %vm6148_vm7 = vcmp.eq.f32.partialorder %v2793_v26, 8.507059e+37  ;;  %v2827_v4 = vmul.f32 %v6111_v45, %v2826_v46 }
 0x3f7   :  { %v2901_v54 = vadd.f32 0.4994258, %v2900_v31  ;;  %v2964_v43 = vadd.f32 0.00028619796, %v2963_v0  ;;  %v2975_v2 = vadd.f32 0.001143296, %v2974_v15  ;;  %v2938_v14 = vmul.f32 %v2937_v51, %v6065_v48 }
 0x3f8   :  { %v2867_v53 = vmul.f32 %v6128_v24, %v2866_v3  ;;  %v2890_v29 = vadd.f32 0.18741608, %v2889_v21  ;;  %v3003_v59 = vmul.f32 2.1237322e-06, %v6146_v60  ;;  %v2788_v19 = vadd.f32 %v6080_v27, %v2787_v37 }
 0x3f9   :  { %v2902_v9 = vmul.f32 %v2901_v54, %v5998_v36  ;;  %v2965_v26 = vmul.f32 %v2964_v43, %v6126_v13  ;;  %v2976_v63 = vmul.f32 %v2975_v2, %v6126_v13  ;;  %vm2830_vm8 = vweird.f32 %v6111_v45 }
 0x3fa   :  { %v2873_v46 = vand.u32 2147483647, %v6093_v50  ;;  %v2928_v31 = vadd.f32 0.05243302, %v2927_v32  ;;  %v2939_v0 = vadd.f32 0.112945676, %v2938_v14  ;;  %v2828_v21 = vadd.f32 %v6111_v45, %v2827_v4  ;;  %vm6186_vm11 = vmor %vm2829_vm6, %vm2830_vm8 }
 0x3fb   :  { %v6163_v15 = vadd.f32 1.0, %v2902_v9  ;;  %v2966_v51 = vadd.f32 0.0036580483, %v2965_v26  ;;  %v2977_v3 = vadd.f32 0.014752088, %v2976_v63  ;;  %v2868_v2 = vadd.f32 %v6128_v24, %v2867_v53 }
 0x3fc   :  { %vm2870_vm10 = vweird.f32 %v6128_v24  ;;  %v2940_v14 = vmul.f32 %v2939_v0, %v6065_v48  ;;  %v3004_v37 = vadd.f32 0.00028619796, %v3003_v59  ;;  %v2792_v32 = vsel %vm6169_vm9, %v6080_v27, %v2788_v19 }
 0x3fd   :  { %v2875_v4 = vand.u32 2147483648, %v6093_v50  ;;  %v2891_v54 = vmul.f32 %v2890_v29, %v5998_v36  ;;  %3710 = vrcp.f32 %v6163_v15  ;;  %vm6190_vm12 = vcmp.eq.f32.partialorder %v2833_v16, 8.507059e+37 }
 0x3fe   :  { %v2836_v59 = vor.u32 1.1754944e-38, %v2835_v28  ;;  %vm2869_vm13 = vweird.f32 %v6093_v50  ;;  %v2929_v27 = vmul.f32 %v2928_v31, %v6065_v48  ;;  %v2832_v29 = vsel %vm6186_vm11, %v6111_v45, %v2828_v21 }
 0x3ff   :  { %vm6199_vm14 = vmor %vm2869_vm13, %vm2870_vm10  ;;  %v2941_v8 = vadd.f32 0.4994258, %v2940_v14  ;;  %v2967_v19 = vmul.f32 %v2966_v51, %v6126_v13  ;;  %v2978_v16 = vmul.f32 %v2977_v3, %v6126_v13  ;;  %v2797_v28 = vsel %vm6148_vm7, %v6115_v55, %v2792_v32 }
 0x400   :  { %v2872_v50 = vsel %vm6199_vm14, %v6128_v24, %v2868_v2  ;;  %vm2874_vm15 = vcmp.eq.f32.partialorder %v2873_v46, 8.507059e+37  ;;  %v3005_v45 = vmul.f32 %v3004_v37, %v6146_v60  ;;  %v2876_v9 = vor.u32 1.1754944e-38, %v2875_v4 }
 0x401   :  { %v2892_v26 = vadd.f32 1.1283791, %v2891_v54  ;;  %v2942_v63 = vmul.f32 %v2941_v8, %v6065_v48  ;;  %v2979_v31 = vadd.f32 0.112945676, %v2978_v16  ;;  %v2837_v0 = vsel %vm6190_vm12, %v2836_v59, %v2832_v29 }
 0x402   :  { %v2930_v21 = vadd.f32 0.18741608, %v2929_v27  ;;  %v3014_v51 = vmul.f32 3.8918573e-05, %v6146_v60  ;;  %v3041_v57 = vmul.f32 %v5832_v39, %v5832_v39  ;;  %v2877_v24 = vsel %vm2874_vm15, %v2876_v9, %v2872_v50 }
 0x403   :  { %v6218_v55 = vpop.eup %3710  ;;  %v6220_v46 = vadd.f32 1.0, %v2942_v63  ;;  %v2968_v3 = vadd.f32 0.05243302, %v2967_v19  ;;  %v2980_v43 = vmul.f32 %v2979_v31, %v6126_v13  ;;  %v3006_v14 = vadd.f32 0.0036580483, %v3005_v45 }
 0x404   :  { %v2905_v2 = vmul.f32 %v6218_v55, %v6163_v15  ;;  %v3015_v37 = vadd.f32 0.001143296, %v3014_v51  ;;  %v6225_v32 = vmin.f32 %v3041_v57, 16.0  ;;  %v6228_v4 = vmul.f32 %v2797_v28, %v6105_v5 }
 0x405   :  { %v2853_v54 = vmul.f32 %v6140_v35, %v5809_v40  ;;  %3712 = vrcp.f32 %v6220_v46  ;;  %v3081_v47 = vmul.f32 %v5835_v17, %v5835_v17  ;;  %v6236_v53 = vmul.f32 %v2837_v0, %v6119_v7 }
 0x406   :  { %v2931_v59 = vmul.f32 %v2930_v21, %v6065_v48  ;;  %v2981_v27 = vadd.f32 0.4994258, %v2980_v43  ;;  %v3016_v29 = vmul.f32 %v3015_v37, %v6146_v60  ;;  %v6243_v5 = vmul.f32 %v2892_v26, %v5814_v52 }
 0x407   :  { %v6240_v36 = vmul.f32 %v2877_v24, %v2853_v54  ;;  %v2969_v40 = vmul.f32 %v2968_v3, %v6126_v13  ;;  %v3043_v35 = vmul.f32 2.1237322e-06, %v6225_v32  ;;  %v2906_v8 = vsub.f32 1.0, %v2905_v2 }
 0x408   :  { %v2982_v19 = vmul.f32 %v2981_v27, %v6126_v13  ;;  %v3007_v7 = vmul.f32 %v3006_v14, %v6146_v60  ;;  %v3017_v16 = vadd.f32 0.014752088, %v3016_v29  ;;  %v2915_v48 = vand.u32 2147483648, %v6163_v15 }
 0x409   :  { %v3044_v28 = vadd.f32 0.00028619796, %v3043_v35  ;;  %v3054_v50 = vmul.f32 3.8918573e-05, %v6225_v32  ;;  %v6251_v45 = vmin.f32 %v3081_v47, 16.0  ;;  %v3499_v52 = vclamps-f32 %v6228_v4, 1.0 }
 0x40a   :  { %v3500_v9 = vclamps-f32 %v6236_v53, 1.0  ;;  %v2932_v26 = vadd.f32 1.1283791, %v2931_v59  ;;  %v6255_v63 = vadd.f32 1.0, %v2982_v19  ;;  %vm2909_vm0 = vweird.f32 %v6163_v15 }
 0x40b   :  { %v6257_v31 = vpop.eup %3712  ;;  %v2913_v0 = vand.u32 2147483647, %v6163_v15  ;;  %v3018_v21 = vmul.f32 %v3017_v16, %v6146_v60  ;;  %v3045_v51 = vmul.f32 %v3044_v28, %v6225_v32  ;;  %v3055_v57 = vadd.f32 0.001143296, %v3054_v50 }
 0x40c   :  { %v2907_v24 = vmul.f32 %v6218_v55, %v2906_v8  ;;  %v2945_v3 = vmul.f32 %v6257_v31, %v6220_v46  ;;  %v2970_v43 = vadd.f32 0.18741608, %v2969_v40  ;;  %v3008_v2 = vadd.f32 0.05243302, %v3007_v7 }
 0x40d   :  { %v2916_v37 = vor.u32 1.1754944e-38, %v2915_v48  ;;  %3714 = vrcp.f32 %v6255_v63  ;;  %v3083_v54 = vmul.f32 2.1237322e-06, %v6251_v45  ;;  %v6270_v47 = vmul.f32 %v2932_v26, %v5819_v25 }
 0x40e   :  { %v2946_v59 = vsub.f32 1.0, %v2945_v3  ;;  %v2955_v27 = vand.u32 2147483648, %v6220_v46  ;;  %v3121_v29 = vmul.f32 %v5856_v12, %v5856_v12  ;;  %vm2910_vm1 = vweird.f32 %v6218_v55 }
 0x40f   :  { %v3019_v40 = vadd.f32 0.112945676, %v3018_v21  ;;  %v3046_v35 = vadd.f32 0.0036580483, %v3045_v51  ;;  %v3056_v8 = vmul.f32 %v3055_v57, %v6225_v32  ;;  %v2908_v19 = vadd.f32 %v6218_v55, %v2907_v24  ;;  %vm6300_vm4 = vmor %vm2909_vm0, %vm2910_vm1 }
 0x410   :  { %vm6278_vm2 = vcmp.eq.f32.partialorder %v2913_v0, 8.507059e+37  ;;  %v2953_v25 = vand.u32 2147483647, %v6220_v46  ;;  %v2971_v16 = vmul.f32 %v2970_v43, %v6126_v13  ;;  %v3009_v48 = vmul.f32 %v3008_v2, %v6146_v60 }
 0x411   :  { %vm2949_vm3 = vweird.f32 %v6220_v46  ;;  %v3020_v28 = vmul.f32 %v3019_v40, %v6146_v60  ;;  %v3047_v50 = vmul.f32 %v3046_v35, %v6225_v32  ;;  %v3057_v26 = vadd.f32 0.014752088, %v3056_v8 }
 0x412   :  { %v3084_v21 = vadd.f32 0.00028619796, %v3083_v54  ;;  %v2947_v51 = vmul.f32 %v6257_v31, %v2946_v59  ;;  %v2956_v0 = vor.u32 1.1754944e-38, %v2955_v27  ;;  %v3094_v57 = vmul.f32 3.8918573e-05, %v6251_v45 }
 0x413   :  { %v6290_v24 = vmin.f32 %v3121_v29, 16.0  ;;  %v6292_v3 = vpop.eup %3714  ;;  %v3021_v13 = vadd.f32 0.4994258, %v3020_v28  ;;  %v3048_v43 = vadd.f32 0.05243302, %v3047_v50  ;;  %v3058_v2 = vmul.f32 %v3057_v26, %v6225_v32 }
 0x414   :  { %v3085_v14 = vmul.f32 %v3084_v21, %v6251_v45  ;;  %v2972_v59 = vadd.f32 1.1283791, %v2971_v16  ;;  %v2985_v27 = vmul.f32 %v6292_v3, %v6255_v63  ;;  %v3010_v29 = vadd.f32 0.18741608, %v3009_v48 }
 0x415   :  { %v3095_v40 = vadd.f32 0.001143296, %v3094_v57  ;;  %v2912_v35 = vsel %vm6300_vm4, %v6218_v55, %v2908_v19  ;;  %vm2950_vm5 = vweird.f32 %v6257_v31  ;;  %vm6310_vm6 = vcmp.eq.f32.partialorder %v2953_v25, 8.507059e+37 }
 0x416   :  { %v3022_v15 = vmul.f32 %v3021_v13, %v6146_v60  ;;  %v3059_v28 = vadd.f32 0.112945676, %v3058_v2  ;;  %v2986_v50 = vsub.f32 1.0, %v2985_v27  ;;  %v3049_v16 = vmul.f32 %v3048_v43, %v6225_v32  ;;  %vm6334_vm8 = vmor %vm2949_vm3, %vm2950_vm5 }
 0x417   :  { %v3086_v26 = vadd.f32 0.0036580483, %v3085_v14  ;;  %v3096_v48 = vmul.f32 %v3095_v40, %v6251_v45  ;;  %v2948_v21 = vadd.f32 %v6257_v31, %v2947_v51  ;;  %v3123_v19 = vmul.f32 2.1237322e-06, %v6290_v24 }
 0x418   :  { %v6318_v57 = vadd.f32 1.0, %v3022_v15  ;;  %v3060_v55 = vmul.f32 %v3059_v28, %v6225_v32  ;;  %v2973_v25 = vmul.f32 %v2972_v59, %v5822_v49  ;;  %v2987_v54 = vmul.f32 %v6292_v3, %v2986_v50 }
 0x419   :  { %v3087_v13 = vmul.f32 %v3086_v26, %v6251_v45  ;;  %v3097_v2 = vadd.f32 0.014752088, %v3096_v48  ;;  %v2917_v14 = vsel %vm6278_vm2, %v2916_v37, %v2912_v35  ;;  %vm2989_vm7 = vweird.f32 %v6255_v63 }
 0x41a   :  { %v3011_v51 = vmul.f32 %v3010_v29, %v6146_v60  ;;  %3716 = vrcp.f32 %v6318_v57  ;;  %v2988_v43 = vadd.f32 %v6292_v3, %v2987_v54  ;;  %vm2990_vm9 = vweird.f32 %v6292_v3 }
 0x41b   :  { %v3050_v7 = vadd.f32 0.18741608, %v3049_v16  ;;  %v3061_v37 = vadd.f32 0.4994258, %v3060_v55  ;;  %v2952_v60 = vsel %vm6334_vm8, %v6257_v31, %v2948_v21  ;;  %v3088_v59 = vadd.f32 0.05243302, %v3087_v13  ;;  %vm6352_vm10 = vmor %vm2989_vm7, %vm2990_vm9 }
 0x41c   :  { %v3098_v27 = vmul.f32 %v3097_v2, %v6251_v45  ;;  %v3124_v29 = vadd.f32 0.00028619796, %v3123_v19  ;;  %v6345_v46 = vmul.f32 %v2917_v14, %v6243_v5  ;;  %v2993_v40 = vand.u32 2147483647, %v6255_v63 }
 0x41d   :  { %v2995_v35 = vand.u32 2147483648, %v6255_v63  ;;  %v3062_v15 = vmul.f32 %v3061_v37, %v6225_v32  ;;  %v3012_v31 = vadd.f32 1.1283791, %v3011_v51  ;;  %v3134_v26 = vmul.f32 3.8918573e-05, %v6290_v24 }
 0x41e   :  { %v3099_v50 = vadd.f32 0.112945676, %v3098_v27  ;;  %v3125_v16 = vmul.f32 %v3124_v29, %v6290_v24  ;;  %v2957_v5 = vsel %vm6310_vm6, %v2956_v0, %v2952_v60  ;;  %v2992_v48 = vsel %vm6352_vm10, %v6292_v3, %v2988_v43 }
 0x41f   :  { %v3051_v21 = vmul.f32 %v3050_v7, %v6225_v32  ;;  %v6364_v63 = vadd.f32 1.0, %v3062_v15  ;;  %v3089_v19 = vmul.f32 %v3088_v59, %v6251_v45  ;;  %v3135_v2 = vadd.f32 0.001143296, %v3134_v26 }
 0x420   :  { %v3717_v55 = vpop.eup %3716  ;;  %v3100_v54 = vmul.f32 %v3099_v50, %v6251_v45  ;;  %v3126_v13 = vadd.f32 0.0036580483, %v3125_v16  ;;  %vm2994_vm11 = vcmp.eq.f32.partialorder %v2993_v40, 8.507059e+37  ;;  %v2996_v14 = vor.u32 1.1754944e-38, %v2995_v35 }
 0x421   :  { %v3025_v8 = vmul.f32 %v3717_v55, %v6318_v57  ;;  %3718 = vrcp.f32 %v6364_v63  ;;  %v3502_v0 = vclamps-f32 %v6345_v46, 1.0  ;;  %v6372_v3 = vmul.f32 %v2957_v5, %v6270_v47 }
 0x422   :  { %v3013_v32 = vmul.f32 %v3012_v31, %v5826_v18  ;;  %v3033_v51 = vand.u32 2147483647, %v6318_v57  ;;  %v2997_v49 = vsel %vm2994_vm11, %v2996_v14, %v2992_v48  ;;  %v3101_v7 = vadd.f32 0.4994258, %v3100_v54 }
 0x423   :  { %v3026_v43 = vsub.f32 1.0, %v3025_v8  ;;  %v3136_v37 = vmul.f32 %v3135_v2, %v6290_v24  ;;  %v3035_v60 = vand.u32 2147483648, %v6318_v57  ;;  %v3052_v59 = vadd.f32 1.1283791, %v3051_v21 }
 0x424   :  { %v3090_v27 = vadd.f32 0.18741608, %v3089_v19  ;;  %v3127_v29 = vmul.f32 %v3126_v13, %v6290_v24  ;;  %vm3030_vm12 = vweird.f32 %v3717_v55  ;;  %v3102_v47 = vmul.f32 %v3101_v7, %v6251_v45 }
 0x425   :  { %v3027_v40 = vmul.f32 %v3717_v55, %v3026_v43  ;;  %v3137_v35 = vadd.f32 0.014752088, %v3136_v37  ;;  %v3503_v18 = vclamps-f32 %v6372_v3, 1.0  ;;  %v2998_v15 = vmul.f32 %v2997_v49, %v2973_v25 }
 0x426   :  { %vm3029_vm13 = vweird.f32 %v6318_v57  ;;  %v3073_v28 = vand.u32 2147483647, %v6364_v63  ;;  %v3075_v16 = vand.u32 2147483648, %v6364_v63  ;;  %v6384_v26 = vadd.f32 1.0, %v3102_v47 }
 0x427   :  { %v3719_v31 = vpop.eup %3718  ;;  %v3028_v50 = vadd.f32 %v3717_v55, %v3027_v40  ;;  %v3138_v5 = vmul.f32 %v3137_v35, %v6290_v24  ;;  %vm3031_vm14 = vmor %vm3029_vm13, %vm3030_vm12  ;;  %v3036_v48 = vor.u32 1.1754944e-38, %v3035_v60  ;;  %v3091_v19 = vmul.f32 %v3090_v27, %v6251_v45 }
 0x428   :  { %v3065_v21 = vmul.f32 %v3719_v31, %v6364_v63  ;;  %v3128_v54 = vadd.f32 0.05243302, %v3127_v29  ;;  %vm3034_vm15 = vcmp.eq.f32.partialorder %v3033_v51, 8.507059e+37  ;;  %v3053_v57 = vmul.f32 %v3052_v59, %v5832_v39 }
 0x429   :  { %v3032_v25 = vsel %vm3031_vm14, %v3717_v55, %v3028_v50  ;;  %3720 = vrcp.f32 %v6384_v26  ;;  %v3504_v13 = vclamps-f32 %v2998_v15, 1.0  ;;  %vm3069_vm0 = vweird.f32 %v6364_v63 }
 0x42a   :  { %v3037_v2 = vsel %vm3034_vm15, %v3036_v48, %v3032_v25  ;;  %v3066_v14 = vsub.f32 1.0, %v3065_v21  ;;  %vm6392_vm1 = vcmp.eq.f32.partialorder %v3073_v28, 8.507059e+37  ;;  %v3076_v49 = vor.u32 1.1754944e-38, %v3075_v16 }
 0x42b   :  { %v3038_v8 = vmul.f32 %v3037_v2, %v3013_v32  ;;  %v3139_v43 = vadd.f32 0.112945676, %v3138_v5  ;;  %vm3070_vm2 = vweird.f32 %v3719_v31  ;;  %v6396_v55 = vadd.f32 1.1283791, %v3091_v19 }
 0x42c   :  { %v3067_v45 = vmul.f32 %v3719_v31, %v3066_v14  ;;  %v3129_v39 = vmul.f32 %v3128_v54, %v6290_v24  ;;  %v3113_v51 = vand.u32 2147483647, %v6384_v26  ;;  %v6628_v37 = vclamps-f32 %v5887_v33, 1.0  ;;  %vm3071_vm4 = vmor %vm3069_vm0, %vm3070_vm2 }
 0x42d   :  { %v3140_v7 = vmul.f32 %v3139_v43, %v6290_v24  ;;  %v6629_v32 = vclamps-f32 %v5936_v38, 1.0  ;;  %vm3109_vm3 = vweird.f32 %v6384_v26  ;;  %v3115_v29 = vand.u32 2147483648, %v6384_v26 }
 0x42e   :  { %v3161_v60 = vadd.f32 1.0, %v6628_v37  ;;  %v3068_v27 = vadd.f32 %v3719_v31, %v3067_v45  ;;  %v6630_v40 = vclamps-f32 %v5973_v56, 1.0  ;;  %v6631_v35 = vclamps-f32 %v6072_v61, 1.0 }
 0x42f   :  { %v3162_v59 = vadd.f32 1.0, %v6629_v32  ;;  %v3721_v28 = vpop.eup %3720  ;;  %v3505_v50 = vclamps-f32 %v3038_v8, 1.0  ;;  %v3141_v33 = vadd.f32 0.4994258, %v3140_v7  ;;  %v6632_v38 = vclamps-f32 %v6086_v23, 1.0  ;;  %v6637_v7 = vld [vmem:[#allocation5_spill] sm:$0xff] }
 0x430   :  { %v3163_v47 = vadd.f32 1.0, %v6630_v40  ;;  %v3164_v15 = vadd.f32 1.0, %v6631_v35  ;;  %v6633_v5 = vclamps-f32 %v6095_v1, 1.0  ;;  %v3072_v21 = vsel %vm3071_vm4, %v3719_v31, %v3068_v27 }
 0x431   :  { %v3165_v16 = vadd.f32 1.0, %v6632_v38  ;;  %v3105_v19 = vmul.f32 %v3721_v28, %v6384_v26  ;;  %v3167_v56 = vadd.f32 1.0, %v3499_v52  ;;  %v3168_v61 = vadd.f32 1.0, %v3500_v9  ;;  %v6638_v26 = vld [vmem:[#allocation6_spill] sm:$0xff] }
 0x432   :  { %v3166_v48 = vadd.f32 1.0, %v6633_v5  ;;  %v3077_v63 = vsel %vm6392_vm1, %v3076_v49, %v3072_v21  ;;  %v3142_v54 = vmul.f32 %v3141_v33, %v6290_v24  ;;  %v6634_v23 = vclamps-f32 %v6240_v36, 1.0 }
 0x433   :  { %v3170_v1 = vadd.f32 1.0, %v3502_v0  ;;  %v3078_v31 = vmul.f32 %v3077_v63, %v3053_v57  ;;  %v3106_v2 = vsub.f32 1.0, %v3105_v19  ;;  %vm3110_vm5 = vweird.f32 %v3721_v28 }
 0x434   :  { %v3169_v25 = vadd.f32 1.0, %v6634_v23  ;;  %v3171_v14 = vadd.f32 1.0, %v3503_v18  ;;  %v3143_v4 = vadd.f32 1.0, %v3142_v54  ;;  %v3172_v52 = vadd.f32 1.0, %v3504_v13  ;;  %vm6440_vm6 = vmor %vm3109_vm3, %vm3110_vm5  ;;  %v6640_v54 = vld [vmem:[#allocation10_spill] sm:$0xff] }
 0x435   :  { %v3173_v8 = vadd.f32 1.0, %v3505_v50  ;;  %v3177_v53 = vmul.f32 %v3161_v60, %v5728_v41  ;;  %v3506_v9 = vclamps-f32 %v3078_v31, 1.0  ;;  %v3107_v3 = vmul.f32 %v3721_v28, %v3106_v2 }
 0x436   :  { %v3178_v49 = vmul.f32 %v3162_v59, %v5731_v62  ;;  %v3179_v43 = vmul.f32 %v3163_v47, %v5736_v6  ;;  %3722 = vrcp.f32 %v3143_v4  ;;  %v3180_v36 = vmul.f32 %v3164_v15, %v5738_v10 }
 0x437   :  { %v3181_v46 = vmul.f32 %v3165_v16, %v5745_v20  ;;  %v3182_v0 = vmul.f32 %v3166_v48, %v5752_v30  ;;  %v3108_v57 = vadd.f32 %v3721_v28, %v3107_v3  ;;  %v3174_v18 = vadd.f32 1.0, %v3506_v9 }
 0x438   :  { %v3183_v13 = vmul.f32 %v3167_v56, %v5754_v58  ;;  %v3184_v45 = vmul.f32 %v3168_v61, %v5756_v34  ;;  %v3116_v62 = vor.u32 1.1754944e-38, %v3115_v29  ;;  %v3130_v6 = vadd.f32 0.18741608, %v3129_v39  ;;  %v6639_v56 = vld [vmem:[#allocation2_spill] sm:$0xff] }
 0x439   :  { %v3185_v10 = vmul.f32 %v3169_v25, %v5759_v22  ;;  %v3186_v20 = vmul.f32 %v3170_v1, %v5765_v44  ;;  %v3112_v30 = vsel %vm6440_vm6, %v3721_v28, %v3108_v57  ;;  %v3187_v58 = vmul.f32 %v3171_v14, %v5768_v42 }
 0x43a   :  { %v3188_v34 = vmul.f32 %v3172_v52, %v5773_v11  ;;  %v3189_v37 = vmul.f32 %v3173_v8, %v6637_v7  ;;  %v3190_v60 = vmul.f32 %v3174_v18, %v6638_v26  ;;  %v3566_v32 = vpack.c.bf16 %v3178_v49, %v3177_v53 }
 0x43b   :  { %v3571_v59 = vpack.c.bf16 %v3180_v36, %v3179_v43  ;;  %v3576_v27 = vpack.c.bf16 %v3182_v0, %v3181_v46  ;;  %vm3114_vm7 = vcmp.eq.f32.partialorder %v3113_v51, 8.507059e+37  ;;  %v3581_v39 = vpack.c.bf16 %v3184_v45, %v3183_v13 }
 0x43c   :  { %v3723_v29 = vpop.eup %3722  ;;  %v3117_v22 = vsel %vm3114_vm7, %v3116_v62, %v3112_v30  ;;  %3567 = vst [vmem:[%s6491_s9] sm:$0xff] %v3566_v32   ;;  %v3586_v44 = vpack.c.bf16 %v3186_v20, %v3185_v10  ;;  %v3093_v42 = vmul.f32 %v6396_v55, %v5835_v17  ;;  %v3131_v11 = vmul.f32 %v3130_v6, %v6290_v24 }
 0x43d   :  { %v3145_v40 = vmul.f32 %v3723_v29, %v3143_v4  ;;  %3603 = vst [vmem:[%s6491_s9 + $0x8] sm:$0xff] %v3571_v59   ;;  %v3591_v47 = vpack.c.bf16 %v3188_v34, %v3187_v58  ;;  %v3596_v51 = vpack.c.bf16 %v3190_v60, %v3189_v37  ;;  %v3155_v17 = vand.u32 2147483648, %v3143_v4 }
 0x43e   :  { %3604 = vst [vmem:[%s6491_s9 + $0x10] sm:$0xff] %v3576_v27   ;;  %v3118_v35 = vmul.f32 %v3117_v22, %v3093_v42  ;;  %v3132_v24 = vadd.f32 1.1283791, %v3131_v11  ;;  %vm3150_vm8 = vweird.f32 %v3723_v29  ;;  %v3153_v28 = vand.u32 2147483647, %v3143_v4 }
 0x43f   :  { %v3146_v15 = vsub.f32 1.0, %v3145_v40  ;;  %3605 = vst [vmem:[%s6491_s9 + $0x18] sm:$0xff] %v3581_v39   ;;  %vm3149_vm9 = vweird.f32 %v3143_v4  ;;  %v3156_v38 = vor.u32 1.1754944e-38, %v3155_v17  ;;  %v2503_v61 = vmul.f32 0.5, %v6639_v56 }
 0x440   :  { %3606 = vst [vmem:[%s6491_s9 + $0x20] sm:$0xff] %v3586_v44   ;;  %v3507_v50 = vclamps-f32 %v3118_v35, 1.0  ;;  %vm3151_vm10 = vmor %vm3149_vm9, %vm3150_vm8  ;;  %v3133_v16 = vmul.f32 %v3132_v24, %v5856_v12  ;;  %vm3154_vm11 = vcmp.eq.f32.partialorder %v3153_v28, 8.507059e+37  ;;  %v2504_v23 = vmul.f32 0.5, %v6640_v54 }
 0x441   :  { %v3147_v55 = vmul.f32 %v3723_v29, %v3146_v15  ;;  %3607 = vst [vmem:[%s6491_s9 + $0x28] sm:$0xff] %v3591_v47  }
 0x442   :  { %3608 = vst [vmem:[%s6491_s9 + $0x30] sm:$0xff] %v3596_v51   ;;  %v3175_v19 = vadd.f32 1.0, %v3507_v50 }
 0x443   :  { %v3148_v33 = vadd.f32 %v3723_v29, %v3147_v55 }
 0x444   :  { %v3191_v1 = vmul.f32 %v3175_v19, %v2503_v61 }
 0x445   :  { %v3152_v5 = vsel %vm3151_vm10, %v3723_v29, %v3148_v33 }
 0x446   :  { %v3157_v48 = vsel %vm3154_vm11, %v3156_v38, %v3152_v5 }
 0x447   :  { %v3158_v21 = vmul.f32 %v3157_v48, %v3133_v16 }
 0x449   :  { %v3508_v63 = vclamps-f32 %v3158_v21, 1.0 }
 0x44b   :  { %v3176_v25 = vadd.f32 1.0, %v3508_v63 }
 0x44d   :  { %v3192_v31 = vmul.f32 %v3176_v25, %v2504_v23 }
 0x44f   :  { %v3601_v2 = vpack.c.bf16 %v3192_v31, %v3191_v1 }
 0x451   :  { %3609 = vst [vmem:[%s6491_s9 + $0x38] sm:$0xff] %v3601_v2  }

</bundles_post_ra>
